<compile_context>
chip_gen: v5e
topology: v5e:2x2
jax: 0.10.0
libtpu: 0.0.40
codegen_flags: <defaults>
</compile_context>

<pallas_src>
import functools

import jax
import jax.numpy as jnp
import numpy as np
from jax.experimental import pallas as pl
from jax.experimental.pallas import tpu as pltpu


def _make_kernel(BB, T, F, Qp, W):
    def kernel(x_ref, convw_ref, convb_ref, attw_ref, attb_ref, q_ref,
               cat_ref, subcat_ref, out_ref):
        # x_ref:      (BB, T+2p, D)  time-padded word embeddings (matmul dtype)
        # convw_ref:  (W, D, F)      per-tap conv weights
        # convb_ref:  (1, F)         conv bias (f32)
        # attw_ref:   (F, Qp)        attention linear weight^T, Q padded to Qp
        # attb_ref:   (1, Qp)        attention bias (f32, padded lanes zero)
        # q_ref:      (1, 1, Qp)     attention query (f32, padded lanes zero)
        # cat_ref:    (BB, F)        category vectors (f32)
        # subcat_ref: (BB, F)        subcategory vectors (f32)
        # out_ref:    (BB, 3F)       final news vectors
        D = x_ref.shape[-1]

        # --- title CNN: W accumulated full-height matmuls on shifted taps ---
        conv = convb_ref[...] + jnp.dot(
            x_ref[:, 0:T, :].reshape(BB * T, D), convw_ref[0],
            preferred_element_type=jnp.float32)
        for w in range(1, W):
            conv = conv + jnp.dot(
                x_ref[:, w:w + T, :].reshape(BB * T, D), convw_ref[w],
                preferred_element_type=jnp.float32)
        act = jnp.maximum(conv, 0.0)                       # (BB*T, F) f32
        # (dropout on activations: identity in eval mode)

        # --- additive attention projection (Q zero-padded to Qp lanes) ---
        proj = jnp.dot(act.astype(attw_ref.dtype), attw_ref[...],
                       preferred_element_type=jnp.float32) + attb_ref[...]
        temp = jnp.tanh(proj)                              # (BB*T, Qp) f32

        # --- scores: VPU multiply + lane reduce (padded lanes contribute 0) ---
        t3 = temp.reshape(BB, T, Qp)
        s3 = jnp.sum(t3 * q_ref[...], axis=-1, keepdims=True)   # (BB, T, 1)

        # --- per-title softmax over time + weighted sum ---
        m = jnp.max(s3, axis=1, keepdims=True)             # (BB, 1, 1)
        e = jnp.exp(s3 - m)
        denom = jnp.sum(e, axis=1, keepdims=True)          # (BB, 1, 1)
        alpha = e * pl.reciprocal(denom, approx=True)      # (BB, T, 1)
        a3 = act.reshape(BB, T, F)
        weighted = jnp.sum(alpha * a3, axis=1)             # (BB, F)

        # --- write final news vector [cat | subcat | weighted] directly ---
        out_ref[:, 0:F] = cat_ref[...].astype(out_ref.dtype)
        out_ref[:, F:2 * F] = subcat_ref[...].astype(out_ref.dtype)
        out_ref[:, 2 * F:3 * F] = weighted.astype(out_ref.dtype)

    return kernel


def news_encoder_forward(title_ids, category_ids, subcategory_ids, params, *,
                         window_size, block_rows=512,
                         matmul_dtype=jnp.bfloat16):
    """LSTUR NewsEncoder forward (eval mode).

    block_rows: target MXU rows (BB*T) per grid step.  512 is a good default
      on all generations; sweep up to 2048 (VMEM footprint here is tiny).
      On v7x prefer values that keep the grid length even (2 TCs/chip).
    matmul_dtype: dtype of matmul operands (bf16 = MXU fast path, default);
      accumulation, softmax and all elementwise math stay f32.
    """
    word_emb = params["word_embedding"].astype(jnp.float32)     # (num_words, D)
    cat_emb = params["category_embedding"].astype(jnp.float32)  # (num_cat, F)
    conv_w = params["conv_weight"]            # (F, 1, W, D) PyTorch Conv1d layout
    conv_b = params["conv_bias"]              # (F,)
    att_w = params["att_weight"]              # (Q, F) PyTorch Linear layout
    att_b = params["att_bias"]                # (Q,)
    att_q = params["att_query"]               # (Q,)

    B, T = title_ids.shape
    D = word_emb.shape[1]
    F = cat_emb.shape[1]
    Q = att_w.shape[0]
    W = window_size
    pad = (W - 1) // 2
    Tp = T + 2 * pad
    Qp = max(128, ((Q + 127) // 128) * 128)   # pad attention width to full lanes

    # Titles per grid step: fill ~block_rows MXU rows, keep BB a multiple of 8
    # (sublane tile of the f32 output / category blocks), cap at the batch.
    BB = max(1, block_rows // T)
    BB = ((BB + 7) // 8) * 8
    BB = min(BB, ((B + 7) // 8) * 8)
    B_pad = ((B + BB - 1) // BB) * BB
    grid = (B_pad // BB,)

    # ---- plain-JAX glue: gathers, padding, parameter repacking ----
    title_vec = word_emb[title_ids]                              # (B, T, D)
    cat_vec = cat_emb[category_ids]                              # (B, F)
    subcat_vec = cat_emb[subcategory_ids]                        # (B, F)
    # Dropout on word embeddings: identity (eval mode).

    # One (B_pad, T+2p, D) array in matmul dtype — the dominant HBM stream.
    xpad = jnp.pad(title_vec, ((0, B_pad - B), (pad, pad), (0, 0))
                   ).astype(matmul_dtype)
    cat_p = jnp.pad(cat_vec, ((0, B_pad - B), (0, 0)))
    subcat_p = jnp.pad(subcat_vec, ((0, B_pad - B), (0, 0)))

    convw3 = jnp.transpose(conv_w[:, 0, :, :], (1, 2, 0)).astype(matmul_dtype)  # (W, D, F)
    convb = conv_b.reshape(1, F).astype(jnp.float32)
    attw = jnp.zeros((F, Qp), matmul_dtype).at[:, :Q].set(
        att_w.T.astype(matmul_dtype))                            # (F, Qp)
    attb = jnp.zeros((1, Qp), jnp.float32).at[:, :Q].set(
        att_b.astype(jnp.float32))
    attq = jnp.zeros((1, 1, Qp), jnp.float32).at[0, 0, :Q].set(
        att_q.astype(jnp.float32))

    kernel = _make_kernel(BB, T, F, Qp, W)

    out = pl.pallas_call(
        kernel,
        out_shape=jax.ShapeDtypeStruct((B_pad, 3 * F), jnp.float32),
        grid=grid,
        in_specs=[
            pl.BlockSpec((BB, Tp, D), lambda b: (b, 0, 0)),   # padded titles
            pl.BlockSpec((W, D, F), lambda b: (0, 0, 0)),     # conv weights
            pl.BlockSpec((1, F), lambda b: (0, 0)),           # conv bias
            pl.BlockSpec((F, Qp), lambda b: (0, 0)),          # attention W^T
            pl.BlockSpec((1, Qp), lambda b: (0, 0)),          # attention bias
            pl.BlockSpec((1, 1, Qp), lambda b: (0, 0, 0)),    # attention query
            pl.BlockSpec((BB, F), lambda b: (b, 0)),          # category vecs
            pl.BlockSpec((BB, F), lambda b: (b, 0)),          # subcategory vecs
        ],
        out_specs=pl.BlockSpec((BB, 3 * F), lambda b: (b, 0)),
        compiler_params=pltpu.CompilerParams(
            dimension_semantics=("parallel",)),
    )(xpad, convw3, convb, attw, attb, attq, cat_p, subcat_p)

    return out[:B]                                               # drop batch pad


def reference_forward(title_ids, category_ids, subcategory_ids, params, *,
                      window_size):
    """Pure-JAX reference replicating the PyTorch forward (eval mode)."""
    word_emb = params["word_embedding"]
    cat_emb = params["category_embedding"]
    conv_w = params["conv_weight"]
    conv_b = params["conv_bias"]
    att_w = params["att_weight"]
    att_b = params["att_bias"]
    att_q = params["att_query"]

    B, T = title_ids.shape
    F = cat_emb.shape[1]
    W = window_size
    pad = (W - 1) // 2

    title_vec = word_emb[title_ids]                              # (B, T, D)
    cat_vec = cat_emb[category_ids]                              # (B, F)
    subcat_vec = cat_emb[subcategory_ids]                        # (B, F)

    tp = jnp.pad(title_vec, ((0, 0), (pad, pad), (0, 0)))
    convw = jnp.transpose(conv_w[:, 0, :, :], (1, 2, 0))         # (W, D, F)
    conv = jnp.zeros((B, T, F), jnp.float32) + conv_b[None, None, :]
    for w in range(W):
        conv += jnp.einsum("btd,df->btf", tp[:, w:w + T, :], convw[w])
    act = jnp.maximum(conv, 0.0)                                 # (B, T, F)

    temp = jnp.tanh(jnp.einsum("btf,qf->btq", act, att_w) + att_b[None, None, :])
    scores = jnp.einsum("btq,q->bt", temp, att_q)
    alpha = jax.nn.softmax(scores, axis=1)
    weighted = jnp.einsum("bt,btf->bf", alpha, act)
    return jnp.concatenate([cat_vec, subcat_vec, weighted], axis=1)


if __name__ == "__main__":
    # Small, self-consistent config (mirrors NewsEncoder.__init__ shapes).
    num_words = 100
    num_categories = 10
    word_embedding_dim = 128   # D
    num_filters = 128          # F
    query_vector_dim = 64      # Q (zero-padded to 128 lanes inside the wrapper)
    window_size = 3            # W (odd, >= 1)
    batch = 40                 # B -> BB=32, B_pad=64, grid=(2,)
    title_len = 16             # T -> 32 titles * 16 positions = 512 MXU rows/block

    key = jax.random.PRNGKey(0)
    keys = jax.random.split(key, 10)

    word_embedding = 0.1 * jax.random.normal(
        keys[0], (num_words, word_embedding_dim), jnp.float32)
    word_embedding = word_embedding.at[0].set(0.0)               # padding_idx=0
    category_embedding = 0.1 * jax.random.normal(
        keys[1], (num_categories, num_filters), jnp.float32)
    category_embedding = category_embedding.at[0].set(0.0)       # padding_idx=0
    conv_weight = 0.05 * jax.random.normal(
        keys[2], (num_filters, 1, window_size, word_embedding_dim), jnp.float32)
    conv_bias = 0.05 * jax.random.normal(keys[3], (num_filters,), jnp.float32)
    att_weight = 0.1 * jax.random.normal(
        keys[4], (query_vector_dim, num_filters), jnp.float32)
    att_bias = 0.1 * jax.random.normal(keys[5], (query_vector_dim,), jnp.float32)
    att_query = jax.random.uniform(
        keys[6], (query_vector_dim,), jnp.float32, -0.1, 0.1)

    params = dict(
        word_embedding=word_embedding,
        category_embedding=category_embedding,
        conv_weight=conv_weight,
        conv_bias=conv_bias,
        att_weight=att_weight,
        att_bias=att_bias,
        att_query=att_query,
    )

    title_ids = jax.random.randint(keys[7], (batch, title_len), 0, num_words)
    category_ids = jax.random.randint(keys[8], (batch,), 0, num_categories)
    subcategory_ids = jax.random.randint(keys[9], (batch,), 0, num_categories)

    ref = reference_forward(title_ids, category_ids, subcategory_ids, params,
                            window_size=window_size)

    # f32 matmul operands (approx-reciprocal softmax): tight-ish tolerance.
    fwd32 = jax.jit(functools.partial(news_encoder_forward,
                                      window_size=window_size,
                                      matmul_dtype=jnp.float32))
    out32 = jax.block_until_ready(
        fwd32(title_ids, category_ids, subcategory_ids, params))
    np.testing.assert_allclose(np.asarray(out32), np.asarray(ref),
                               rtol=5e-3, atol=5e-4)

    # bf16 matmul operands (f32 accumulation / softmax) — the default fast path.
    fwd16 = jax.jit(functools.partial(news_encoder_forward,
                                      window_size=window_size))
    out16 = jax.block_until_ready(
        fwd16(title_ids, category_ids, subcategory_ids, params))
    np.testing.assert_allclose(np.asarray(out16), np.asarray(ref),
                               rtol=2e-2, atol=2e-3)

    print("KERNEL_OK")
</pallas_src>

<mosaic_0001>
module attributes {stable_mosaic.version = 11 : i64} {
  func.func @kernel(%arg0: i32, %arg1: memref<32x18x128xf32, #tpu.memory_space<vmem>>, %arg2: memref<3x128x128xf32, #tpu.memory_space<vmem>>, %arg3: memref<1x128xf32, #tpu.memory_space<vmem>>, %arg4: memref<128x128xf32, #tpu.memory_space<vmem>>, %arg5: memref<1x128xf32, #tpu.memory_space<vmem>>, %arg6: memref<1x1x128xf32, #tpu.memory_space<vmem>>, %arg7: memref<32x128xf32, #tpu.memory_space<vmem>>, %arg8: memref<32x128xf32, #tpu.memory_space<vmem>>, %arg9: memref<32x384xf32, #tpu.memory_space<vmem>>) attributes {dimension_semantics = [#tpu.dimension_semantics<parallel>], iteration_bounds = array<i64: 2>, scalar_prefetch = 0 : i64, scratch_operands = 0 : i64, tpu.core_type = #tpu.core_type<tc>, window_params = [{transform_indices = @transform_0, window_bounds = array<i64: 32, 18, 128>}, {pipeline_mode = #tpu.pipeline_mode<synchronous>, transform_indices = @transform_1, window_bounds = array<i64: 3, 128, 128>}, {pipeline_mode = #tpu.pipeline_mode<synchronous>, transform_indices = @transform_2, window_bounds = array<i64: 1, 128>}, {pipeline_mode = #tpu.pipeline_mode<synchronous>, transform_indices = @transform_3, window_bounds = array<i64: 128, 128>}, {pipeline_mode = #tpu.pipeline_mode<synchronous>, transform_indices = @transform_4, window_bounds = array<i64: 1, 128>}, {pipeline_mode = #tpu.pipeline_mode<synchronous>, transform_indices = @transform_5, window_bounds = array<i64: 1, 1, 128>}, {transform_indices = @transform_6, window_bounds = array<i64: 32, 128>}, {transform_indices = @transform_7, window_bounds = array<i64: 32, 128>}, {transform_indices = @transform_8, window_bounds = array<i64: 32, 384>}]} {
    %c0 = arith.constant 0 : index
    %c0_0 = arith.constant 0 : index
    %0 = vector.load %arg3[%c0, %c0_0] : memref<1x128xf32, #tpu.memory_space<vmem>>, vector<1x128xf32>
    %c0_1 = arith.constant 0 : index
    %c0_2 = arith.constant 0 : index
    %c0_3 = arith.constant 0 : index
    %1 = vector.load %arg1[%c0_1, %c0_2, %c0_3] : memref<32x18x128xf32, #tpu.memory_space<vmem>>, vector<32x16x128xf32>
    %2 = vector.shape_cast %1 : vector<32x16x128xf32> to vector<512x128xf32>
    %c0_4 = arith.constant 0 : index
    %c0_5 = arith.constant 0 : index
    %c0_6 = arith.constant 0 : index
    %3 = vector.load %arg2[%c0_4, %c0_5, %c0_6] : memref<3x128x128xf32, #tpu.memory_space<vmem>>, vector<1x128x128xf32>
    %4 = vector.shape_cast %3 : vector<1x128x128xf32> to vector<128x128xf32>
    %cst = arith.constant dense<0.000000e+00> : vector<512x128xf32>
    %5 = tpu.matmul %2, %4, %cst {dimension_numbers = #tpu.dot_dimension_numbers<[1], [0], [0], [1], [0, 0, 1, 1], [], []>} : vector<512x128xf32>, vector<128x128xf32>, vector<512x128xf32> -> vector<512x128xf32>
    %6 = vector.broadcast %0 : vector<1x128xf32> to vector<512x128xf32>
    %7 = arith.addf %6, %5 : vector<512x128xf32>
    %c0_7 = arith.constant 0 : index
    %c1 = arith.constant 1 : index
    %c0_8 = arith.constant 0 : index
    %8 = vector.load %arg1[%c0_7, %c1, %c0_8] : memref<32x18x128xf32, #tpu.memory_space<vmem>>, vector<32x16x128xf32>
    %9 = vector.shape_cast %8 : vector<32x16x128xf32> to vector<512x128xf32>
    %c1_9 = arith.constant 1 : index
    %c0_10 = arith.constant 0 : index
    %c0_11 = arith.constant 0 : index
    %10 = vector.load %arg2[%c1_9, %c0_10, %c0_11] : memref<3x128x128xf32, #tpu.memory_space<vmem>>, vector<1x128x128xf32>
    %11 = vector.shape_cast %10 : vector<1x128x128xf32> to vector<128x128xf32>
    %cst_12 = arith.constant dense<0.000000e+00> : vector<512x128xf32>
    %12 = tpu.matmul %9, %11, %cst_12 {dimension_numbers = #tpu.dot_dimension_numbers<[1], [0], [0], [1], [0, 0, 1, 1], [], []>} : vector<512x128xf32>, vector<128x128xf32>, vector<512x128xf32> -> vector<512x128xf32>
    %13 = arith.addf %7, %12 : vector<512x128xf32>
    %c0_13 = arith.constant 0 : index
    %c2 = arith.constant 2 : index
    %c0_14 = arith.constant 0 : index
    %14 = vector.load %arg1[%c0_13, %c2, %c0_14] : memref<32x18x128xf32, #tpu.memory_space<vmem>>, vector<32x16x128xf32>
    %15 = vector.shape_cast %14 : vector<32x16x128xf32> to vector<512x128xf32>
    %c2_15 = arith.constant 2 : index
    %c0_16 = arith.constant 0 : index
    %c0_17 = arith.constant 0 : index
    %16 = vector.load %arg2[%c2_15, %c0_16, %c0_17] : memref<3x128x128xf32, #tpu.memory_space<vmem>>, vector<1x128x128xf32>
    %17 = vector.shape_cast %16 : vector<1x128x128xf32> to vector<128x128xf32>
    %cst_18 = arith.constant dense<0.000000e+00> : vector<512x128xf32>
    %18 = tpu.matmul %15, %17, %cst_18 {dimension_numbers = #tpu.dot_dimension_numbers<[1], [0], [0], [1], [0, 0, 1, 1], [], []>} : vector<512x128xf32>, vector<128x128xf32>, vector<512x128xf32> -> vector<512x128xf32>
    %19 = arith.addf %13, %18 : vector<512x128xf32>
    %cst_19 = arith.constant 0.000000e+00 : f32
    %20 = vector.broadcast %cst_19 : f32 to vector<512x128xf32>
    %21 = arith.maximumf %19, %20 : vector<512x128xf32>
    %c0_20 = arith.constant 0 : index
    %c0_21 = arith.constant 0 : index
    %22 = vector.load %arg4[%c0_20, %c0_21] : memref<128x128xf32, #tpu.memory_space<vmem>>, vector<128x128xf32>
    %cst_22 = arith.constant dense<0.000000e+00> : vector<512x128xf32>
    %23 = tpu.matmul %21, %22, %cst_22 {dimension_numbers = #tpu.dot_dimension_numbers<[1], [0], [0], [1], [0, 0, 1, 1], [], []>} : vector<512x128xf32>, vector<128x128xf32>, vector<512x128xf32> -> vector<512x128xf32>
    %c0_23 = arith.constant 0 : index
    %c0_24 = arith.constant 0 : index
    %24 = vector.load %arg5[%c0_23, %c0_24] : memref<1x128xf32, #tpu.memory_space<vmem>>, vector<1x128xf32>
    %25 = vector.broadcast %24 : vector<1x128xf32> to vector<512x128xf32>
    %26 = arith.addf %23, %25 : vector<512x128xf32>
    %27 = math.tanh %26 : vector<512x128xf32>
    %28 = vector.shape_cast %27 : vector<512x128xf32> to vector<32x16x128xf32>
    %c0_25 = arith.constant 0 : index
    %c0_26 = arith.constant 0 : index
    %c0_27 = arith.constant 0 : index
    %29 = vector.load %arg6[%c0_25, %c0_26, %c0_27] : memref<1x1x128xf32, #tpu.memory_space<vmem>>, vector<1x1x128xf32>
    %30 = vector.broadcast %29 : vector<1x1x128xf32> to vector<32x16x128xf32>
    %31 = arith.mulf %28, %30 : vector<32x16x128xf32>
    %cst_28 = arith.constant dense<0.000000e+00> : vector<32x16xf32>
    %32 = vector.multi_reduction <add>, %31, %cst_28 [2] : vector<32x16x128xf32> to vector<32x16xf32>
    %33 = vector.shape_cast %32 : vector<32x16xf32> to vector<32x16x1xf32>
    %cst_29 = arith.constant dense<0xFF800000> : vector<32x1xf32>
    %34 = vector.multi_reduction <maximumf>, %33, %cst_29 [1] : vector<32x16x1xf32> to vector<32x1xf32>
    %35 = vector.shape_cast %34 : vector<32x1xf32> to vector<32x1x1xf32>
    %36 = vector.broadcast %35 : vector<32x1x1xf32> to vector<32x16x1xf32>
    %37 = arith.subf %33, %36 : vector<32x16x1xf32>
    %38 = math.exp %37 : vector<32x16x1xf32>
    %cst_30 = arith.constant dense<0.000000e+00> : vector<32x1xf32>
    %39 = vector.multi_reduction <add>, %38, %cst_30 [1] : vector<32x16x1xf32> to vector<32x1xf32>
    %40 = vector.shape_cast %39 : vector<32x1xf32> to vector<32x1x1xf32>
    %41 = tpu.reciprocal %40 {approx = true} : vector<32x1x1xf32> -> vector<32x1x1xf32>
    %42 = vector.broadcast %41 : vector<32x1x1xf32> to vector<32x16x1xf32>
    %43 = arith.mulf %38, %42 : vector<32x16x1xf32>
    %44 = vector.shape_cast %21 : vector<512x128xf32> to vector<32x16x128xf32>
    %45 = vector.broadcast %43 : vector<32x16x1xf32> to vector<32x16x128xf32>
    %46 = arith.mulf %45, %44 : vector<32x16x128xf32>
    %cst_31 = arith.constant dense<0.000000e+00> : vector<32x128xf32>
    %47 = vector.multi_reduction <add>, %46, %cst_31 [1] : vector<32x16x128xf32> to vector<32x128xf32>
    %c0_32 = arith.constant 0 : index
    %c0_33 = arith.constant 0 : index
    %48 = vector.load %arg7[%c0_32, %c0_33] : memref<32x128xf32, #tpu.memory_space<vmem>>, vector<32x128xf32>
    %c0_34 = arith.constant 0 : index
    %c0_35 = arith.constant 0 : index
    %49 = vector.load %arg9[%c0_34, %c0_35] : memref<32x384xf32, #tpu.memory_space<vmem>>, vector<32x128xf32>
    tpu.vector_store %arg9[%c0_34, %c0_35], %48 {strides = array<i32>} : memref<32x384xf32, #tpu.memory_space<vmem>>, vector<32x128xf32>,
    %c0_36 = arith.constant 0 : index
    %c0_37 = arith.constant 0 : index
    %50 = vector.load %arg8[%c0_36, %c0_37] : memref<32x128xf32, #tpu.memory_space<vmem>>, vector<32x128xf32>
    %c0_38 = arith.constant 0 : index
    %c128 = arith.constant 128 : index
    %51 = vector.load %arg9[%c0_38, %c128] : memref<32x384xf32, #tpu.memory_space<vmem>>, vector<32x128xf32>
    tpu.vector_store %arg9[%c0_38, %c128], %50 {strides = array<i32>} : memref<32x384xf32, #tpu.memory_space<vmem>>, vector<32x128xf32>,
    %c0_39 = arith.constant 0 : index
    %c256 = arith.constant 256 : index
    %52 = vector.load %arg9[%c0_39, %c256] : memref<32x384xf32, #tpu.memory_space<vmem>>, vector<32x128xf32>
    tpu.vector_store %arg9[%c0_39, %c256], %47 {strides = array<i32>} : memref<32x384xf32, #tpu.memory_space<vmem>>, vector<32x128xf32>,
    return
  }
  func.func @transform_0(%arg0: i32) -> (i32, i32, i32) {
    %c0_i32 = arith.constant 0 : i32
    %c0_i32_0 = arith.constant 0 : i32
    %c0_i32_1 = arith.constant 0 : i32
    return %arg0, %c0_i32, %c0_i32_0 : i32, i32, i32
  }
  func.func @transform_1(%arg0: i32) -> (i32, i32, i32) {
    %c0_i32 = arith.constant 0 : i32
    %c0_i32_0 = arith.constant 0 : i32
    %c0_i32_1 = arith.constant 0 : i32
    %c0_i32_2 = arith.constant 0 : i32
    return %c0_i32, %c0_i32_0, %c0_i32_1 : i32, i32, i32
  }
  func.func @transform_2(%arg0: i32) -> (i32, i32) {
    %c0_i32 = arith.constant 0 : i32
    %c0_i32_0 = arith.constant 0 : i32
    %c0_i32_1 = arith.constant 0 : i32
    return %c0_i32, %c0_i32_0 : i32, i32
  }
  func.func @transform_3(%arg0: i32) -> (i32, i32) {
    %c0_i32 = arith.constant 0 : i32
    %c0_i32_0 = arith.constant 0 : i32
    %c0_i32_1 = arith.constant 0 : i32
    return %c0_i32, %c0_i32_0 : i32, i32
  }
  func.func @transform_4(%arg0: i32) -> (i32, i32) {
    %c0_i32 = arith.constant 0 : i32
    %c0_i32_0 = arith.constant 0 : i32
    %c0_i32_1 = arith.constant 0 : i32
    return %c0_i32, %c0_i32_0 : i32, i32
  }
  func.func @transform_5(%arg0: i32) -> (i32, i32, i32) {
    %c0_i32 = arith.constant 0 : i32
    %c0_i32_0 = arith.constant 0 : i32
    %c0_i32_1 = arith.constant 0 : i32
    %c0_i32_2 = arith.constant 0 : i32
    return %c0_i32, %c0_i32_0, %c0_i32_1 : i32, i32, i32
  }
  func.func @transform_6(%arg0: i32) -> (i32, i32) {
    %c0_i32 = arith.constant 0 : i32
    %c0_i32_0 = arith.constant 0 : i32
    return %arg0, %c0_i32 : i32, i32
  }
  func.func @transform_7(%arg0: i32) -> (i32, i32) {
    %c0_i32 = arith.constant 0 : i32
    %c0_i32_0 = arith.constant 0 : i32
    return %arg0, %c0_i32 : i32, i32
  }
  func.func @transform_8(%arg0: i32) -> (i32, i32) {
    %c0_i32 = arith.constant 0 : i32
    %c0_i32_0 = arith.constant 0 : i32
    return %arg0, %c0_i32 : i32, i32
  }
}

</mosaic_0001>

<bundles_post_ra>
// kernel: news_encoder_forward.1
= control target key start
LH: loop header
LB: loop body
LE: loop exit
PB: predicated region body
PF: predicated region fallthrough
CT: control target
= control target key end

     0   :  { %s3614_s27 = smov 0   ;;  %s5220_s0 = inlined_call_operand.vmem [shape: f32[64,18,128], index: 0, kind: input, shape index: {}]   ;;  %s5221_s1 = inlined_call_operand.vmem [shape: f32[3,128,128], index: 1, kind: input, shape index: {}]   ;;  %s5222_s2 = inlined_call_operand.vmem [shape: f32[1,128], index: 2, kind: input, shape index: {}]   ;;  %s5223_s3 = inlined_call_operand.vmem [shape: f32[128,128], index: 3, kind: input, shape index: {}]   ;;  %s5224_s4 = inlined_call_operand.vmem [shape: f32[1,128], index: 4, kind: input, shape index: {}]   ;;  %s5225_s5 = inlined_call_operand.vmem [shape: f32[1,1,128], index: 5, kind: input, shape index: {}]   ;;  %s5226_s6 = inlined_call_operand.vmem [shape: f32[64,128], index: 6, kind: input, shape index: {}]   ;;  %s5227_s7 = inlined_call_operand.vmem [shape: f32[64,128], index: 7, kind: input, shape index: {}]   ;;  %s5228_s8 = inlined_call_operand.vmem [shape: f32[64,384], index: 8, kind: output, shape index: {}]  }
   0x1 LB: > { %s3173_s28 = sadd.s32 4294967295, %s3567_s27   ;;  %p3177_p0 = scmp.ge.s32.totalorder %s3567_s27, 1  ;;  %s3567_s27 = sphi %s3614_s27, %s18_s27  }
   0x2   : > { %p286_p1 = scmp.lt.s32.totalorder %s3567_s27, 3 }
   0x4   : > { %p287_p2 = pnand %p3177_p0, %p286_p1 }
   0x6   : > { %290 = sbr.rel (%p287_p2) target bundleno = 1010 (0x3f2), region = 52 }
   0xb   : > { %v3217_v0 = vld [vmem:[%s5221_s1 + $0x178] sm:$0xff]  ;;  %v3216_v2 = vld [vmem:[%s5221_s1 + $0x170] sm:$0xff]  ;;  %v3215_v5 = vld [vmem:[%s5221_s1 + $0x168] sm:$0xff]  ;;  %s3178_s9 = sshll.u32 %s3173_s28, 5  ;;  %vm3048_vm0 = vcmask 1041409   ;;  %vm3050_vm1 = vcmask 1042434  }
   0xc   : > { %v438_v1 = vld [vmem:[%s5221_s1 + $0x78] sm:$0xff]  ;;  %1150 = vmatpush.msra.mxu2 %v3217_v0  ;;  %v437_v3 = vld [vmem:[%s5221_s1 + $0x70] sm:$0xff]  ;;  %v436_v6 = vld [vmem:[%s5221_s1 + $0x68] sm:$0xff]  ;;  %p333_p3 = scmp.lt.s32.totalorder %s3178_s9, 63  ;;  %vm3052_vm2 = vcmask 1043459   ;;  %vm3054_vm3 = vcmask 1044484  }
   0xd   : > { %439 = vmatpush.msra.mxu0 %v438_v1  ;;  %v3201_v4 = vld [vmem:[%s5221_s1 + $0xf8] sm:$0xff]  ;;  %v3200_v7 = vld [vmem:[%s5221_s1 + $0xf0] sm:$0xff]  ;;  %v3199_v8 = vld [vmem:[%s5221_s1 + $0xe8] sm:$0xff]  ;;  %vm3056_vm4 = vcmask 1045509   ;;  %vm3058_vm5 = vcmask 1046534   ;;  %vm3060_vm6 = vcmask 1047559  }
   0xe   : > { %796 = vmatpush.msra.mxu1 %v3201_v4  ;;  %1151 = vmatpush.msra.mxu2 %v3216_v2  ;;  %v3214_v9 = vld [vmem:[%s5221_s1 + $0x160] sm:$0xff]  ;;  %v3213_v12 = vld [vmem:[%s5221_s1 + $0x158] sm:$0xff]  ;;  %v3212_v15 = vld [vmem:[%s5221_s1 + $0x150] sm:$0xff]  ;;  %s5448_s9 = smov (!%p333_p3, %s3178_s9), 63 }
   0xf   : > { %440 = vmatpush.msra.mxu0 %v437_v3  ;;  %v435_v10 = vld [vmem:[%s5221_s1 + $0x60] sm:$0xff]  ;;  %v434_v13 = vld [vmem:[%s5221_s1 + $0x58] sm:$0xff]  ;;  %v433_v16 = vld [vmem:[%s5221_s1 + $0x50] sm:$0xff]  ;;  %s3220_s25 = smul.u32 24, %s5448_s9 }
  0x10   : > { %797 = vmatpush.msra.mxu1 %v3200_v7  ;;  %1152 = vmatpush.msra.mxu2 %v3215_v5  ;;  %v3198_v11 = vld [vmem:[%s5221_s1 + $0xe0] sm:$0xff]  ;;  %v3197_v14 = vld [vmem:[%s5221_s1 + $0xd8] sm:$0xff]  ;;  %v3196_v17 = vld [vmem:[%s5221_s1 + $0xd0] sm:$0xff] }
  0x11   : > { %441 = vmatpush.msra.mxu0 %v436_v6  ;;  %v3211_v18 = vld [vmem:[%s5221_s1 + $0x148] sm:$0xff]  ;;  %v3210_v21 = vld [vmem:[%s5221_s1 + $0x140] sm:$0xff]  ;;  %v3209_v24 = vld [vmem:[%s5221_s1 + $0x138] sm:$0xff]  ;;  %s3759_s20 = scalar_lea.vmem %s5220_s0, %s3220_s25 }
  0x12   : > { %798 = vmatpush.msra.mxu1 %v3199_v8  ;;  %1153 = vmatpush.msra.mxu2 %v3214_v9  ;;  %v432_v19 = vld [vmem:[%s5221_s1 + $0x48] sm:$0xff]  ;;  %v431_v22 = vld [vmem:[%s5221_s1 + $0x40] sm:$0xff]  ;;  %v430_v25 = vld [vmem:[%s5221_s1 + $0x38] sm:$0xff] }
  0x13   : > { %442 = vmatpush.msra.mxu0 %v435_v10  ;;  %v3195_v20 = vld [vmem:[%s5221_s1 + $0xc8] sm:$0xff]  ;;  %v3194_v23 = vld [vmem:[%s5221_s1 + $0xc0] sm:$0xff]  ;;  %v3193_v26 = vld [vmem:[%s5221_s1 + $0xb8] sm:$0xff] }
  0x14   : > { %799 = vmatpush.msra.mxu1 %v3198_v11  ;;  %1154 = vmatpush.msra.mxu2 %v3213_v12  ;;  %v3208_v27 = vld [vmem:[%s5221_s1 + $0x130] sm:$0xff]  ;;  %v3207_v30 = vld [vmem:[%s5221_s1 + $0x128] sm:$0xff]  ;;  %v3206_v33 = vld [vmem:[%s5221_s1 + $0x120] sm:$0xff] }
  0x15   : > { %443 = vmatpush.msra.mxu0 %v434_v13  ;;  %v429_v28 = vld [vmem:[%s5221_s1 + $0x30] sm:$0xff]  ;;  %v428_v31 = vld [vmem:[%s5221_s1 + $0x28] sm:$0xff]  ;;  %v427_v34 = vld [vmem:[%s5221_s1 + $0x20] sm:$0xff] }
  0x16   : > { %800 = vmatpush.msra.mxu1 %v3197_v14  ;;  %1155 = vmatpush.msra.mxu2 %v3212_v15  ;;  %v3192_v29 = vld [vmem:[%s5221_s1 + $0xb0] sm:$0xff]  ;;  %v3191_v32 = vld [vmem:[%s5221_s1 + $0xa8] sm:$0xff]  ;;  %v3190_v35 = vld [vmem:[%s5221_s1 + $0xa0] sm:$0xff] }
  0x17   : > { %444 = vmatpush.msra.mxu0 %v433_v16  ;;  %v3205_v36 = vld [vmem:[%s5221_s1 + $0x118] sm:$0xff]  ;;  %v3204_v39 = vld [vmem:[%s5221_s1 + $0x110] sm:$0xff]  ;;  %v3203_v42 = vld [vmem:[%s5221_s1 + $0x108] sm:$0xff] }
  0x18   : > { %801 = vmatpush.msra.mxu1 %v3196_v17  ;;  %1156 = vmatpush.msra.mxu2 %v3211_v18  ;;  %v426_v37 = vld [vmem:[%s5221_s1 + $0x18] sm:$0xff]  ;;  %v425_v40 = vld [vmem:[%s5221_s1 + $0x10] sm:$0xff]  ;;  %v424_v43 = vld [vmem:[%s5221_s1 + $0x8] sm:$0xff] }
  0x19   : > { %445 = vmatpush.msra.mxu0 %v432_v19  ;;  %v3189_v38 = vld [vmem:[%s5221_s1 + $0x98] sm:$0xff]  ;;  %v3188_v41 = vld [vmem:[%s5221_s1 + $0x90] sm:$0xff]  ;;  %v3187_v44 = vld [vmem:[%s5221_s1 + $0x88] sm:$0xff] }
  0x1a   : > { %802 = vmatpush.msra.mxu1 %v3195_v20  ;;  %1157 = vmatpush.msra.mxu2 %v3210_v21  ;;  %v3202_v45 = vld [vmem:[%s5221_s1 + $0x100] sm:$0xff]  ;;  %v1070_v51 = vld [vmem:[%s3759_s20 + $0xa] sm:$0xff]  ;;  %v361_v55 = vld [vmem:[%s3759_s20 + $0x18] sm:$0xff] }
  0x1b   : > { %446 = vmatpush.msra.mxu0 %v431_v22  ;;  %v423_v46 = vld [vmem:[%s5221_s1] sm:$0xff]  ;;  %v360_v52 = vld [vmem:[%s3759_s20 + $0x8] sm:$0xff]  ;;  %v1073_v60 = vld [vmem:[%s3759_s20 + $0x32] sm:$0xff] }
  0x1c   : > { %803 = vmatpush.msra.mxu1 %v3194_v23  ;;  %1158 = vmatpush.msra.mxu2 %v3209_v24  ;;  %v1069_v47 = vld [vmem:[%s3759_s20 + $0x2] sm:$0xff]  ;;  %v1071_v54 = vld [vmem:[%s3759_s20 + $0x1a] sm:$0xff]  ;;  %v363_v61 = vld [vmem:[%s3759_s20 + $0x30] sm:$0xff] }
  0x1d   : > { %447 = vmatpush.msra.mxu0 %v430_v25  ;;  %v359_v48 = vld [vmem:[%s3759_s20] sm:$0xff]  ;;  %v716_v53 = vld [vmem:[%s3759_s20 + $0x9] sm:$0xff]  ;;  %v719_v62 = vld [vmem:[%s3759_s20 + $0x31] sm:$0xff] }
  0x1e   : > { %804 = vmatpush.msra.mxu1 %v3193_v26  ;;  %1159 = vmatpush.msra.mxu2 %v3208_v27  ;;  %v3186_v49 = vld [vmem:[%s5221_s1 + $0x80] sm:$0xff]  ;;  %v364_v0 = vld [vmem:[%s3759_s20 + $0x38] sm:$0xff]  ;;  %v1075_v2 = vld [vmem:[%s3759_s20 + $0x4a] sm:$0xff] }
  0x1f   : > { %448 = vmatpush.msra.mxu0 %v429_v28  ;;  %v715_v50 = vld [vmem:[%s3759_s20 + $0x1] sm:$0xff]  ;;  %v717_v56 = vld [vmem:[%s3759_s20 + $0x19] sm:$0xff]  ;;  %v721_v4 = vld [vmem:[%s3759_s20 + $0x49] sm:$0xff] }
  0x20   : > { %805 = vmatpush.msra.mxu1 %v3192_v29  ;;  %1160 = vmatpush.msra.mxu2 %v3207_v30  ;;  %v1072_v57 = vld [vmem:[%s3759_s20 + $0x22] sm:$0xff]  ;;  %v1074_v63 = vld [vmem:[%s3759_s20 + $0x3a] sm:$0xff]  ;;  %v1076_v5 = vld [vmem:[%s3759_s20 + $0x52] sm:$0xff] }
  0x21   : > { %449 = vmatpush.msra.mxu0 %v428_v31  ;;  %v362_v58 = vld [vmem:[%s3759_s20 + $0x20] sm:$0xff]  ;;  %v365_v3 = vld [vmem:[%s3759_s20 + $0x48] sm:$0xff]  ;;  %v366_v6 = vld [vmem:[%s3759_s20 + $0x50] sm:$0xff] }
  0x22   : > { %806 = vmatpush.msra.mxu1 %v3191_v32  ;;  %1161 = vmatpush.msra.mxu2 %v3206_v33  ;;  %v718_v59 = vld [vmem:[%s3759_s20 + $0x21] sm:$0xff]  ;;  %v720_v1 = vld [vmem:[%s3759_s20 + $0x39] sm:$0xff]  ;;  %v722_v7 = vld [vmem:[%s3759_s20 + $0x51] sm:$0xff] }
  0x23   : > { %450 = vmatpush.msra.mxu0 %v427_v34  ;;  %v1077_v8 = vld [vmem:[%s3759_s20 + $0x62] sm:$0xff]  ;;  %v1078_v11 = vld [vmem:[%s3759_s20 + $0x6a] sm:$0xff]  ;;  %v1502_v14 = vld [vmem:[%s5223_s3 + $0x78] sm:$0xff] }
  0x24   : > { %807 = vmatpush.msra.mxu1 %v3190_v35  ;;  %1162 = vmatpush.msra.mxu2 %v3205_v36  ;;  %v367_v9 = vld [vmem:[%s3759_s20 + $0x60] sm:$0xff]  ;;  %v368_v12 = vld [vmem:[%s3759_s20 + $0x68] sm:$0xff]  ;;  %v1501_v15 = vld [vmem:[%s5223_s3 + $0x70] sm:$0xff] }
  0x25   : > { %451 = vmatpush.msra.mxu0 %v426_v37  ;;  %v723_v10 = vld [vmem:[%s3759_s20 + $0x61] sm:$0xff]  ;;  %v724_v13 = vld [vmem:[%s3759_s20 + $0x69] sm:$0xff]  ;;  %1507 = vmatpush.msra.mxu3 %v1502_v14  ;;  %v369_v19 = vld [vmem:[%s3759_s20 + $0x78] sm:$0xff] }
  0x26   : > { %808 = vmatpush.msra.mxu1 %v3189_v38  ;;  %1163 = vmatpush.msra.mxu2 %v3204_v39  ;;  %v1500_v16 = vld [vmem:[%s5223_s3 + $0x68] sm:$0xff]  ;;  %v1499_v17 = vld [vmem:[%s5223_s3 + $0x60] sm:$0xff]  ;;  %v1498_v21 = vld [vmem:[%s5223_s3 + $0x58] sm:$0xff] }
  0x27   : > { %452 = vmatpush.msra.mxu0 %v425_v40  ;;  %1508 = vmatpush.msra.mxu3 %v1501_v15  ;;  %v1079_v18 = vld [vmem:[%s3759_s20 + $0x7a] sm:$0xff]  ;;  %v1497_v22 = vld [vmem:[%s5223_s3 + $0x50] sm:$0xff]  ;;  %v1496_v23 = vld [vmem:[%s5223_s3 + $0x48] sm:$0xff] }
  0x28   : > { %809 = vmatpush.msra.mxu1 %v3188_v41  ;;  %1164 = vmatpush.msra.mxu2 %v3203_v42  ;;  %v725_v20 = vld [vmem:[%s3759_s20 + $0x79] sm:$0xff]  ;;  %v1080_v25 = vld [vmem:[%s3759_s20 + $0x82] sm:$0xff]  ;;  %v1493_v29 = vld [vmem:[%s5223_s3 + $0x30] sm:$0xff] }
  0x29   : > { %453 = vmatpush.msra.mxu0 %v424_v43  ;;  %1509 = vmatpush.msra.mxu3 %v1500_v16  ;;  %v1495_v24 = vld [vmem:[%s5223_s3 + $0x40] sm:$0xff]  ;;  %v1494_v28 = vld [vmem:[%s5223_s3 + $0x38] sm:$0xff]  ;;  %v1492_v30 = vld [vmem:[%s5223_s3 + $0x28] sm:$0xff] }
  0x2a   : > { %810 = vmatpush.msra.mxu1 %v3187_v44  ;;  %1165 = vmatpush.msra.mxu2 %v3202_v45  ;;  %v370_v26 = vld [vmem:[%s3759_s20 + $0x80] sm:$0xff]  ;;  %v1081_v31 = vld [vmem:[%s3759_s20 + $0x92] sm:$0xff]  ;;  %v1488_v37 = vld [vmem:[%s5223_s3 + $0x8] sm:$0xff] }
  0x2b   : > { %454 = vmatpush.msra.mxu0 %v423_v46  ;;  %1166 = vmatmul.f32.vlgmr.msra.gmra.mxu2 %v1069_v47  ;;  %v726_v27 = vld [vmem:[%s3759_s20 + $0x81] sm:$0xff]  ;;  %v371_v32 = vld [vmem:[%s3759_s20 + $0x90] sm:$0xff]  ;;  %v1490_v35 = vld [vmem:[%s5223_s3 + $0x18] sm:$0xff] }
  0x2c   : > { %455 = vmatmul.f32.vlgmr.msra.gmra.mxu0 %v359_v48  ;;  %811 = vmatpush.msra.mxu1 %v3186_v49  ;;  %v1491_v33 = vld [vmem:[%s5223_s3 + $0x20] sm:$0xff]  ;;  %v727_v34 = vld [vmem:[%s3759_s20 + $0x91] sm:$0xff]  ;;  %v373_v43 = vld [vmem:[%s3759_s20 + $0xa8] sm:$0xff] }
  0x2d   : > { %812 = vmatmul.f32.vlgmr.msra.gmra.mxu1 %v715_v50  ;;  %1510 = vmatpush.msra.mxu3 %v1499_v17  ;;  %v1489_v36 = vld [vmem:[%s5223_s3 + $0x10] sm:$0xff]  ;;  %v1082_v38 = vld [vmem:[%s3759_s20 + $0x9a] sm:$0xff]  ;;  %v1085_v50 = vld [vmem:[%s3759_s20 + $0xc2] sm:$0xff] }
  0x2e   : > { %v372_v39 = vld [vmem:[%s3759_s20 + $0x98] sm:$0xff]  ;;  %v1487_v40 = vld [vmem:[%s5223_s3] sm:$0xff]  ;;  %v1083_v42 = vld [vmem:[%s3759_s20 + $0xaa] sm:$0xff] }
  0x2f   : > { %1511 = vmatpush.msra.mxu3 %v1498_v21  ;;  %v728_v41 = vld [vmem:[%s3759_s20 + $0x99] sm:$0xff]  ;;  %v729_v44 = vld [vmem:[%s3759_s20 + $0xa9] sm:$0xff]  ;;  %v730_v47 = vld [vmem:[%s3759_s20 + $0xb1] sm:$0xff] }
  0x30   : > { %v1084_v45 = vld [vmem:[%s3759_s20 + $0xb2] sm:$0xff]  ;;  %v3872_v48 = vld [vmem:[%s5222_s2] ss:$0 sm:$0xff]  ;;  %v1088_v15 = vld [vmem:[%s3759_s20 + $0xe2] sm:$0xff] }
  0x31   : > { %1512 = vmatpush.msra.mxu3 %v1497_v22  ;;  %v374_v46 = vld [vmem:[%s3759_s20 + $0xb0] sm:$0xff] }
  0x33   : > { %1169 = vmatmul.f32.gmra.mxu2 %v1070_v51  ;;  %1513 = vmatpush.msra.mxu3 %v1496_v23  ;;  %v375_v51 = vld [vmem:[%s3759_s20 + $0xc0] sm:$0xff] }
  0x34   : > { %458 = vmatmul.f32.gmra.mxu0 %v360_v52 }
  0x35   : > { %815 = vmatmul.f32.gmra.mxu1 %v716_v53  ;;  %1514 = vmatpush.msra.mxu3 %v1495_v24 }
  0x37   : > { %1515 = vmatpush.msra.mxu3 %v1494_v28  ;;  %v379_v28 = vld [vmem:[%s3759_s20 + $0xf0] sm:$0xff] }
  0x39   : > { %1516 = vmatpush.msra.mxu3 %v1493_v29 }
  0x3b   : > { %1172 = vmatmul.f32.gmra.mxu2 %v1071_v54  ;;  %1517 = vmatpush.msra.mxu3 %v1492_v30  ;;  %v731_v54 = vld [vmem:[%s3759_s20 + $0xc1] sm:$0xff]  ;;  %v735_v30 = vld [vmem:[%s3759_s20 + $0xf1] sm:$0xff] }
  0x3c   : > { %461 = vmatmul.f32.gmra.mxu0 %v361_v55 }
  0x3d   : > { %818 = vmatmul.f32.gmra.mxu1 %v717_v56  ;;  %1518 = vmatpush.msra.mxu3 %v1491_v33 }
  0x3f   : > { %1519 = vmatpush.msra.mxu3 %v1490_v35  ;;  %v1090_v35 = vld [vmem:[%s3759_s20 + $0xfa] sm:$0xff] }
  0x41   : > { %1520 = vmatpush.msra.mxu3 %v1489_v36 }
  0x43   : > { %1175 = vmatmul.f32.gmra.mxu2 %v1072_v57  ;;  %1521 = vmatpush.msra.mxu3 %v1488_v37 }
  0x44   : > { %464 = vmatmul.f32.gmra.mxu0 %v362_v58 }
  0x45   : > { %821 = vmatmul.f32.gmra.mxu1 %v718_v59  ;;  %1522 = vmatpush.msra.mxu3 %v1487_v40  ;;  %v1086_v59 = vld [vmem:[%s3759_s20 + $0xca] sm:$0xff]  ;;  %v736_v40 = vld [vmem:[%s3759_s20 + $0xf9] sm:$0xff] }
  0x4b   : > { %1178 = vmatmul.f32.gmra.mxu2 %v1073_v60 }
  0x4c   : > { %467 = vmatmul.f32.gmra.mxu0 %v363_v61 }
  0x4d   : > { %824 = vmatmul.f32.gmra.mxu1 %v719_v62  ;;  %v376_v62 = vld [vmem:[%s3759_s20 + $0xc8] sm:$0xff] }
  0x53   : > { %1181 = vmatmul.f32.gmra.mxu2 %v1074_v63 }
  0x54   : > { %470 = vmatmul.f32.gmra.mxu0 %v364_v0  ;;  %v732_v0 = vld [vmem:[%s3759_s20 + $0xc9] sm:$0xff] }
  0x55   : > { %827 = vmatmul.f32.gmra.mxu1 %v720_v1 }
  0x5b   : > { %1184 = vmatmul.f32.gmra.mxu2 %v1075_v2 }
  0x5c   : > { %473 = vmatmul.f32.gmra.mxu0 %v365_v3 }
  0x5d   : > { %830 = vmatmul.f32.gmra.mxu1 %v721_v4 }
  0x63   : > { %1187 = vmatmul.f32.gmra.mxu2 %v1076_v5  ;;  %v1087_v5 = vld [vmem:[%s3759_s20 + $0xda] sm:$0xff] }
  0x64   : > { %476 = vmatmul.f32.gmra.mxu0 %v366_v6 }
  0x65   : > { %833 = vmatmul.f32.gmra.mxu1 %v722_v7 }
  0x6b   : > { %1190 = vmatmul.f32.gmra.mxu2 %v1077_v8  ;;  %v377_v8 = vld [vmem:[%s3759_s20 + $0xd8] sm:$0xff] }
  0x6c   : > { %479 = vmatmul.f32.gmra.mxu0 %v367_v9 }
  0x6d   : > { %836 = vmatmul.f32.gmra.mxu1 %v723_v10  ;;  %v733_v10 = vld [vmem:[%s3759_s20 + $0xd9] sm:$0xff] }
  0x73   : > { %1193 = vmatmul.f32.gmra.mxu2 %v1078_v11 }
  0x74   : > { %482 = vmatmul.f32.gmra.mxu0 %v368_v12 }
  0x75   : > { %839 = vmatmul.f32.gmra.mxu1 %v724_v13 }
  0x7b   : > { %1196 = vmatmul.f32.gmra.mxu2 %v1079_v18  ;;  %v378_v18 = vld [vmem:[%s3759_s20 + $0xe0] sm:$0xff] }
  0x7c   : > { %485 = vmatmul.f32.gmra.mxu0 %v369_v19 }
  0x7d   : > { %842 = vmatmul.f32.gmra.mxu1 %v725_v20  ;;  %v734_v20 = vld [vmem:[%s3759_s20 + $0xe1] sm:$0xff] }
  0x83   : > { %1199 = vmatmul.f32.gmra.mxu2 %v1080_v25  ;;  %v1089_v25 = vld [vmem:[%s3759_s20 + $0xf2] sm:$0xff] }
  0x84   : > { %488 = vmatmul.f32.gmra.mxu0 %v370_v26 }
  0x85   : > { %845 = vmatmul.f32.gmra.mxu1 %v726_v27 }
  0x8b   : > { %1202 = vmatmul.f32.gmra.mxu2 %v1081_v31 }
  0x8c   : > { %491 = vmatmul.f32.gmra.mxu0 %v371_v32 }
  0x8d   : > { %848 = vmatmul.f32.gmra.mxu1 %v727_v34 }
  0x93   : > { %1205 = vmatmul.f32.gmra.mxu2 %v1082_v38  ;;  %v380_v38 = vld [vmem:[%s3759_s20 + $0xf8] sm:$0xff] }
  0x94   : > { %494 = vmatmul.f32.gmra.mxu0 %v372_v39 }
  0x95   : > { %851 = vmatmul.f32.gmra.mxu1 %v728_v41 }
  0x9b   : > { %1208 = vmatmul.f32.gmra.mxu2 %v1083_v42 }
  0x9c   : > { %497 = vmatmul.f32.gmra.mxu0 %v373_v43 }
  0x9d   : > { %854 = vmatmul.f32.gmra.mxu1 %v729_v44 }
  0xa3   : > { %1211 = vmatmul.f32.gmra.mxu2 %v1084_v45  ;;  %v1091_v45 = vld [vmem:[%s3759_s20 + $0x10a] sm:$0xff] }
  0xa4   : > { %500 = vmatmul.f32.gmra.mxu0 %v374_v46 }
  0xa5   : > { %857 = vmatmul.f32.gmra.mxu1 %v730_v47 }
  0xa9   : > { %v456_v49 = vpop.f32.mrf.mxu0 }
  0xaa   : > { %v651_v52 = vadd.f32 %v3872_v48, %v456_v49  ;;  %v813_v53 = vpop.f32.mrf.mxu1  ;;  %v381_v49 = vld [vmem:[%s3759_s20 + $0x108] sm:$0xff] }
  0xab   : > { %1214 = vmatmul.f32.gmra.mxu2 %v1085_v50 }
  0xac   : > { %v1005_v55 = vadd.f32 %v813_v53, %v651_v52  ;;  %503 = vmatmul.f32.gmra.mxu0 %v375_v51  ;;  %v737_v51 = vld [vmem:[%s3759_s20 + $0x109] sm:$0xff] }
  0xad   : > { %860 = vmatmul.f32.gmra.mxu1 %v731_v54 }
  0xae   : > { %v1167_v56 = vpop.f32.mrf.mxu2 }
  0xaf   : > { %v3878_v57 = vadd.f32 %v1167_v56, %v1005_v55  ;;  %v1092_v56 = vld [vmem:[%s3759_s20 + $0x112] sm:$0xff] }
  0xb1   : > { %v459_v58 = vpop.f32.mrf.mxu0  ;;  %v5265_v61 = vmax.f32 %v3878_v57, 0.0 }
  0xb2   : > { %v652_v60 = vadd.f32 %v3872_v48, %v459_v58  ;;  %v816_v63 = vpop.f32.mrf.mxu1 }
  0xb3   : > { %1217 = vmatmul.f32.gmra.mxu2 %v1086_v59  ;;  %1523 = vmatmul.f32.vlgmr.msra.gmra.mxu3 %v5265_v61 }
  0xb4   : > { %v1006_v1 = vadd.f32 %v816_v63, %v652_v60  ;;  %506 = vmatmul.f32.gmra.mxu0 %v376_v62  ;;  %v382_v60 = vld [vmem:[%s3759_s20 + $0x110] sm:$0xff] }
  0xb5   : > { %863 = vmatmul.f32.gmra.mxu1 %v732_v0  ;;  %v738_v63 = vld [vmem:[%s3759_s20 + $0x111] sm:$0xff] }
  0xb6   : > { %v1170_v2 = vpop.f32.mrf.mxu2 }
  0xb7   : > { %v3887_v3 = vadd.f32 %v1170_v2, %v1006_v1 }
  0xb9   : > { %v462_v4 = vpop.f32.mrf.mxu0  ;;  %v5264_v7 = vmax.f32 %v3887_v3, 0.0 }
  0xba   : > { %v653_v6 = vadd.f32 %v3872_v48, %v462_v4  ;;  %v819_v9 = vpop.f32.mrf.mxu1 }
  0xbb   : > { %1220 = vmatmul.f32.gmra.mxu2 %v1087_v5  ;;  %1526 = vmatmul.f32.gmra.mxu3 %v5264_v7  ;;  %v1093_v5 = vld [vmem:[%s3759_s20 + $0x122] sm:$0xff] }
  0xbc   : > { %v1007_v11 = vadd.f32 %v819_v9, %v653_v6  ;;  %509 = vmatmul.f32.gmra.mxu0 %v377_v8  ;;  %v383_v9 = vld [vmem:[%s3759_s20 + $0x120] sm:$0xff] }
  0xbd   : > { %866 = vmatmul.f32.gmra.mxu1 %v733_v10 }
  0xbe   : > { %v1173_v12 = vpop.f32.mrf.mxu2 }
  0xbf   : > { %v3896_v13 = vadd.f32 %v1173_v12, %v1007_v11  ;;  %v739_v11 = vld [vmem:[%s3759_s20 + $0x121] sm:$0xff] }
  0xc1   : > { %v465_v14 = vpop.f32.mrf.mxu0  ;;  %v5267_v17 = vmax.f32 %v3896_v13, 0.0 }
  0xc2   : > { %v654_v16 = vadd.f32 %v3872_v48, %v465_v14  ;;  %v822_v19 = vpop.f32.mrf.mxu1 }
  0xc3   : > { %1223 = vmatmul.f32.gmra.mxu2 %v1088_v15  ;;  %1529 = vmatmul.f32.gmra.mxu3 %v5267_v17 }
  0xc4   : > { %v1008_v21 = vadd.f32 %v822_v19, %v654_v16  ;;  %512 = vmatmul.f32.gmra.mxu0 %v378_v18  ;;  %v1094_v18 = vld [vmem:[%s3759_s20 + $0x12a] sm:$0xff] }
  0xc5   : > { %869 = vmatmul.f32.gmra.mxu1 %v734_v20 }
  0xc6   : > { %v1176_v22 = vpop.f32.mrf.mxu2 }
  0xc7   : > { %v3905_v23 = vadd.f32 %v1176_v22, %v1008_v21  ;;  %v384_v21 = vld [vmem:[%s3759_s20 + $0x128] sm:$0xff] }
  0xc9   : > { %v468_v24 = vpop.f32.mrf.mxu0  ;;  %v5266_v27 = vmax.f32 %v3905_v23, 0.0 }
  0xca   : > { %v655_v26 = vadd.f32 %v3872_v48, %v468_v24  ;;  %v825_v29 = vpop.f32.mrf.mxu1  ;;  %v740_v24 = vld [vmem:[%s3759_s20 + $0x129] sm:$0xff] }
  0xcb   : > { %1226 = vmatmul.f32.gmra.mxu2 %v1089_v25  ;;  %1532 = vmatmul.f32.gmra.mxu3 %v5266_v27 }
  0xcc   : > { %v1009_v31 = vadd.f32 %v825_v29, %v655_v26  ;;  %515 = vmatmul.f32.gmra.mxu0 %v379_v28 }
  0xcd   : > { %872 = vmatmul.f32.gmra.mxu1 %v735_v30  ;;  %v1095_v30 = vld [vmem:[%s3759_s20 + $0x13a] sm:$0xff] }
  0xce   : > { %v1179_v32 = vpop.f32.mrf.mxu2 }
  0xcf   : > { %v3914_v33 = vadd.f32 %v1179_v32, %v1009_v31 }
  0xd1   : > { %v471_v34 = vpop.f32.mrf.mxu0  ;;  %v5263_v37 = vmax.f32 %v3914_v33, 0.0 }
  0xd2   : > { %v656_v36 = vadd.f32 %v3872_v48, %v471_v34  ;;  %v828_v39 = vpop.f32.mrf.mxu1  ;;  %v385_v34 = vld [vmem:[%s3759_s20 + $0x138] sm:$0xff] }
  0xd3   : > { %1229 = vmatmul.f32.gmra.mxu2 %v1090_v35  ;;  %1535 = vmatmul.f32.gmra.mxu3 %v5263_v37 }
  0xd4   : > { %v1010_v41 = vadd.f32 %v828_v39, %v656_v36  ;;  %518 = vmatmul.f32.gmra.mxu0 %v380_v38  ;;  %v741_v36 = vld [vmem:[%s3759_s20 + $0x139] sm:$0xff] }
  0xd5   : > { %875 = vmatmul.f32.gmra.mxu1 %v736_v40 }
  0xd6   : > { %v1182_v42 = vpop.f32.mrf.mxu2 }
  0xd7   : > { %v3923_v43 = vadd.f32 %v1182_v42, %v1010_v41  ;;  %v1096_v42 = vld [vmem:[%s3759_s20 + $0x142] sm:$0xff] }
  0xd9   : > { %v474_v44 = vpop.f32.mrf.mxu0  ;;  %v5261_v47 = vmax.f32 %v3923_v43, 0.0 }
  0xda   : > { %v657_v46 = vadd.f32 %v3872_v48, %v474_v44  ;;  %v831_v50 = vpop.f32.mrf.mxu1 }
  0xdb   : > { %1232 = vmatmul.f32.gmra.mxu2 %v1091_v45  ;;  %1538 = vmatmul.f32.gmra.mxu3 %v5261_v47 }
  0xdc   : > { %v1011_v52 = vadd.f32 %v831_v50, %v657_v46  ;;  %521 = vmatmul.f32.gmra.mxu0 %v381_v49  ;;  %v386_v46 = vld [vmem:[%s3759_s20 + $0x140] sm:$0xff] }
  0xdd   : > { %878 = vmatmul.f32.gmra.mxu1 %v737_v51  ;;  %v742_v50 = vld [vmem:[%s3759_s20 + $0x141] sm:$0xff] }
  0xde   : > { %v1185_v53 = vpop.f32.mrf.mxu2 }
  0xdf   : > { %v3932_v54 = vadd.f32 %v1185_v53, %v1011_v52 }
  0xe1   : > { %v477_v55 = vpop.f32.mrf.mxu0  ;;  %v5259_v59 = vmax.f32 %v3932_v54, 0.0 }
  0xe2   : > { %v658_v58 = vadd.f32 %v3872_v48, %v477_v55  ;;  %v834_v62 = vpop.f32.mrf.mxu1 }
  0xe3   : > { %1235 = vmatmul.f32.gmra.mxu2 %v1092_v56  ;;  %1541 = vmatmul.f32.gmra.mxu3 %v5259_v59  ;;  %v1097_v56 = vld [vmem:[%s3759_s20 + $0x152] sm:$0xff] }
  0xe4   : > { %v1012_v0 = vadd.f32 %v834_v62, %v658_v58  ;;  %524 = vmatmul.f32.gmra.mxu0 %v382_v60  ;;  %v387_v62 = vld [vmem:[%s3759_s20 + $0x150] sm:$0xff] }
  0xe5   : > { %881 = vmatmul.f32.gmra.mxu1 %v738_v63 }
  0xe6   : > { %v1188_v1 = vpop.f32.mrf.mxu2 }
  0xe7   : > { %v3941_v2 = vadd.f32 %v1188_v1, %v1012_v0  ;;  %v743_v0 = vld [vmem:[%s3759_s20 + $0x151] sm:$0xff] }
  0xe9   : > { %v480_v4 = vpop.f32.mrf.mxu0  ;;  %v5258_v8 = vmax.f32 %v3941_v2, 0.0 }
  0xea   : > { %v659_v6 = vadd.f32 %v3872_v48, %v480_v4  ;;  %v837_v10 = vpop.f32.mrf.mxu1 }
  0xeb   : > { %1238 = vmatmul.f32.gmra.mxu2 %v1093_v5  ;;  %1544 = vmatmul.f32.gmra.mxu3 %v5258_v8 }
  0xec   : > { %v1013_v12 = vadd.f32 %v837_v10, %v659_v6  ;;  %527 = vmatmul.f32.gmra.mxu0 %v383_v9  ;;  %v1098_v9 = vld [vmem:[%s3759_s20 + $0x15a] sm:$0xff] }
  0xed   : > { %884 = vmatmul.f32.gmra.mxu1 %v739_v11 }
  0xee   : > { %v1191_v14 = vpop.f32.mrf.mxu2 }
  0xef   : > { %v3950_v15 = vadd.f32 %v1191_v14, %v1013_v12  ;;  %v388_v12 = vld [vmem:[%s3759_s20 + $0x158] sm:$0xff] }
  0xf1   : > { %v483_v16 = vpop.f32.mrf.mxu0  ;;  %v5257_v20 = vmax.f32 %v3950_v15, 0.0 }
  0xf2   : > { %v660_v19 = vadd.f32 %v3872_v48, %v483_v16  ;;  %v840_v22 = vpop.f32.mrf.mxu1  ;;  %v744_v16 = vld [vmem:[%s3759_s20 + $0x159] sm:$0xff] }
  0xf3   : > { %1241 = vmatmul.f32.gmra.mxu2 %v1094_v18  ;;  %1547 = vmatmul.f32.gmra.mxu3 %v5257_v20 }
  0xf4   : > { %v1014_v25 = vadd.f32 %v840_v22, %v660_v19  ;;  %530 = vmatmul.f32.gmra.mxu0 %v384_v21 }
  0xf5   : > { %887 = vmatmul.f32.gmra.mxu1 %v740_v24  ;;  %v1099_v24 = vld [vmem:[%s3759_s20 + $0x16a] sm:$0xff] }
  0xf6   : > { %v1194_v26 = vpop.f32.mrf.mxu2 }
  0xf7   : > { %v3959_v28 = vadd.f32 %v1194_v26, %v1014_v25 }
  0xf9   : > { %v486_v29 = vpop.f32.mrf.mxu0  ;;  %v5254_v32 = vmax.f32 %v3959_v28, 0.0 }
  0xfa   : > { %v661_v31 = vadd.f32 %v3872_v48, %v486_v29  ;;  %v843_v35 = vpop.f32.mrf.mxu1  ;;  %v389_v29 = vld [vmem:[%s3759_s20 + $0x168] sm:$0xff] }
  0xfb   : > { %1244 = vmatmul.f32.gmra.mxu2 %v1095_v30  ;;  %1550 = vmatmul.f32.gmra.mxu3 %v5254_v32  ;;  %v412_v32 = vld [vmem:[%s3759_s20 + $0x278] sm:$0xff] }
  0xfc   : > { %v1015_v38 = vadd.f32 %v843_v35, %v661_v31  ;;  %533 = vmatmul.f32.gmra.mxu0 %v385_v34  ;;  %v745_v31 = vld [vmem:[%s3759_s20 + $0x169] sm:$0xff] }
  0xfd   : > { %890 = vmatmul.f32.gmra.mxu1 %v741_v36 }
  0xfe   : > { %v1197_v39 = vpop.f32.mrf.mxu2 }
  0xff   : > { %v3968_v40 = vadd.f32 %v1197_v39, %v1015_v38  ;;  %v1100_v39 = vld [vmem:[%s3759_s20 + $0x172] sm:$0xff] }
 0x101   : > { %v489_v41 = vpop.f32.mrf.mxu0  ;;  %v5252_v45 = vmax.f32 %v3968_v40, 0.0 }
 0x102   : > { %v662_v44 = vadd.f32 %v3872_v48, %v489_v41  ;;  %v846_v49 = vpop.f32.mrf.mxu1 }
 0x103   : > { %1247 = vmatmul.f32.gmra.mxu2 %v1096_v42  ;;  %1553 = vmatmul.f32.gmra.mxu3 %v5252_v45  ;;  %v411_v45 = vld [vmem:[%s3759_s20 + $0x270] sm:$0xff] }
 0x104   : > { %v1016_v51 = vadd.f32 %v846_v49, %v662_v44  ;;  %536 = vmatmul.f32.gmra.mxu0 %v386_v46  ;;  %v390_v44 = vld [vmem:[%s3759_s20 + $0x170] sm:$0xff] }
 0x105   : > { %893 = vmatmul.f32.gmra.mxu1 %v742_v50  ;;  %v746_v49 = vld [vmem:[%s3759_s20 + $0x171] sm:$0xff] }
 0x106   : > { %v1200_v52 = vpop.f32.mrf.mxu2 }
 0x107   : > { %v3977_v53 = vadd.f32 %v1200_v52, %v1016_v51 }
 0x109   : > { %v492_v55 = vpop.f32.mrf.mxu0  ;;  %v5250_v60 = vmax.f32 %v3977_v53, 0.0 }
 0x10a   : > { %v663_v58 = vadd.f32 %v3872_v48, %v492_v55  ;;  %v849_v63 = vpop.f32.mrf.mxu1 }
 0x10b   : > { %1250 = vmatmul.f32.gmra.mxu2 %v1097_v56  ;;  %1556 = vmatmul.f32.gmra.mxu3 %v5250_v60  ;;  %v1101_v56 = vld [vmem:[%s3759_s20 + $0x182] sm:$0xff] }
 0x10c   : > { %v1017_v1 = vadd.f32 %v849_v63, %v663_v58  ;;  %539 = vmatmul.f32.gmra.mxu0 %v387_v62  ;;  %v391_v63 = vld [vmem:[%s3759_s20 + $0x180] sm:$0xff] }
 0x10d   : > { %896 = vmatmul.f32.gmra.mxu1 %v743_v0  ;;  %v410_v60 = vld [vmem:[%s3759_s20 + $0x260] sm:$0xff] }
 0x10e   : > { %v1203_v4 = vpop.f32.mrf.mxu2 }
 0x10f   : > { %v3986_v5 = vadd.f32 %v1203_v4, %v1017_v1  ;;  %v747_v1 = vld [vmem:[%s3759_s20 + $0x181] sm:$0xff] }
 0x111   : > { %v495_v6 = vpop.f32.mrf.mxu0  ;;  %v5248_v11 = vmax.f32 %v3986_v5, 0.0 }
 0x112   : > { %v664_v10 = vadd.f32 %v3872_v48, %v495_v6  ;;  %v852_v14 = vpop.f32.mrf.mxu1 }
 0x113   : > { %1253 = vmatmul.f32.gmra.mxu2 %v1098_v9  ;;  %1559 = vmatmul.f32.gmra.mxu3 %v5248_v11  ;;  %v409_v11 = vld [vmem:[%s3759_s20 + $0x258] sm:$0xff] }
 0x114   : > { %v1018_v18 = vadd.f32 %v852_v14, %v664_v10  ;;  %542 = vmatmul.f32.gmra.mxu0 %v388_v12  ;;  %v1102_v10 = vld [vmem:[%s3759_s20 + $0x18a] sm:$0xff] }
 0x115   : > { %899 = vmatmul.f32.gmra.mxu1 %v744_v16  ;;  %v392_v16 = vld [vmem:[%s3759_s20 + $0x188] sm:$0xff] }
 0x116   : > { %v1206_v19 = vpop.f32.mrf.mxu2 }
 0x117   : > { %v3995_v21 = vadd.f32 %v1206_v19, %v1018_v18 }
 0x119   : > { %v498_v22 = vpop.f32.mrf.mxu0  ;;  %v5246_v26 = vmax.f32 %v3995_v21, 0.0 }
 0x11a   : > { %v665_v25 = vadd.f32 %v3872_v48, %v498_v22  ;;  %v855_v30 = vpop.f32.mrf.mxu1  ;;  %v748_v22 = vld [vmem:[%s3759_s20 + $0x189] sm:$0xff] }
 0x11b   : > { %1256 = vmatmul.f32.gmra.mxu2 %v1099_v24  ;;  %1562 = vmatmul.f32.gmra.mxu3 %v5246_v26  ;;  %v4034_v24 = vld [vmem:[%s5224_s4] ss:$0 sm:$0xff]  ;;  %v408_v26 = vld [vmem:[%s3759_s20 + $0x248] sm:$0xff] }
 0x11c   : > { %v1019_v34 = vadd.f32 %v855_v30, %v665_v25  ;;  %545 = vmatmul.f32.gmra.mxu0 %v389_v29 }
 0x11d   : > { %902 = vmatmul.f32.gmra.mxu1 %v745_v31 }
 0x11e   : > { %v1209_v35 = vpop.f32.mrf.mxu2 }
 0x11f   : > { %v4004_v36 = vadd.f32 %v1209_v35, %v1019_v34  ;;  %v1103_v35 = vld [vmem:[%s3759_s20 + $0x19a] sm:$0xff] }
 0x121   : > { %v501_v38 = vpop.f32.mrf.mxu0  ;;  %v5244_v42 = vmax.f32 %v4004_v36, 0.0 }
 0x122   : > { %v666_v41 = vadd.f32 %v3872_v48, %v501_v38  ;;  %v858_v46 = vpop.f32.mrf.mxu1 }
 0x123   : > { %1259 = vmatmul.f32.gmra.mxu2 %v1100_v39  ;;  %1565 = vmatmul.f32.gmra.mxu3 %v5244_v42  ;;  %v407_v42 = vld [vmem:[%s3759_s20 + $0x240] sm:$0xff] }
 0x124   : > { %v1020_v50 = vadd.f32 %v858_v46, %v666_v41  ;;  %548 = vmatmul.f32.gmra.mxu0 %v390_v44  ;;  %v393_v41 = vld [vmem:[%s3759_s20 + $0x198] sm:$0xff] }
 0x125   : > { %905 = vmatmul.f32.gmra.mxu1 %v746_v49  ;;  %v749_v49 = vld [vmem:[%s3759_s20 + $0x199] sm:$0xff] }
 0x126   : > { %v1212_v51 = vpop.f32.mrf.mxu2 }
 0x127   : > { %v4013_v52 = vadd.f32 %v1212_v51, %v1020_v50  ;;  %v4049_v51 = vld [vmem:[%s5225_s5] ss:$0 sm:$0xff] }
 0x129   : > { %v504_v55 = vpop.f32.mrf.mxu0  ;;  %v5243_v62 = vmax.f32 %v4013_v52, 0.0 }
 0x12a   : > { %v667_v58 = vadd.f32 %v3872_v48, %v504_v55  ;;  %v861_v0 = vpop.f32.mrf.mxu1 }
 0x12b   : > { %1262 = vmatmul.f32.gmra.mxu2 %v1101_v56  ;;  %1568 = vmatmul.f32.gmra.mxu3 %v5243_v62 }
 0x12c   : > { %v1021_v4 = vadd.f32 %v861_v0, %v667_v58  ;;  %551 = vmatmul.f32.gmra.mxu0 %v391_v63 }
 0x12d   : > { %908 = vmatmul.f32.gmra.mxu1 %v747_v1 }
 0x12e   : > { %v1215_v6 = vpop.f32.mrf.mxu2 }
 0x12f   : > { %v4022_v9 = vadd.f32 %v1215_v6, %v1021_v4  ;;  %v1104_v4 = vld [vmem:[%s3759_s20 + $0x1a2] sm:$0xff] }
 0x131   : > { %v507_v12 = vpop.f32.mrf.mxu0  ;;  %v5236_v14 = vmax.f32 %v4022_v9, 0.0 }
 0x132   : > { %v668_v18 = vadd.f32 %v3872_v48, %v507_v12  ;;  %v864_v19 = vpop.f32.mrf.mxu1  ;;  %v394_v12 = vld [vmem:[%s3759_s20 + $0x1a0] sm:$0xff] }
 0x133   : > { %1265 = vmatmul.f32.gmra.mxu2 %v1102_v10  ;;  %1571 = vmatmul.f32.gmra.mxu3 %v5236_v14  ;;  %v403_v14 = vld [vmem:[%s3759_s20 + $0x210] sm:$0xff] }
 0x134   : > { %v1022_v25 = vadd.f32 %v864_v19, %v668_v18  ;;  %554 = vmatmul.f32.gmra.mxu0 %v392_v16  ;;  %v750_v19 = vld [vmem:[%s3759_s20 + $0x1a1] sm:$0xff] }
 0x135   : > { %911 = vmatmul.f32.gmra.mxu1 %v748_v22 }
 0x136   : > { %v1218_v29 = vpop.f32.mrf.mxu2  ;;  %v1524_v30 = vpop.f32.mrf.mxu3 }
 0x137   : > { %v4036_v31 = vadd.f32 %v1218_v29, %v1022_v25  ;;  %v1525_v34 = vadd.f32 %v4034_v24, %v1524_v30 }
 0x139   : > { %5322 = vst [vmem:[#allocation2_spill] sm:$0xff] %v4036_v31  ;;  %3233 = vtanh.f32 %v1525_v34  ;;  %v510_v38 = vpop.f32.mrf.mxu0  ;;  %v5230_v39 = vmax.f32 %v4036_v31, 0.0 }
 0x13a   : > { %v669_v44 = vadd.f32 %v3872_v48, %v510_v38  ;;  %v867_v46 = vpop.f32.mrf.mxu1 }
 0x13b   : > { %1268 = vmatmul.f32.gmra.mxu2 %v1103_v35  ;;  %1574 = vmatmul.f32.gmra.mxu3 %v5230_v39  ;;  %v400_v39 = vld [vmem:[%s3759_s20 + $0x1e8] sm:$0xff] }
 0x13c   : > { %v1023_v50 = vadd.f32 %v867_v46, %v669_v44  ;;  %557 = vmatmul.f32.gmra.mxu0 %v393_v41  ;;  %v1105_v41 = vld [vmem:[%s3759_s20 + $0x1b2] sm:$0xff] }
 0x13d   : > { %914 = vmatmul.f32.gmra.mxu1 %v749_v49  ;;  %v395_v49 = vld [vmem:[%s3759_s20 + $0x1b0] sm:$0xff] }
 0x13e   : > { %v1221_v55 = vpop.f32.mrf.mxu2  ;;  %v1527_v56 = vpop.f32.mrf.mxu3 }
 0x13f   : > { %v3234_v58 = vpop.eup %3233  ;;  %v4051_v63 = vadd.f32 %v1221_v55, %v1023_v50  ;;  %v1528_v0 = vadd.f32 %v4034_v24, %v1527_v56  ;;  %v751_v56 = vld [vmem:[%s3759_s20 + $0x1b1] sm:$0xff] }
 0x140   : > { %v1784_v1 = vmul.f32 %v3234_v58, %v4049_v51 }
 0x141   : > { %3235 = vtanh.f32 %v1528_v0  ;;  %v513_v6 = vpop.f32.mrf.mxu0  ;;  %v5240_v10 = vmax.f32 %v4051_v63, 0.0 }
 0x142   : > { %1848 = vadd.xlane.f32.xlu0 %v1784_v1  ;;  %v670_v16 = vadd.f32 %v3872_v48, %v513_v6  ;;  %v870_v18 = vpop.f32.mrf.mxu1 }
 0x143   : > { %1271 = vmatmul.f32.gmra.mxu2 %v1104_v4  ;;  %1577 = vmatmul.f32.gmra.mxu3 %v5240_v10  ;;  %v405_v10 = vld [vmem:[%s3759_s20 + $0x228] sm:$0xff] }
 0x144   : > { %v1024_v22 = vadd.f32 %v870_v18, %v670_v16  ;;  %560 = vmatmul.f32.gmra.mxu0 %v394_v12  ;;  %v1106_v18 = vld [vmem:[%s3759_s20 + $0x1ba] sm:$0xff] }
 0x145   : > { %917 = vmatmul.f32.gmra.mxu1 %v750_v19 }
 0x146   : > { %v1224_v25 = vpop.f32.mrf.mxu2  ;;  %v1530_v29 = vpop.f32.mrf.mxu3 }
 0x147   : > { %v3236_v30 = vpop.eup %3235  ;;  %v4062_v34 = vadd.f32 %v1224_v25, %v1024_v22  ;;  %v1531_v35 = vadd.f32 %v4034_v24, %v1530_v29  ;;  %v396_v25 = vld [vmem:[%s3759_s20 + $0x1b8] sm:$0xff] }
 0x148   : > { %v1785_v38 = vmul.f32 %v3236_v30, %v4049_v51 }
 0x149   : > { %3237 = vtanh.f32 %v1531_v35  ;;  %v516_v44 = vpop.f32.mrf.mxu0  ;;  %v5238_v46 = vmax.f32 %v4062_v34, 0.0  ;;  %v752_v35 = vld [vmem:[%s3759_s20 + $0x1b9] sm:$0xff] }
 0x14a   : > { %1850 = vadd.xlane.f32.xlu0 %v1785_v38  ;;  %v671_v50 = vadd.f32 %v3872_v48, %v516_v44  ;;  %v873_v55 = vpop.f32.mrf.mxu1 }
 0x14b   : > { %1274 = vmatmul.f32.gmra.mxu2 %v1105_v41  ;;  %1580 = vmatmul.f32.gmra.mxu3 %v5238_v46  ;;  %v404_v46 = vld [vmem:[%s3759_s20 + $0x218] sm:$0xff] }
 0x14c   : > { %v1025_v58 = vadd.f32 %v873_v55, %v671_v50  ;;  %563 = vmatmul.f32.gmra.mxu0 %v395_v49 }
 0x14d   : > { %920 = vmatmul.f32.gmra.mxu1 %v751_v56 }
 0x14e   : > { %v1227_v0 = vpop.f32.mrf.mxu2  ;;  %v1533_v1 = vpop.f32.mrf.mxu3 }
 0x14f   : > { %v3238_v4 = vpop.eup %3237  ;;  %v4073_v6 = vadd.f32 %v1227_v0, %v1025_v58  ;;  %v1534_v12 = vadd.f32 %v4034_v24, %v1533_v1  ;;  %v1107_v58 = vld [vmem:[%s3759_s20 + $0x1ca] sm:$0xff] }
 0x150   : > { %v1786_v16 = vmul.f32 %v3238_v4, %v4049_v51  ;;  %v397_v4 = vld [vmem:[%s3759_s20 + $0x1c8] sm:$0xff] }
 0x151   : > { %5323 = vst [vmem:[#allocation3_spill] sm:$0xff] %v4073_v6  ;;  %3239 = vtanh.f32 %v1534_v12  ;;  %v519_v19 = vpop.f32.mrf.mxu0  ;;  %v5234_v22 = vmax.f32 %v4073_v6, 0.0 }
 0x152   : > { %1852 = vadd.xlane.f32.xlu1 %v1786_v16  ;;  %v672_v29 = vadd.f32 %v3872_v48, %v519_v19  ;;  %v876_v30 = vpop.f32.mrf.mxu1 }
 0x153   : > { %1277 = vmatmul.f32.gmra.mxu2 %v1106_v18  ;;  %1583 = vmatmul.f32.gmra.mxu3 %v5234_v22  ;;  %v753_v18 = vld [vmem:[%s3759_s20 + $0x1c9] sm:$0xff]  ;;  %v402_v22 = vld [vmem:[%s3759_s20 + $0x200] sm:$0xff] }
 0x154   : > { %v1026_v38 = vadd.f32 %v876_v30, %v672_v29  ;;  %566 = vmatmul.f32.gmra.mxu0 %v396_v25 }
 0x155   : > { %923 = vmatmul.f32.gmra.mxu1 %v752_v35 }
 0x156   : > { %v1230_v41 = vpop.f32.mrf.mxu2  ;;  %v1536_v44 = vpop.f32.mrf.mxu3 }
 0x157   : > { %v3240_v49 = vpop.eup %3239  ;;  %v4084_v50 = vadd.f32 %v1230_v41, %v1026_v38  ;;  %v1537_v55 = vadd.f32 %v4034_v24, %v1536_v44  ;;  %v1108_v44 = vld [vmem:[%s3759_s20 + $0x1d2] sm:$0xff] }
 0x158   : > { %v1787_v56 = vmul.f32 %v3240_v49, %v4049_v51 }
 0x159   : > { %5324 = vst [vmem:[#allocation4_spill] sm:$0xff] %v4084_v50  ;;  %3241 = vtanh.f32 %v1537_v55  ;;  %v522_v0 = vpop.f32.mrf.mxu0  ;;  %v5232_v1 = vmax.f32 %v4084_v50, 0.0 }
 0x15a   : > { %1854 = vadd.xlane.f32.xlu1 %v1787_v56  ;;  %v673_v12 = vadd.f32 %v3872_v48, %v522_v0  ;;  %v879_v16 = vpop.f32.mrf.mxu1  ;;  %v398_v56 = vld [vmem:[%s3759_s20 + $0x1d0] sm:$0xff] }
 0x15b   : > { %1280 = vmatmul.f32.gmra.mxu2 %v1107_v58  ;;  %1586 = vmatmul.f32.gmra.mxu3 %v5232_v1  ;;  %v401_v1 = vld [vmem:[%s3759_s20 + $0x1f8] sm:$0xff] }
 0x15c   : > { %v1027_v19 = vadd.f32 %v879_v16, %v673_v12  ;;  %569 = vmatmul.f32.gmra.mxu0 %v397_v4  ;;  %v754_v4 = vld [vmem:[%s3759_s20 + $0x1d1] sm:$0xff] }
 0x15d   : > { %926 = vmatmul.f32.gmra.mxu1 %v753_v18 }
 0x15e   : > { %v1233_v25 = vpop.f32.mrf.mxu2  ;;  %v1539_v29 = vpop.f32.mrf.mxu3 }
 0x15f   : > { %v3242_v30 = vpop.eup %3241  ;;  %v4095_v35 = vadd.f32 %v1233_v25, %v1027_v19  ;;  %v1540_v38 = vadd.f32 %v4034_v24, %v1539_v29 }
 0x160   : > { %v1788_v41 = vmul.f32 %v3242_v30, %v4049_v51 }
 0x161   : > { %5325 = vst [vmem:[#allocation5_spill] sm:$0xff] %v4095_v35  ;;  %3243 = vtanh.f32 %v1540_v38  ;;  %v525_v49 = vpop.f32.mrf.mxu0  ;;  %v5229_v55 = vmax.f32 %v4095_v35, 0.0  ;;  %v1109_v38 = vld [vmem:[%s3759_s20 + $0x1e2] sm:$0xff] }
 0x162   : > { %1856 = vadd.xlane.f32.xlu2 %v1788_v41  ;;  %v674_v58 = vadd.f32 %v3872_v48, %v525_v49  ;;  %v882_v0 = vpop.f32.mrf.mxu1  ;;  %v399_v49 = vld [vmem:[%s3759_s20 + $0x1e0] sm:$0xff] }
 0x163   : > { %1283 = vmatmul.f32.gmra.mxu2 %v1108_v44  ;;  %1589 = vmatmul.f32.gmra.mxu3 %v5229_v55 }
 0x164   : > { %v1028_v12 = vadd.f32 %v882_v0, %v674_v58  ;;  %572 = vmatmul.f32.gmra.mxu0 %v398_v56  ;;  %v755_v0 = vld [vmem:[%s3759_s20 + $0x1e1] sm:$0xff] }
 0x165   : > { %929 = vmatmul.f32.gmra.mxu1 %v754_v4 }
 0x166   : > { %v1236_v16 = vpop.f32.mrf.mxu2  ;;  %v1542_v18 = vpop.f32.mrf.mxu3 }
 0x167   : > { %v3244_v19 = vpop.eup %3243  ;;  %v4106_v25 = vadd.f32 %v1236_v16, %v1028_v12  ;;  %v1543_v29 = vadd.f32 %v4034_v24, %v1542_v18 }
 0x168   : > { %v1789_v30 = vmul.f32 %v3244_v19, %v4049_v51 }
 0x169   : > { %5326 = vst [vmem:[#allocation6_spill] sm:$0xff] %v4106_v25  ;;  %3245 = vtanh.f32 %v1543_v29  ;;  %v528_v41 = vpop.f32.mrf.mxu0  ;;  %v5231_v44 = vmax.f32 %v4106_v25, 0.0 }
 0x16a   : > { %1858 = vadd.xlane.f32.xlu2 %v1789_v30  ;;  %v675_v56 = vadd.f32 %v3872_v48, %v528_v41  ;;  %v885_v58 = vpop.f32.mrf.mxu1  ;;  %v1110_v41 = vld [vmem:[%s3759_s20 + $0x1ea] sm:$0xff] }
 0x16b   : > { %1286 = vmatmul.f32.gmra.mxu2 %v1109_v38  ;;  %1592 = vmatmul.f32.gmra.mxu3 %v5231_v44 }
 0x16c   : > { %v1029_v4 = vadd.f32 %v885_v58, %v675_v56  ;;  %575 = vmatmul.f32.gmra.mxu0 %v399_v49  ;;  %v756_v58 = vld [vmem:[%s3759_s20 + $0x1e9] sm:$0xff] }
 0x16d   : > { %932 = vmatmul.f32.gmra.mxu1 %v755_v0 }
 0x16e   : > { %v1239_v12 = vpop.f32.mrf.mxu2  ;;  %v1545_v16 = vpop.f32.mrf.mxu3 }
 0x16f   : > { %v3246_v18 = vpop.eup %3245  ;;  %v4117_v19 = vadd.f32 %v1239_v12, %v1029_v4  ;;  %v1546_v29 = vadd.f32 %v4034_v24, %v1545_v16 }
 0x170   : > { %v1790_v30 = vmul.f32 %v3246_v18, %v4049_v51 }
 0x171   : > { %5327 = vst [vmem:[#allocation7_spill] sm:$0xff] %v4117_v19  ;;  %v5233_v55 = vmax.f32 %v4117_v19, 0.0  ;;  %3247 = vtanh.f32 %v1546_v29  ;;  %v531_v38 = vpop.f32.mrf.mxu0 }
 0x172   : > { %1860 = vadd.xlane.f32.xlu0 %v1790_v30  ;;  %v676_v49 = vadd.f32 %v3872_v48, %v531_v38  ;;  %v888_v56 = vpop.f32.mrf.mxu1  ;;  %v1111_v38 = vld [vmem:[%s3759_s20 + $0x1fa] sm:$0xff] }
 0x173   : > { %1289 = vmatmul.f32.gmra.mxu2 %v1110_v41  ;;  %1595 = vmatmul.f32.gmra.mxu3 %v5233_v55 }
 0x174   : > { %v1030_v0 = vadd.f32 %v888_v56, %v676_v49  ;;  %578 = vmatmul.f32.gmra.mxu0 %v400_v39  ;;  %v757_v56 = vld [vmem:[%s3759_s20 + $0x1f9] sm:$0xff] }
 0x175   : > { %935 = vmatmul.f32.gmra.mxu1 %v756_v58 }
 0x176   : > { %v1242_v4 = vpop.f32.mrf.mxu2  ;;  %v1548_v12 = vpop.f32.mrf.mxu3 }
 0x177   : > { %v3248_v16 = vpop.eup %3247  ;;  %v4128_v18 = vadd.f32 %v1242_v4, %v1030_v0  ;;  %v1549_v29 = vadd.f32 %v4034_v24, %v1548_v12 }
 0x178   : > { %v1791_v30 = vmul.f32 %v3248_v16, %v4049_v51 }
 0x179   : > { %5328 = vst [vmem:[#allocation8_spill] sm:$0xff] %v4128_v18  ;;  %v5235_v44 = vmax.f32 %v4128_v18, 0.0  ;;  %3249 = vtanh.f32 %v1549_v29  ;;  %v534_v41 = vpop.f32.mrf.mxu0  ;;  %v778_v18 = vld [vmem:[%s3759_s20 + $0x2f1] sm:$0xff] }
 0x17a   : > { %1862 = vadd.xlane.f32.xlu1 %v1791_v30  ;;  %v677_v39 = vadd.f32 %v3872_v48, %v534_v41  ;;  %v891_v49 = vpop.f32.mrf.mxu1  ;;  %v1112_v41 = vld [vmem:[%s3759_s20 + $0x202] sm:$0xff] }
 0x17b   : > { %1292 = vmatmul.f32.gmra.mxu2 %v1111_v38  ;;  %1598 = vmatmul.f32.gmra.mxu3 %v5235_v44 }
 0x17c   : > { %v1031_v58 = vadd.f32 %v891_v49, %v677_v39  ;;  %581 = vmatmul.f32.gmra.mxu0 %v401_v1  ;;  %v758_v49 = vld [vmem:[%s3759_s20 + $0x201] sm:$0xff] }
 0x17d   : > { %938 = vmatmul.f32.gmra.mxu1 %v757_v56 }
 0x17e   : > { %v1245_v0 = vpop.f32.mrf.mxu2  ;;  %v1551_v4 = vpop.f32.mrf.mxu3 }
 0x17f   : > { %v3250_v12 = vpop.eup %3249  ;;  %v4139_v16 = vadd.f32 %v1245_v0, %v1031_v58  ;;  %v1552_v29 = vadd.f32 %v4034_v24, %v1551_v4 }
 0x180   : > { %v1792_v30 = vmul.f32 %v3250_v12, %v4049_v51 }
 0x181   : > { %5329 = vst [vmem:[#allocation9_spill] sm:$0xff] %v4139_v16  ;;  %v5237_v55 = vmax.f32 %v4139_v16, 0.0  ;;  %3251 = vtanh.f32 %v1552_v29  ;;  %v537_v38 = vpop.f32.mrf.mxu0  ;;  %v422_v16 = vld [vmem:[%s3759_s20 + $0x2f0] sm:$0xff] }
 0x182   : > { %1864 = vadd.xlane.f32.xlu2 %v1792_v30  ;;  %v678_v1 = vadd.f32 %v3872_v48, %v537_v38  ;;  %v894_v39 = vpop.f32.mrf.mxu1  ;;  %v1113_v38 = vld [vmem:[%s3759_s20 + $0x212] sm:$0xff] }
 0x183   : > { %1295 = vmatmul.f32.gmra.mxu2 %v1112_v41  ;;  %1601 = vmatmul.f32.gmra.mxu3 %v5237_v55 }
 0x184   : > { %v1032_v56 = vadd.f32 %v894_v39, %v678_v1  ;;  %584 = vmatmul.f32.gmra.mxu0 %v402_v22  ;;  %v759_v39 = vld [vmem:[%s3759_s20 + $0x211] sm:$0xff] }
 0x185   : > { %941 = vmatmul.f32.gmra.mxu1 %v758_v49 }
 0x186   : > { %v1248_v58 = vpop.f32.mrf.mxu2  ;;  %v1554_v0 = vpop.f32.mrf.mxu3 }
 0x187   : > { %v3252_v4 = vpop.eup %3251  ;;  %v4150_v12 = vadd.f32 %v1248_v58, %v1032_v56  ;;  %v1555_v29 = vadd.f32 %v4034_v24, %v1554_v0 }
 0x188   : > { %v1793_v30 = vmul.f32 %v3252_v4, %v4049_v51 }
 0x189   : > { %5330 = vst [vmem:[#allocation10_spill] sm:$0xff] %v4150_v12  ;;  %v5239_v44 = vmax.f32 %v4150_v12, 0.0  ;;  %3253 = vtanh.f32 %v1555_v29  ;;  %v540_v41 = vpop.f32.mrf.mxu0 }
 0x18a   : > { %1866 = vadd.xlane.f32.xlu0 %v1793_v30  ;;  %v679_v22 = vadd.f32 %v3872_v48, %v540_v41  ;;  %v897_v1 = vpop.f32.mrf.mxu1  ;;  %v1114_v41 = vld [vmem:[%s3759_s20 + $0x21a] sm:$0xff] }
 0x18b   : > { %1298 = vmatmul.f32.gmra.mxu2 %v1113_v38  ;;  %1604 = vmatmul.f32.gmra.mxu3 %v5239_v44 }
 0x18c   : > { %v1033_v49 = vadd.f32 %v897_v1, %v679_v22  ;;  %587 = vmatmul.f32.gmra.mxu0 %v403_v14  ;;  %v760_v1 = vld [vmem:[%s3759_s20 + $0x219] sm:$0xff] }
 0x18d   : > { %944 = vmatmul.f32.gmra.mxu1 %v759_v39 }
 0x18e   : > { %v1251_v56 = vpop.f32.mrf.mxu2  ;;  %v1557_v58 = vpop.f32.mrf.mxu3 }
 0x18f   : > { %v3254_v0 = vpop.eup %3253  ;;  %v4161_v4 = vadd.f32 %v1251_v56, %v1033_v49  ;;  %v1558_v29 = vadd.f32 %v4034_v24, %v1557_v58 }
 0x190   : > { %v1794_v30 = vmul.f32 %v3254_v0, %v4049_v51 }
 0x191   : > { %5331 = vst [vmem:[#allocation11_spill] sm:$0xff] %v4161_v4  ;;  %v5241_v55 = vmax.f32 %v4161_v4, 0.0  ;;  %3255 = vtanh.f32 %v1558_v29  ;;  %v543_v38 = vpop.f32.mrf.mxu0 }
 0x192   : > { %1868 = vadd.xlane.f32.xlu1 %v1794_v30  ;;  %v680_v14 = vadd.f32 %v3872_v48, %v543_v38  ;;  %v900_v22 = vpop.f32.mrf.mxu1  ;;  %v1115_v38 = vld [vmem:[%s3759_s20 + $0x22a] sm:$0xff] }
 0x193   : > { %1301 = vmatmul.f32.gmra.mxu2 %v1114_v41  ;;  %1607 = vmatmul.f32.gmra.mxu3 %v5241_v55  ;;  %v406_v55 = vld [vmem:[%s3759_s20 + $0x230] sm:$0xff] }
 0x194   : > { %v1034_v39 = vadd.f32 %v900_v22, %v680_v14  ;;  %590 = vmatmul.f32.gmra.mxu0 %v404_v46  ;;  %v761_v22 = vld [vmem:[%s3759_s20 + $0x229] sm:$0xff] }
 0x195   : > { %947 = vmatmul.f32.gmra.mxu1 %v760_v1 }
 0x196   : > { %v1254_v49 = vpop.f32.mrf.mxu2  ;;  %v1560_v56 = vpop.f32.mrf.mxu3 }
 0x197   : > { %v3256_v58 = vpop.eup %3255  ;;  %v4172_v0 = vadd.f32 %v1254_v49, %v1034_v39  ;;  %v1561_v29 = vadd.f32 %v4034_v24, %v1560_v56 }
 0x198   : > { %v1795_v30 = vmul.f32 %v3256_v58, %v4049_v51 }
 0x199   : > { %5332 = vst [vmem:[#allocation12_spill] sm:$0xff] %v4172_v0  ;;  %v5242_v44 = vmax.f32 %v4172_v0, 0.0  ;;  %3257 = vtanh.f32 %v1561_v29  ;;  %v546_v41 = vpop.f32.mrf.mxu0 }
 0x19a   : > { %1870 = vadd.xlane.f32.xlu2 %v1795_v30  ;;  %v681_v46 = vadd.f32 %v3872_v48, %v546_v41  ;;  %v903_v14 = vpop.f32.mrf.mxu1  ;;  %v1116_v30 = vld [vmem:[%s3759_s20 + $0x232] sm:$0xff] }
 0x19b   : > { %1304 = vmatmul.f32.gmra.mxu2 %v1115_v38  ;;  %1610 = vmatmul.f32.gmra.mxu3 %v5242_v44  ;;  %v1117_v44 = vld [vmem:[%s3759_s20 + $0x242] sm:$0xff] }
 0x19c   : > { %v1035_v1 = vadd.f32 %v903_v14, %v681_v46  ;;  %593 = vmatmul.f32.gmra.mxu0 %v405_v10  ;;  %v4193_v10 = vld [vmem:[%s5222_s2] ss:$0 sm:$0xff] }
 0x19d   : > { %950 = vmatmul.f32.gmra.mxu1 %v761_v22  ;;  %v762_v22 = vld [vmem:[%s3759_s20 + $0x231] sm:$0xff] }
 0x19e   : > { %v1257_v39 = vpop.f32.mrf.mxu2  ;;  %v1563_v49 = vpop.f32.mrf.mxu3 }
 0x19f   : > { %v3258_v56 = vpop.eup %3257  ;;  %v4183_v58 = vadd.f32 %v1257_v39, %v1035_v1  ;;  %v1564_v29 = vadd.f32 %v4034_v24, %v1563_v49 }
 0x1a0   : > { %v1796_v48 = vmul.f32 %v3258_v56, %v4049_v51 }
 0x1a1   : > { %5333 = vst [vmem:[#allocation13_spill] sm:$0xff] %v4183_v58  ;;  %v5245_v41 = vmax.f32 %v4183_v58, 0.0  ;;  %3259 = vtanh.f32 %v1564_v29  ;;  %v549_v38 = vpop.f32.mrf.mxu0 }
 0x1a2   : > { %1872 = vadd.xlane.f32.xlu0 %v1796_v48  ;;  %v682_v46 = vadd.f32 %v4193_v10, %v549_v38  ;;  %v906_v14 = vpop.f32.mrf.mxu1 }
 0x1a3   : > { %1307 = vmatmul.f32.gmra.mxu2 %v1116_v30  ;;  %1613 = vmatmul.f32.gmra.mxu3 %v5245_v41 }
 0x1a4   : > { %v1036_v1 = vadd.f32 %v906_v14, %v682_v46  ;;  %596 = vmatmul.f32.gmra.mxu0 %v406_v55  ;;  %v763_v14 = vld [vmem:[%s3759_s20 + $0x241] sm:$0xff] }
 0x1a5   : > { %953 = vmatmul.f32.gmra.mxu1 %v762_v22 }
 0x1a6   : > { %v1260_v39 = vpop.f32.mrf.mxu2  ;;  %v1566_v49 = vpop.f32.mrf.mxu3 }
 0x1a7   : > { %v3260_v56 = vpop.eup %3259  ;;  %v4199_v29 = vadd.f32 %v1260_v39, %v1036_v1  ;;  %v1567_v48 = vadd.f32 %v4034_v24, %v1566_v49 }
 0x1a8   : > { %v1797_v38 = vmul.f32 %v3260_v56, %v4049_v51 }
 0x1a9   : > { %5334 = vst [vmem:[#allocation14_spill] sm:$0xff] %v4199_v29  ;;  %v5247_v62 = vmax.f32 %v4199_v29, 0.0  ;;  %3261 = vtanh.f32 %v1567_v48  ;;  %v552_v30 = vpop.f32.mrf.mxu0 }
 0x1aa   : > { %1874 = vadd.xlane.f32.xlu1 %v1797_v38  ;;  %v683_v55 = vadd.f32 %v4193_v10, %v552_v30  ;;  %v909_v46 = vpop.f32.mrf.mxu1  ;;  %v1118_v30 = vld [vmem:[%s3759_s20 + $0x24a] sm:$0xff] }
 0x1ab   : > { %1310 = vmatmul.f32.gmra.mxu2 %v1117_v44  ;;  %1616 = vmatmul.f32.gmra.mxu3 %v5247_v62 }
 0x1ac   : > { %v1037_v22 = vadd.f32 %v909_v46, %v683_v55  ;;  %599 = vmatmul.f32.gmra.mxu0 %v407_v42  ;;  %v764_v46 = vld [vmem:[%s3759_s20 + $0x249] sm:$0xff] }
 0x1ad   : > { %956 = vmatmul.f32.gmra.mxu1 %v763_v14 }
 0x1ae   : > { %v1263_v1 = vpop.f32.mrf.mxu2  ;;  %v1569_v39 = vpop.f32.mrf.mxu3 }
 0x1af   : > { %v3262_v49 = vpop.eup %3261  ;;  %v4210_v56 = vadd.f32 %v1263_v1, %v1037_v22  ;;  %v1570_v48 = vadd.f32 %v4034_v24, %v1569_v39 }
 0x1b0   : > { %v1798_v38 = vmul.f32 %v3262_v49, %v4049_v51 }
 0x1b1   : > { %5335 = vst [vmem:[#allocation15_spill] sm:$0xff] %v4210_v56  ;;  %v5249_v41 = vmax.f32 %v4210_v56, 0.0  ;;  %3263 = vtanh.f32 %v1570_v48  ;;  %v555_v44 = vpop.f32.mrf.mxu0 }
 0x1b2   : > { %1876 = vadd.xlane.f32.xlu2 %v1798_v38  ;;  %v684_v42 = vadd.f32 %v4193_v10, %v555_v44  ;;  %v912_v55 = vpop.f32.mrf.mxu1  ;;  %v1119_v44 = vld [vmem:[%s3759_s20 + $0x25a] sm:$0xff] }
 0x1b3   : > { %1313 = vmatmul.f32.gmra.mxu2 %v1118_v30  ;;  %1619 = vmatmul.f32.gmra.mxu3 %v5249_v41 }
 0x1b4   : > { %v1038_v14 = vadd.f32 %v912_v55, %v684_v42  ;;  %602 = vmatmul.f32.gmra.mxu0 %v408_v26  ;;  %v765_v55 = vld [vmem:[%s3759_s20 + $0x259] sm:$0xff] }
 0x1b5   : > { %959 = vmatmul.f32.gmra.mxu1 %v764_v46 }
 0x1b6   : > { %v1266_v22 = vpop.f32.mrf.mxu2  ;;  %v1572_v1 = vpop.f32.mrf.mxu3 }
 0x1b7   : > { %v3264_v39 = vpop.eup %3263  ;;  %v4221_v49 = vadd.f32 %v1266_v22, %v1038_v14  ;;  %v1573_v48 = vadd.f32 %v4034_v24, %v1572_v1 }
 0x1b8   : > { %v1799_v38 = vmul.f32 %v3264_v39, %v4049_v51 }
 0x1b9   : > { %5336 = vst [vmem:[#allocation16_spill] sm:$0xff] %v4221_v49  ;;  %v5251_v62 = vmax.f32 %v4221_v49, 0.0  ;;  %3265 = vtanh.f32 %v1573_v48  ;;  %v558_v30 = vpop.f32.mrf.mxu0 }
 0x1ba   : > { %1878 = vadd.xlane.f32.xlu0 %v1799_v38  ;;  %v685_v26 = vadd.f32 %v4193_v10, %v558_v30  ;;  %v915_v42 = vpop.f32.mrf.mxu1  ;;  %v1120_v30 = vld [vmem:[%s3759_s20 + $0x262] sm:$0xff] }
 0x1bb   : > { %1316 = vmatmul.f32.gmra.mxu2 %v1119_v44  ;;  %1622 = vmatmul.f32.gmra.mxu3 %v5251_v62 }
 0x1bc   : > { %v1039_v46 = vadd.f32 %v915_v42, %v685_v26  ;;  %605 = vmatmul.f32.gmra.mxu0 %v409_v11  ;;  %v766_v42 = vld [vmem:[%s3759_s20 + $0x261] sm:$0xff] }
 0x1bd   : > { %962 = vmatmul.f32.gmra.mxu1 %v765_v55 }
 0x1be   : > { %v1269_v14 = vpop.f32.mrf.mxu2  ;;  %v1575_v22 = vpop.f32.mrf.mxu3 }
 0x1bf   : > { %v3266_v1 = vpop.eup %3265  ;;  %v4232_v39 = vadd.f32 %v1269_v14, %v1039_v46  ;;  %v1576_v48 = vadd.f32 %v4034_v24, %v1575_v22 }
 0x1c0   : > { %v1800_v38 = vmul.f32 %v3266_v1, %v4049_v51 }
 0x1c1   : > { %5337 = vst [vmem:[#allocation17_spill] sm:$0xff] %v4232_v39  ;;  %v5253_v41 = vmax.f32 %v4232_v39, 0.0  ;;  %3267 = vtanh.f32 %v1576_v48  ;;  %v561_v44 = vpop.f32.mrf.mxu0 }
 0x1c2   : > { %1880 = vadd.xlane.f32.xlu1 %v1800_v38  ;;  %v686_v11 = vadd.f32 %v4193_v10, %v561_v44  ;;  %v918_v26 = vpop.f32.mrf.mxu1  ;;  %v1121_v44 = vld [vmem:[%s3759_s20 + $0x272] sm:$0xff] }
 0x1c3   : > { %1319 = vmatmul.f32.gmra.mxu2 %v1120_v30  ;;  %1625 = vmatmul.f32.gmra.mxu3 %v5253_v41 }
 0x1c4   : > { %v1040_v55 = vadd.f32 %v918_v26, %v686_v11  ;;  %608 = vmatmul.f32.gmra.mxu0 %v410_v60  ;;  %v767_v26 = vld [vmem:[%s3759_s20 + $0x271] sm:$0xff] }
 0x1c5   : > { %965 = vmatmul.f32.gmra.mxu1 %v766_v42 }
 0x1c6   : > { %v1272_v46 = vpop.f32.mrf.mxu2  ;;  %v1578_v14 = vpop.f32.mrf.mxu3 }
 0x1c7   : > { %v3268_v22 = vpop.eup %3267  ;;  %v4243_v1 = vadd.f32 %v1272_v46, %v1040_v55  ;;  %v1579_v48 = vadd.f32 %v4034_v24, %v1578_v14 }
 0x1c8   : > { %v1801_v38 = vmul.f32 %v3268_v22, %v4049_v51 }
 0x1c9   : > { %5338 = vst [vmem:[#allocation18_spill] sm:$0xff] %v4243_v1  ;;  %v5255_v62 = vmax.f32 %v4243_v1, 0.0  ;;  %3269 = vtanh.f32 %v1579_v48  ;;  %v564_v30 = vpop.f32.mrf.mxu0 }
 0x1ca   : > { %1882 = vadd.xlane.f32.xlu2 %v1801_v38  ;;  %v687_v60 = vadd.f32 %v4193_v10, %v564_v30  ;;  %v921_v11 = vpop.f32.mrf.mxu1  ;;  %v1122_v30 = vld [vmem:[%s3759_s20 + $0x27a] sm:$0xff] }
 0x1cb   : > { %1322 = vmatmul.f32.gmra.mxu2 %v1121_v44  ;;  %1628 = vmatmul.f32.gmra.mxu3 %v5255_v62 }
 0x1cc   : > { %v1041_v42 = vadd.f32 %v921_v11, %v687_v60  ;;  %611 = vmatmul.f32.gmra.mxu0 %v411_v45  ;;  %v768_v11 = vld [vmem:[%s3759_s20 + $0x279] sm:$0xff] }
 0x1cd   : > { %968 = vmatmul.f32.gmra.mxu1 %v767_v26 }
 0x1ce   : > { %v1275_v55 = vpop.f32.mrf.mxu2  ;;  %v1581_v46 = vpop.f32.mrf.mxu3 }
 0x1cf   : > { %v3270_v14 = vpop.eup %3269  ;;  %v4254_v22 = vadd.f32 %v1275_v55, %v1041_v42  ;;  %v1582_v48 = vadd.f32 %v4034_v24, %v1581_v46 }
 0x1d0   : > { %v1802_v38 = vmul.f32 %v3270_v14, %v4049_v51 }
 0x1d1   : > { %5339 = vst [vmem:[#allocation19_spill] sm:$0xff] %v4254_v22  ;;  %v5256_v41 = vmax.f32 %v4254_v22, 0.0  ;;  %v567_v44 = vpop.f32.mrf.mxu0  ;;  %3271 = vtanh.f32 %v1582_v48 }
 0x1d2   : > { %1884 = vadd.xlane.f32.xlu0 %v1802_v38  ;;  %v688_v45 = vadd.f32 %v4193_v10, %v567_v44  ;;  %v924_v60 = vpop.f32.mrf.mxu1  ;;  %v1123_v38 = vld [vmem:[%s3759_s20 + $0x28a] sm:$0xff] }
 0x1d3   : > { %1325 = vmatmul.f32.gmra.mxu2 %v1122_v30  ;;  %1631 = vmatmul.f32.gmra.mxu3 %v5256_v41  ;;  %v4271_v41 = vpop.xlane.xlu0 %1848 }
 0x1d4   : > { %v1042_v26 = vadd.f32 %v924_v60, %v688_v45  ;;  %614 = vmatmul.f32.gmra.mxu0 %v412_v32  ;;  %v413_v60 = vld [vmem:[%s3759_s20 + $0x288] sm:$0xff] }
 0x1d5   : > { %971 = vmatmul.f32.gmra.mxu1 %v768_v11  ;;  %v769_v11 = vld [vmem:[%s3759_s20 + $0x289] sm:$0xff] }
 0x1d6   : > { %v1278_v42 = vpop.f32.mrf.mxu2  ;;  %v1584_v55 = vpop.f32.mrf.mxu3 }
 0x1d7   : > { %v4265_v46 = vadd.f32 %v1278_v42, %v1042_v26  ;;  %v1585_v14 = vadd.f32 %v4034_v24, %v1584_v55  ;;  %v3272_v48 = vpop.eup %3271  ;;  %v4276_v26 = vpop.xlane.xlu1 %1852 }
 0x1d8   : > { %v1803_v30 = vmul.f32 %v3272_v48, %v4049_v51 }
 0x1d9   : > { %5340 = vst [vmem:[#allocation20_spill] sm:$0xff] %v4265_v46  ;;  %v5260_v44 = vmax.f32 %v4265_v46, 0.0  ;;  %3273 = vtanh.f32 %v1585_v14  ;;  %v570_v62 = vpop.f32.mrf.mxu0 }
 0x1da   : > { %v689_v32 = vadd.f32 %v4193_v10, %v570_v62  ;;  %v927_v45 = vpop.f32.mrf.mxu1  ;;  %1886 = vadd.xlane.f32.xlu1 %v1803_v30  ;;  %v4280_v62 = vpop.xlane.xlu2 %1856 }
 0x1db   : > { %1328 = vmatmul.f32.gmra.mxu2 %v1123_v38  ;;  %1634 = vmatmul.f32.gmra.mxu3 %v5260_v44  ;;  %v1124_v38 = vld [vmem:[%s3759_s20 + $0x292] sm:$0xff]  ;;  %v4291_v47 = vpop.xlane.xlu0 %1850 }
 0x1dc   : > { %v1043_v42 = vadd.f32 %v927_v45, %v689_v32  ;;  %617 = vmatmul.f32.gmra.mxu0 %v413_v60  ;;  %v414_v60 = vld [vmem:[%s3759_s20 + $0x290] sm:$0xff] }
 0x1dd   : > { %974 = vmatmul.f32.gmra.mxu1 %v769_v11  ;;  %v770_v11 = vld [vmem:[%s3759_s20 + $0x291] sm:$0xff] }
 0x1de   : > { %v1281_v55 = vpop.f32.mrf.mxu2  ;;  %v1587_v14 = vpop.f32.mrf.mxu3 }
 0x1df   : > { %v3274_v48 = vpop.eup %3273  ;;  %v4282_v20 = vadd.f32 %v1281_v55, %v1043_v42  ;;  %v1588_v8 = vadd.f32 %v4034_v24, %v1587_v14  ;;  %v4295_v55 = vpop.xlane.xlu1 %1854 }
 0x1e0   : > { %v1804_v30 = vmul.f32 %v3274_v48, %v4049_v51 }
 0x1e1   : > { %5341 = vst [vmem:[#allocation21_spill] sm:$0xff] %v4282_v20  ;;  %v5262_v59 = vmax.f32 %v4282_v20, 0.0  ;;  %v573_v44 = vpop.f32.mrf.mxu0  ;;  %3275 = vtanh.f32 %v1588_v8 }
 0x1e2   : > { %1888 = vadd.xlane.f32.xlu2 %v1804_v30  ;;  %v690_v32 = vadd.f32 %v4193_v10, %v573_v44  ;;  %v930_v45 = vpop.f32.mrf.mxu1  ;;  %v1976_v44 = vmax.f32 %v4271_v41, %v4291_v47 }
 0x1e3   : > { %1331 = vmatmul.f32.gmra.mxu2 %v1124_v38  ;;  %1637 = vmatmul.f32.gmra.mxu3 %v5262_v59  ;;  %v1983_v59 = vmax.f32 %v4276_v26, %v4295_v55 }
 0x1e4   : > { %v1044_v42 = vadd.f32 %v930_v45, %v690_v32  ;;  %620 = vmatmul.f32.gmra.mxu0 %v414_v60  ;;  %v1125_v32 = vld [vmem:[%s3759_s20 + $0x2a2] sm:$0xff]  ;;  %v4305_v45 = vpop.xlane.xlu2 %1858  ;;  %v1977_v27 = vrot.slane %v1976_v44, 4 }
 0x1e5   : > { %977 = vmatmul.f32.gmra.mxu1 %v770_v11  ;;  %v1990_v17 = vmax.f32 %v4280_v62, %v4305_v45  ;;  %v4320_v22 = vpop.xlane.xlu0 %1860 }
 0x1e6   : > { %v1284_v8 = vpop.f32.mrf.mxu2  ;;  %v1590_v14 = vpop.f32.mrf.mxu3 }
 0x1e7   : > { %v4299_v48 = vadd.f32 %v1284_v8, %v1044_v42  ;;  %v1591_v30 = vadd.f32 %v4034_v24, %v1590_v14  ;;  %v3276_v38 = vpop.eup %3275  ;;  %v415_v42 = vld [vmem:[%s3759_s20 + $0x2a0] sm:$0xff]  ;;  %v1984_v14 = vrot.slane %v1983_v59, 4  ;;  %v1991_v46 = vrot.slane %v1990_v17, 4 }
 0x1e8   : > { %v1805_v11 = vmul.f32 %v3276_v38, %v4049_v51  ;;  %v771_v8 = vld [vmem:[%s3759_s20 + $0x2a1] sm:$0xff] }
 0x1e9   : > { %5342 = vst [vmem:[#allocation22_spill] sm:$0xff] %v4299_v48  ;;  %v5274_v60 = vmax.f32 %v4299_v48, 0.0  ;;  %3277 = vtanh.f32 %v1591_v30  ;;  %v576_v37 = vpop.f32.mrf.mxu0  ;;  %v1985_v56 = vmax.f32 %v1983_v59, %v1984_v14  ;;  %v772_v59 = vld [vmem:[%s3759_s20 + $0x2a9] sm:$0xff] }
 0x1ea   : > { %v691_v7 = vadd.f32 %v4193_v10, %v576_v37  ;;  %v933_v61 = vpop.f32.mrf.mxu1  ;;  %1890 = vadd.xlane.f32.xlu0 %v1805_v11  ;;  %v1978_v11 = vmax.f32 %v1976_v44, %v1977_v27 }
 0x1eb   : > { %1334 = vmatmul.f32.gmra.mxu2 %v1125_v32  ;;  %1640 = vmatmul.f32.gmra.mxu3 %v5274_v60  ;;  %v1126_v60 = vld [vmem:[%s3759_s20 + $0x2aa] sm:$0xff] }
 0x1ec   : > { %v1045_v30 = vadd.f32 %v933_v61, %v691_v7  ;;  %623 = vmatmul.f32.gmra.mxu0 %v415_v42  ;;  %v1979_v14 = vrot.slane %v1978_v11, 2 }
 0x1ed   : > { %v4316_v20 = vpop.xlane.xlu1 %1862  ;;  %980 = vmatmul.f32.gmra.mxu1 %v771_v8 }
 0x1ee   : > { %v1287_v37 = vpop.f32.mrf.mxu2  ;;  %v1593_v38 = vpop.f32.mrf.mxu3  ;;  %v1997_v61 = vmax.f32 %v4320_v22, %v4316_v20 }
 0x1ef   : > { %v3278_v49 = vpop.eup %3277  ;;  %v4318_v32 = vadd.f32 %v1287_v37, %v1045_v30  ;;  %v1594_v48 = vadd.f32 %v4034_v24, %v1593_v38  ;;  %v416_v30 = vld [vmem:[%s3759_s20 + $0x2a8] sm:$0xff]  ;;  %v1986_v37 = vrot.slane %v1985_v56, 2  ;;  %v1992_v38 = vmax.f32 %v1990_v17, %v1991_v46  ;;  %v1127_v17 = vld [vmem:[%s3759_s20 + $0x2ba] sm:$0xff] }
 0x1f0   : > { %v1806_v42 = vmul.f32 %v3278_v49, %v4049_v51  ;;  %v1998_v39 = vrot.slane %v1997_v61, 4 }
 0x1f1   : > { %5343 = vst [vmem:[#allocation23_spill] sm:$0xff] %v4318_v32  ;;  %v5280_v7 = vmax.f32 %v4318_v32, 0.0  ;;  %v579_v8 = vpop.f32.mrf.mxu0  ;;  %3279 = vtanh.f32 %v1594_v48  ;;  %v1987_v58 = vmax.f32 %v1985_v56, %v1986_v37  ;;  %v1993_v0 = vrot.slane %v1992_v38, 2  ;;  %v417_v32 = vld [vmem:[%s3759_s20 + $0x2b8] sm:$0xff] }
 0x1f2   : > { %v692_v27 = vadd.f32 %v4193_v10, %v579_v8  ;;  %v936_v44 = vpop.f32.mrf.mxu1  ;;  %1892 = vadd.xlane.f32.xlu1 %v1806_v42  ;;  %v1980_v8 = vmax.f32 %v1978_v11, %v1979_v14  ;;  %v1999_v46 = vmax.f32 %v1997_v61, %v1998_v39  ;;  %v773_v11 = vld [vmem:[%s3759_s20 + $0x2b9] sm:$0xff] }
 0x1f3   : > { %1337 = vmatmul.f32.gmra.mxu2 %v1126_v60  ;;  %1643 = vmatmul.f32.gmra.mxu3 %v5280_v7  ;;  %v1994_v14 = vmax.f32 %v1992_v38, %v1993_v0 }
 0x1f4   : > { %v1046_v1 = vadd.f32 %v936_v44, %v692_v27  ;;  %626 = vmatmul.f32.gmra.mxu0 %v416_v30  ;;  %v2000_v39 = vrot.slane %v1999_v46, 2 }
 0x1f5   : > { %983 = vmatmul.f32.gmra.mxu1 %v772_v59  ;;  %v4344_v61 = vpop.xlane.xlu2 %1864 }
 0x1f6   : > { %v1290_v49 = vpop.f32.mrf.mxu2  ;;  %v1596_v48 = vpop.f32.mrf.mxu3 }
 0x1f7   : > { %v4333_v29 = vadd.f32 %v1290_v49, %v1046_v1  ;;  %v1597_v42 = vadd.f32 %v4034_v24, %v1596_v48  ;;  %v3280_v60 = vpop.eup %3279  ;;  %v1981_v1 = vrot.slane %v1980_v8, 1  ;;  %v1988_v24 = vrot.slane %v1987_v58, 1 }
 0x1f8   : > { %v1807_v27 = vmul.f32 %v3280_v60, %v4049_v51 }
 0x1f9   : > { %5344 = vst [vmem:[#allocation24_spill] sm:$0xff] %v4333_v29  ;;  %v5282_v7 = vmax.f32 %v4333_v29, 0.0  ;;  %3281 = vtanh.f32 %v1597_v42  ;;  %v582_v44 = vpop.f32.mrf.mxu0  ;;  %v1982_v60 = vmax.f32 %v1980_v8, %v1981_v1  ;;  %v1989_v38 = vmax.f32 %v1987_v58, %v1988_v24  ;;  %v4363_v8 = vld [vmem:[%s5225_s5] ss:$0 sm:$0xff]  ;;  %v774_v29 = vld [vmem:[%s3759_s20 + $0x2c1] sm:$0xff] }
 0x1fa   : > { %v693_v30 = vadd.f32 %v4193_v10, %v582_v44  ;;  %v939_v59 = vpop.f32.mrf.mxu1  ;;  %1894 = vadd.xlane.f32.xlu2 %v1807_v27  ;;  %v4355_v44 = vld [vmem:[%s5224_s4] ss:$0 sm:$0xff] }
 0x1fb   : > { %1340 = vmatmul.f32.gmra.mxu2 %v1127_v17  ;;  %1646 = vmatmul.f32.gmra.mxu3 %v5282_v7  ;;  %v1995_v17 = vrot.slane %v1994_v14, 1  ;;  %v418_v7 = vld [vmem:[%s3759_s20 + $0x2c0] sm:$0xff] }
 0x1fc   : > { %v1047_v56 = vadd.f32 %v939_v59, %v693_v30  ;;  %629 = vmatmul.f32.gmra.mxu0 %v417_v32  ;;  %v1128_v30 = vld [vmem:[%s3759_s20 + $0x2c2] sm:$0xff]  ;;  %v2001_v59 = vmax.f32 %v1999_v46, %v2000_v39  ;;  %v2201_v46 = vsub.f32 %v4291_v47, %v1982_v60  ;;  %v2202_v39 = vsub.f32 %v4276_v26, %v1989_v38 }
 0x1fd   : > { %v4346_v51 = vpop.xlane.xlu0 %1866  ;;  %986 = vmatmul.f32.gmra.mxu1 %v773_v11  ;;  %v1996_v11 = vmax.f32 %v1994_v14, %v1995_v17 }
 0x1fe   : > { %v2004_v37 = vmax.f32 %v4344_v61, %v4346_v51  ;;  %v1293_v49 = vpop.f32.mrf.mxu2  ;;  %v1599_v48 = vpop.f32.mrf.mxu3  ;;  %v2268_v17 = vmul.f32 1.442695, %v2202_v39 }
 0x1ff   : > { %v3282_v42 = vpop.eup %3281  ;;  %v4350_v0 = vadd.f32 %v1293_v49, %v1047_v56  ;;  %v1600_v32 = vadd.f32 %v4355_v44, %v1599_v48  ;;  %v2200_v48 = vsub.f32 %v4271_v41, %v1982_v60  ;;  %v2266_v60 = vmul.f32 1.442695, %v2201_v46  ;;  %v419_v46 = vld [vmem:[%s3759_s20 + $0x2d0] sm:$0xff] }
 0x200   : > { %v2005_v27 = vrot.slane %v2004_v37, 4  ;;  %v1808_v58 = vmul.f32 %v4363_v8, %v3282_v42 }
 0x201   : > { %5345 = vst [vmem:[#allocation25_spill] sm:$0xff] %v4350_v0  ;;  %v585_v1 = vpop.f32.mrf.mxu0  ;;  %3283 = vtanh.f32 %v1600_v32  ;;  %v5346_v42 = vmax.f32 %v4350_v0, 0.0  ;;  %v2203_v32 = vsub.f32 %v4295_v55, %v1989_v38  ;;  %v2264_v47 = vmul.f32 1.442695, %v2200_v48 }
 0x202   : > { %v2006_v24 = vmax.f32 %v2004_v37, %v2005_v27  ;;  %v694_v56 = vadd.f32 %v4193_v10, %v585_v1  ;;  %v942_v49 = vpop.f32.mrf.mxu1  ;;  %1896 = vadd.xlane.f32.xlu0 %v1808_v58  ;;  %v2002_v27 = vrot.slane %v2001_v59, 1  ;;  %v2204_v58 = vsub.f32 %v4280_v62, %v1996_v11 }
 0x203   : > { %1343 = vmatmul.f32.gmra.mxu2 %v1128_v30  ;;  %1649 = vmatmul.f32.gmra.mxu3 %v5346_v42  ;;  %v775_v42 = vld [vmem:[%s3759_s20 + $0x2d1] sm:$0xff] }
 0x204   : > { %v2007_v4 = vrot.slane %v2006_v24, 2  ;;  %v1048_v37 = vadd.f32 %v942_v49, %v694_v56  ;;  %632 = vmatmul.f32.gmra.mxu0 %v418_v7  ;;  %v2205_v7 = vsub.f32 %v4305_v45, %v1996_v11  ;;  %v1129_v56 = vld [vmem:[%s3759_s20 + $0x2d2] sm:$0xff]  ;;  %v2003_v55 = vmax.f32 %v2001_v59, %v2002_v27 }
 0x205   : > { %989 = vmatmul.f32.gmra.mxu1 %v774_v29  ;;  %v2270_v49 = vmul.f32 1.442695, %v2203_v32  ;;  %v2272_v62 = vmul.f32 1.442695, %v2204_v58  ;;  %v1130_v58 = vld [vmem:[%s3759_s20 + $0x2da] sm:$0xff] }
 0x206   : > { %v2008_v1 = vmax.f32 %v2006_v24, %v2007_v4  ;;  %v1296_v41 = vpop.f32.mrf.mxu2  ;;  %v1602_v12 = vpop.f32.mrf.mxu3  ;;  %v2274_v59 = vmul.f32 1.442695, %v2205_v7  ;;  %v2206_v11 = vsub.f32 %v4320_v22, %v2003_v55  ;;  %v2207_v32 = vsub.f32 %v4316_v20, %v2003_v55 }
 0x207   : > { %v4375_v30 = vadd.f32 %v1296_v41, %v1048_v37  ;;  %v1603_v26 = vadd.f32 %v4355_v44, %v1602_v12  ;;  %v3284_v14 = vpop.eup %3283  ;;  %v4389_v37 = vpop.xlane.xlu1 %1868 }
 0x208   : > { %v2009_v29 = vrot.slane %v2008_v1, 1  ;;  %v1809_v38 = vmul.f32 %v4363_v8, %v3284_v14  ;;  %v2276_v20 = vmul.f32 1.442695, %v2206_v11 }
 0x209   : > { %5347 = vst [vmem:[#allocation26_spill] sm:$0xff] %v4375_v30  ;;  %v5287_v4 = vmax.f32 %v4375_v30, 0.0  ;;  %3285 = vtanh.f32 %v1603_v26  ;;  %v588_v24 = vpop.f32.mrf.mxu0 }
 0x20a   : > { %v695_v48 = vadd.f32 %v4193_v10, %v588_v24  ;;  %v945_v12 = vpop.f32.mrf.mxu1  ;;  %3287 = vpow2.f32 %v2264_v47  ;;  %v2010_v39 = vmax.f32 %v2008_v1, %v2009_v29  ;;  %1898 = vadd.xlane.f32.xlu1 %v1809_v38 }
 0x20b   : > { %1346 = vmatmul.f32.gmra.mxu2 %v1129_v56  ;;  %3289 = vpow2.f32 %v2266_v60  ;;  %1652 = vmatmul.f32.gmra.mxu3 %v5287_v4 }
 0x20c   : > { %v1049_v45 = vadd.f32 %v945_v12, %v695_v48  ;;  %3291 = vpow2.f32 %v2268_v17  ;;  %635 = vmatmul.f32.gmra.mxu0 %v419_v46  ;;  %v2208_v26 = vsub.f32 %v4344_v61, %v2010_v39  ;;  %v2209_v22 = vsub.f32 %v4346_v51, %v2010_v39  ;;  %v420_v12 = vld [vmem:[%s3759_s20 + $0x2d8] sm:$0xff] }
 0x20d   : > { %v4391_v27 = vpop.xlane.xlu2 %1870  ;;  %992 = vmatmul.f32.gmra.mxu1 %v775_v42  ;;  %3293 = vpow2.f32 %v2270_v49  ;;  %v2278_v61 = vmul.f32 1.442695, %v2207_v32  ;;  %v776_v46 = vld [vmem:[%s3759_s20 + $0x2d9] sm:$0xff] }
 0x20e   : > { %v2011_v1 = vmax.f32 %v4389_v37, %v4391_v27  ;;  %v1299_v41 = vpop.f32.mrf.mxu2  ;;  %v1605_v47 = vpop.f32.mrf.mxu3  ;;  %3295 = vpow2.f32 %v2272_v62  ;;  %v2280_v39 = vmul.f32 1.442695, %v2208_v26 }
 0x20f   : > { %v3286_v60 = vpop.eup %3285  ;;  %v4398_v17 = vadd.f32 %v1299_v41, %v1049_v45  ;;  %3297 = vpow2.f32 %v2274_v59  ;;  %v1606_v29 = vadd.f32 %v4355_v44, %v1605_v47  ;;  %v2282_v45 = vmul.f32 1.442695, %v2209_v22 }
 0x210   : > { %v2012_v14 = vrot.slane %v2011_v1, 4  ;;  %v4401_v7 = vpop.eup %3287  ;;  %v1810_v56 = vmul.f32 %v4363_v8, %v3286_v60 }
 0x211   : > { %5348 = vst [vmem:[#allocation27_spill] sm:$0xff] %v4398_v17  ;;  %v591_v55 = vpop.f32.mrf.mxu0  ;;  %v4405_v38 = vpop.eup %3289  ;;  %v5286_v51 = vmax.f32 %v4398_v17, 0.0  ;;  %3299 = vtanh.f32 %v1606_v29  ;;  %v1131_v29 = vld [vmem:[%s3759_s20 + $0x2ea] sm:$0xff] }
 0x212   : > { %v2013_v24 = vmax.f32 %v2011_v1, %v2012_v14  ;;  %v696_v49 = vadd.f32 %v4193_v10, %v591_v55  ;;  %v948_v48 = vpop.f32.mrf.mxu1  ;;  %v4411_v42 = vpop.eup %3291  ;;  %1900 = vadd.xlane.f32.xlu2 %v1810_v56  ;;  %3301 = vpow2.f32 %v2276_v20  ;;  %v2392_v1 = vadd.f32 %v4405_v38, %v4401_v7 }
 0x213   : > { %1349 = vmatmul.f32.gmra.mxu2 %v1130_v58  ;;  %v4413_v62 = vpop.eup %3293  ;;  %1655 = vmatmul.f32.gmra.mxu3 %v5286_v51  ;;  %3303 = vpow2.f32 %v2278_v61 }
 0x214   : > { %v2014_v59 = vrot.slane %v2013_v24, 2  ;;  %v1050_v11 = vadd.f32 %v948_v48, %v696_v49  ;;  %638 = vmatmul.f32.gmra.mxu0 %v420_v12  ;;  %v4417_v32 = vpop.eup %3295  ;;  %v2399_v22 = vadd.f32 %v4413_v62, %v4411_v42  ;;  %3305 = vpow2.f32 %v2280_v39 }
 0x215   : > { %995 = vmatmul.f32.gmra.mxu1 %v776_v46  ;;  %v4421_v26 = vpop.eup %3297  ;;  %3307 = vpow2.f32 %v2282_v45  ;;  %v421_v46 = vld [vmem:[%s3759_s20 + $0x2e8] sm:$0xff] }
 0x216   : > { %v2015_v41 = vmax.f32 %v2013_v24, %v2014_v59  ;;  %v1302_v47 = vpop.f32.mrf.mxu2  ;;  %v1608_v60 = vpop.f32.mrf.mxu3  ;;  %v2393_v59 = vrot.slane %v2392_v1, 4  ;;  %v2406_v45 = vadd.f32 %v4421_v26, %v4417_v32 }
 0x217   : > { %v4425_v14 = vadd.f32 %v1302_v47, %v1050_v11  ;;  %v1609_v58 = vadd.f32 %v4355_v44, %v1608_v60  ;;  %v3300_v56 = vpop.eup %3299  ;;  %v2400_v11 = vrot.slane %v2399_v22, 4  ;;  %v777_v47 = vld [vmem:[%s3759_s20 + $0x2e9] sm:$0xff] }
 0x218   : > { %v2016_v20 = vrot.slane %v2015_v41, 1  ;;  %v1811_v49 = vmul.f32 %v4363_v8, %v3300_v56  ;;  %v4433_v39 = vpop.eup %3301  ;;  %v4446_v56 = vpop.xlane.xlu0 %1872  ;;  %v2407_v30 = vrot.slane %v2406_v45, 4 }
 0x219   : > { %5349 = vst [vmem:[#allocation28_spill] sm:$0xff] %v4425_v14  ;;  %v5289_v55 = vmax.f32 %v4425_v14, 0.0  ;;  %3309 = vtanh.f32 %v1609_v58  ;;  %v594_v61 = vpop.f32.mrf.mxu0  ;;  %v4438_v60 = vpop.eup %3303  ;;  %v2401_v14 = vadd.f32 %v2400_v11, %v2399_v22 }
 0x21a   : > { %v2017_v24 = vmax.f32 %v2015_v41, %v2016_v20  ;;  %v697_v48 = vadd.f32 %v4193_v10, %v594_v61  ;;  %v951_v12 = vpop.f32.mrf.mxu1  ;;  %1902 = vadd.xlane.f32.xlu2 %v1811_v49  ;;  %v4444_v20 = vpop.eup %3305 }
 0x21b   : > { %1352 = vmatmul.f32.gmra.mxu2 %v1131_v29  ;;  %1658 = vmatmul.f32.gmra.mxu3 %v5289_v55  ;;  %v4450_v29 = vpop.eup %3307  ;;  %v2394_v55 = vadd.f32 %v2393_v59, %v2392_v1 }
 0x21c   : > { %v2210_v58 = vsub.f32 %v4389_v37, %v2017_v24  ;;  %v2211_v41 = vsub.f32 %v4391_v27, %v2017_v24  ;;  %v1051_v61 = vadd.f32 %v951_v12, %v697_v48  ;;  %641 = vmatmul.f32.gmra.mxu0 %v421_v46  ;;  %v2413_v48 = vadd.f32 %v4438_v60, %v4433_v39 }
 0x21d   : > { %v4448_v51 = vpop.xlane.xlu1 %1874  ;;  %998 = vmatmul.f32.gmra.mxu1 %v777_v47 }
 0x21e   : > { %v2284_v4 = vmul.f32 1.442695, %v2210_v58  ;;  %v2286_v17 = vmul.f32 1.442695, %v2211_v41  ;;  %v2018_v37 = vmax.f32 %v4446_v56, %v4448_v51  ;;  %v1305_v27 = vpop.f32.mrf.mxu2  ;;  %v1611_v24 = vpop.f32.mrf.mxu3  ;;  %v1132_v58 = vld [vmem:[%s3759_s20 + $0x2f2] sm:$0xff]  ;;  %v2420_v41 = vadd.f32 %v4450_v29, %v4444_v20  ;;  %s4493_s20 = sshll.u32 %s3173_s28, 2 }
 0x21f   : > { %v3310_v49 = vpop.eup %3309  ;;  %v4456_v46 = vadd.f32 %v1305_v27, %v1051_v61  ;;  %v1612_v47 = vadd.f32 %v4355_v44, %v1611_v24  ;;  %v2395_v61 = vrot.slane %v2394_v55, 2  ;;  %v2408_v27 = vadd.f32 %v2407_v30, %v2406_v45  ;;  %p340_p4 = scmp.lt.s32.totalorder %s4493_s20, 7 }
 0x220   : > { %3311 = vpow2.f32 %v2284_v4  ;;  %v2019_v12 = vrot.slane %v2018_v37, 4  ;;  %v1812_v1 = vmul.f32 %v4363_v8, %v3310_v49  ;;  %v2414_v19 = vrot.slane %v2413_v48, 4 }
 0x221   : > { %5350 = vst [vmem:[#allocation29_spill] sm:$0xff] %v4456_v46  ;;  %3313 = vpow2.f32 %v2286_v17  ;;  %v597_v22 = vpop.f32.mrf.mxu0  ;;  %v5299_v11 = vmax.f32 %v4456_v46, 0.0  ;;  %v2402_v49 = vrot.slane %v2401_v14, 2  ;;  %v2396_v45 = vadd.f32 %v2395_v61, %v2394_v55  ;;  %s5450_s20 = smov (!%p340_p4, %s4493_s20), 7 }
 0x222   : > { %v2020_v59 = vmax.f32 %v2018_v37, %v2019_v12  ;;  %v698_v0 = vadd.f32 %v4193_v10, %v597_v22  ;;  %v954_v4 = vpop.f32.mrf.mxu1  ;;  %3315 = vtanh.f32 %v1612_v47  ;;  %1904 = vadd.xlane.f32.xlu1 %v1812_v1  ;;  %v2421_v37 = vrot.slane %v2420_v41, 4  ;;  %s3181_s28 = sshll.u32 %s5450_s20, 3  ;;  %s3221_s17 = smul.u32 24, %s5450_s20 }
 0x223   : > { %1355 = vmatmul.f32.gmra.mxu2 %v1132_v58  ;;  %1661 = vmatmul.f32.gmra.mxu3 %v5299_v11  ;;  %v2409_v58 = vrot.slane %v2408_v27, 2  ;;  %v2415_v46 = vadd.f32 %v2414_v19, %v2413_v48  ;;  %v2403_v11 = vadd.f32 %v2402_v49, %v2401_v14  ;;  %s343_s21 = scalar_lea.vmem %s5226_s6, %s3181_s28  ;;  %s4538_s24 = scalar_lea.vmem %s5227_s7, %s3181_s28 }
 0x224   : > { %v2021_v17 = vrot.slane %v2020_v59, 2  ;;  %v1052_v24 = vadd.f32 %v954_v4, %v698_v0  ;;  %644 = vmatmul.f32.gmra.mxu0 %v422_v16  ;;  %v2422_v31 = vadd.f32 %v2421_v37, %v2420_v41  ;;  %s4546_s25 = scalar_lea.vmem %s5228_s8, %s3221_s17 }
 0x225   : > { %1001 = vmatmul.f32.gmra.mxu1 %v778_v18  ;;  %v2410_v19 = vadd.f32 %v2409_v58, %v2408_v27  ;;  %v2416_v48 = vrot.slane %v2415_v46, 2  ;;  %v4485_v49 = vpop.xlane.xlu2 %1876 }
 0x226   : > { %v4469_v12 = vpop.eup %3311  ;;  %v2022_v22 = vmax.f32 %v2020_v59, %v2021_v17  ;;  %v1308_v25 = vpop.f32.mrf.mxu2  ;;  %v2423_v41 = vrot.slane %v2422_v31, 2 }
 0x227   : > { %v1614_v35 = vpop.f32.mrf.mxu3  ;;  %v4471_v30 = vpop.eup %3313  ;;  %v4473_v47 = vadd.f32 %v1308_v25, %v1052_v24 }
 0x228   : > { %v1615_v1 = vadd.f32 %v4355_v44, %v1614_v35  ;;  %v2427_v0 = vadd.f32 %v4471_v30, %v4469_v12  ;;  %v2023_v4 = vrot.slane %v2022_v22, 1  ;;  %v3316_v16 = vpop.eup %3315  ;;  %v2397_v35 = vrot.slane %v2396_v45, 1 }
 0x229   : > { %5351 = vst [vmem:[#allocation30_spill] sm:$0xff] %v4473_v47  ;;  %v5303_v59 = vmax.f32 %v4473_v47, 0.0  ;;  %v600_v18 = vpop.f32.mrf.mxu0  ;;  %v1813_v55 = vmul.f32 %v4363_v8, %v3316_v16  ;;  %v2411_v16 = vrot.slane %v2410_v19, 1 }
 0x22a   : > { %3317 = vtanh.f32 %v1615_v1  ;;  %v2428_v17 = vrot.slane %v2427_v0, 4  ;;  %v2024_v50 = vmax.f32 %v2022_v22, %v2023_v4  ;;  %v699_v25 = vadd.f32 %v4193_v10, %v600_v18  ;;  %v957_v61 = vpop.f32.mrf.mxu1 }
 0x22b   : > { %1906 = vadd.xlane.f32.xlu2 %v1813_v55  ;;  %1664 = vmatmul.f32.gmra.mxu3 %v5303_v59  ;;  %v2404_v1 = vrot.slane %v2403_v11, 1 }
 0x22c   : > { %v2429_v24 = vadd.f32 %v2428_v17, %v2427_v0  ;;  %v2212_v6 = vsub.f32 %v4446_v56, %v2024_v50  ;;  %v2213_v14 = vsub.f32 %v4448_v51, %v2024_v50  ;;  %v1053_v37 = vadd.f32 %v957_v61, %v699_v25 }
 0x22d   : > { %v4487_v22 = vpop.xlane.xlu0 %1878  ;;  %v2398_v51 = vadd.f32 %v2397_v35, %v2396_v45  ;;  %v2417_v17 = vadd.f32 %v2416_v48, %v2415_v46  ;;  %v2405_v47 = vadd.f32 %v2404_v1, %v2403_v11 }
 0x22e   : > { %v2288_v4 = vmul.f32 1.442695, %v2212_v6  ;;  %v2290_v27 = vmul.f32 1.442695, %v2213_v14  ;;  %v2025_v58 = vmax.f32 %v4485_v49, %v4487_v22  ;;  %v1311_v56 = vpop.f32.mrf.mxu2  ;;  %v2430_v18 = vrot.slane %v2429_v24, 2 }
 0x22f   : > { %v1617_v0 = vpop.f32.mrf.mxu3  ;;  %v4495_v25 = vadd.f32 %v1311_v56, %v1053_v37  ;;  %v2424_v6 = vadd.f32 %v2423_v41, %v2422_v31  ;;  %v2412_v31 = vadd.f32 %v2411_v16, %v2410_v19  ;;  %v2418_v11 = vrot.slane %v2417_v17, 1 }
 0x230   : > { %v3318_v50 = vpop.eup %3317  ;;  %3319 = vpow2.f32 %v2288_v4  ;;  %v2026_v55 = vrot.slane %v2025_v58, 4  ;;  %v1618_v61 = vadd.f32 %v4355_v44, %v1617_v0  ;;  %v2431_v4 = vadd.f32 %v2430_v18, %v2429_v24 }
 0x231   : > { %3321 = vpow2.f32 %v2290_v27  ;;  %v1814_v14 = vmul.f32 %v4363_v8, %v3318_v50  ;;  %v603_v59 = vpop.f32.mrf.mxu0  ;;  %v5314_v35 = vmax.f32 %v4495_v25, 0.0  ;;  %v2425_v1 = vrot.slane %v2424_v6, 1 }
 0x232   : > { %v2027_v45 = vmax.f32 %v2025_v58, %v2026_v55  ;;  %v700_v46 = vadd.f32 %v4193_v10, %v603_v59  ;;  %v960_v48 = vpop.f32.mrf.mxu1  ;;  %3323 = vtanh.f32 %v1618_v61  ;;  %v2432_v56 = vrot.slane %v2431_v4, 1 }
 0x233   : > { %1908 = vadd.xlane.f32.xlu1 %v1814_v14  ;;  %1667 = vmatmul.f32.gmra.mxu3 %v5314_v35  ;;  %3325 = vrcp.f32 %v2398_v51  ;;  %v2419_v16 = vadd.f32 %v2418_v11, %v2417_v17  ;;  %v2426_v18 = vadd.f32 %v2425_v1, %v2424_v6 }
 0x234   : > { %v2028_v41 = vrot.slane %v2027_v45, 2  ;;  %v1054_v37 = vadd.f32 %v960_v48, %v700_v46  ;;  %3327 = vrcp.f32 %v2405_v47  ;;  %v4524_v48 = vld [vmem:[%s5222_s2] ss:$0 sm:$0xff]  ;;  %v2433_v17 = vadd.f32 %v2432_v56, %v2431_v4 }
 0x235   : > { %3329 = vrcp.f32 %v2412_v31 }
 0x236   : > { %v4504_v27 = vpop.eup %3319  ;;  %v2029_v10 = vmax.f32 %v2027_v45, %v2028_v41  ;;  %v1314_v59 = vpop.f32.mrf.mxu2 }
 0x237   : > { %v1620_v24 = vpop.f32.mrf.mxu3  ;;  %v4506_v58 = vpop.eup %3321  ;;  %v4513_v19 = vadd.f32 %v1314_v59, %v1054_v37 }
 0x238   : > { %v1621_v0 = vadd.f32 %v4355_v44, %v1620_v24  ;;  %v2434_v50 = vadd.f32 %v4506_v58, %v4504_v27  ;;  %v2030_v51 = vrot.slane %v2029_v10, 1  ;;  %v3324_v47 = vpop.eup %3323 }
 0x239   : > { %v5313_v55 = vmax.f32 %v4513_v19, 0.0  ;;  %v606_v61 = vpop.f32.mrf.mxu0  ;;  %v1815_v46 = vmul.f32 %v4363_v8, %v3324_v47  ;;  %v3326_v37 = vpop.eup %3325 }
 0x23a   : > { %3331 = vtanh.f32 %v1621_v0  ;;  %v2435_v14 = vrot.slane %v2434_v50, 4  ;;  %v2031_v45 = vmax.f32 %v2029_v10, %v2030_v51  ;;  %v701_v31 = vadd.f32 %v4524_v48, %v606_v61  ;;  %v963_v41 = vpop.f32.mrf.mxu1  ;;  %v3328_v6 = vpop.eup %3327  ;;  %v3001_v61 = vld [vmem:[%s343_s21 + $0x8] sm:$0xff] }
 0x23b   : > { %1910 = vadd.xlane.f32.xlu2 %v1815_v46  ;;  %1670 = vmatmul.f32.gmra.mxu3 %v5313_v55  ;;  %3333 = vrcp.f32 %v2419_v16  ;;  %v3330_v24 = vpop.eup %3329  ;;  %v2649_v47 = vmul.f32 %v3326_v37, %v4405_v38  ;;  %v2650_v16 = vmul.f32 %v3328_v6, %v4411_v42  ;;  %v3003_v46 = vld [vmem:[%s343_s21 + $0x18] sm:$0xff]  ;;  %3005 = vst [vmem:[%s4546_s25 + $0x18] sm:$0xff] %v3001_v61 }
 0x23c   : > { %v2436_v11 = vadd.f32 %v2435_v14, %v2434_v50  ;;  %v2214_v1 = vsub.f32 %v4485_v49, %v2031_v45  ;;  %v2215_v10 = vsub.f32 %v4487_v22, %v2031_v45  ;;  %v1055_v59 = vadd.f32 %v963_v41, %v701_v31  ;;  %v3002_v14 = vld [vmem:[%s343_s21 + $0x10] sm:$0xff]  ;;  %v3008_v31 = vld [vmem:[%s4538_s24] sm:$0xff]  ;;  %3007 = vst [vmem:[%s4546_s25 + $0x48] sm:$0xff] %v3003_v46 }
 0x23d   : > { %3335 = vrcp.f32 %v2426_v18  ;;  %v2648_v22 = vmul.f32 %v3326_v37, %v4401_v7  ;;  %v3000_v18 = vld [vmem:[%s343_s21] sm:$0xff]  ;;  %v2651_v45 = vmul.f32 %v3328_v6, %v4413_v62  ;;  %v2652_v42 = vmul.f32 %v3330_v24, %v4417_v32  ;;  %3006 = vst [vmem:[%s4546_s25 + $0x30] sm:$0xff] %v3002_v14 }
 0x23e   : > { %v2437_v4 = vrot.slane %v2436_v11, 2  ;;  %v2292_v56 = vmul.f32 1.442695, %v2214_v1  ;;  %v2294_v0 = vmul.f32 1.442695, %v2215_v10  ;;  %v1317_v50 = vpop.f32.mrf.mxu2  ;;  %3337 = vrcp.f32 %v2433_v17  ;;  %3004 = vst [vmem:[%s4546_s25] sm:$0xff] %v3000_v18 }
 0x23f   : > { %v1623_v49 = vpop.f32.mrf.mxu3  ;;  %v4550_v38 = vadd.f32 %v1317_v50, %v1055_v59  ;;  %v2653_v62 = vmul.f32 %v3330_v24, %v4421_v26  ;;  %v5353_v24 = vmax.f32 %v3905_v23, 0.0  ;;  %3012 = vst [vmem:[%s4546_s25 + $0x8] sm:$0xff] %v3008_v31  ;;  %v5355_v14 = vmax.f32 %v3887_v3, 0.0 }
 0x240   : > { %v3332_v51 = vpop.eup %3331  ;;  %v2438_v7 = vadd.f32 %v2437_v4, %v2436_v11  ;;  %3339 = vpow2.f32 %v2292_v56  ;;  %v1624_v41 = vadd.f32 %v4355_v44, %v1623_v49  ;;  %v3009_v11 = vld [vmem:[%s4538_s24 + $0x8] sm:$0xff]  ;;  %v5352_v4 = vmax.f32 %v3896_v13, 0.0 }
 0x241   : > { %3341 = vpow2.f32 %v2294_v0  ;;  %v1816_v37 = vmul.f32 %v4363_v8, %v3332_v51  ;;  %v609_v17 = vpop.f32.mrf.mxu0  ;;  %v5320_v1 = vmax.f32 %v4550_v38, 0.0  ;;  %v3334_v59 = vpop.eup %3333  ;;  %v3010_v0 = vld [vmem:[%s4538_s24 + $0x10] sm:$0xff]  ;;  %v2715_v50 = vmul.f32 %v2651_v45, %v5353_v24  ;;  %v3011_v51 = vld [vmem:[%s4538_s24 + $0x18] sm:$0xff]  ;;  %3013 = vst [vmem:[%s4546_s25 + $0x20] sm:$0xff] %v3009_v11 }
 0x242   : > { %v2439_v6 = vrot.slane %v2438_v7, 1  ;;  %v702_v32 = vadd.f32 %v4524_v48, %v609_v17  ;;  %v966_v10 = vpop.f32.mrf.mxu1  ;;  %v2714_v56 = vmul.f32 %v2650_v16, %v5352_v4  ;;  %3343 = vtanh.f32 %v1624_v41  ;;  %3014 = vst [vmem:[%s4546_s25 + $0x38] sm:$0xff] %v3010_v0 }
 0x243   : > { %1912 = vadd.xlane.f32.xlu0 %v1816_v37  ;;  %v3336_v26 = vpop.eup %3335  ;;  %1673 = vmatmul.f32.gmra.mxu3 %v5320_v1  ;;  %v5354_v16 = vmax.f32 %v3878_v57, 0.0  ;;  %v2713_v46 = vmul.f32 %v2649_v47, %v5355_v14  ;;  %v5356_v23 = vmax.f32 %v3914_v33, 0.0  ;;  %v2654_v37 = vmul.f32 %v3334_v59, %v4433_v39  ;;  %3015 = vst [vmem:[%s4546_s25 + $0x50] sm:$0xff] %v3011_v51 }
 0x244   : > { %v2440_v49 = vadd.f32 %v2439_v6, %v2438_v7  ;;  %v1056_v18 = vadd.f32 %v966_v10, %v702_v32  ;;  %v3338_v13 = vpop.eup %3337  ;;  %v5357_v7 = vmax.f32 %v3923_v43, 0.0  ;;  %v2655_v3 = vmul.f32 %v3334_v59, %v4438_v60 }
 0x245   : > { %v2712_v61 = vmul.f32 %v2648_v22, %v5354_v16  ;;  %v2716_v45 = vmul.f32 %v2652_v42, %v5356_v23  ;;  %v2656_v22 = vmul.f32 %v3336_v26, %v4444_v20  ;;  %v2783_v42 = vadd.f32 %v2715_v50, %v2714_v56 }
 0x246   : > { %v4577_v41 = vpop.eup %3339  ;;  %v2717_v31 = vmul.f32 %v2653_v62, %v5357_v7  ;;  %3345 = vrcp.f32 %v2440_v49  ;;  %v1320_v17 = vpop.f32.mrf.mxu2  ;;  %v2657_v43 = vmul.f32 %v3336_v26, %v4450_v29  ;;  %v2658_v39 = vmul.f32 %v3338_v13, %v4469_v12 }
 0x247   : > { %v1626_v6 = vpop.f32.mrf.mxu3  ;;  %v4585_v57 = vpop.eup %3341  ;;  %v4590_v47 = vadd.f32 %v1320_v17, %v1056_v18  ;;  %v2659_v32 = vmul.f32 %v3338_v13, %v4471_v30  ;;  %v2776_v10 = vadd.f32 %v2713_v46, %v2712_v61  ;;  %v5358_v12 = vmax.f32 %v3932_v54, 0.0 }
 0x248   : > { %v1627_v33 = vadd.f32 %v4355_v44, %v1626_v6  ;;  %v2441_v62 = vadd.f32 %v4585_v57, %v4577_v41  ;;  %v3344_v11 = vpop.eup %3343  ;;  %v2790_v29 = vadd.f32 %v2717_v31, %v2716_v45  ;;  %v5359_v24 = vmax.f32 %v3941_v2, 0.0 }
 0x249   : > { %v5319_v60 = vmax.f32 %v4590_v47, 0.0  ;;  %v612_v20 = vpop.f32.mrf.mxu0  ;;  %v1817_v4 = vmul.f32 %v4363_v8, %v3344_v11  ;;  %v2718_v26 = vmul.f32 %v2654_v37, %v5358_v12  ;;  %v5360_v30 = vmax.f32 %v3950_v15, 0.0 }
 0x24a   : > { %3347 = vtanh.f32 %v1627_v33  ;;  %v2442_v59 = vrot.slane %v2441_v62, 4  ;;  %v703_v56 = vadd.f32 %v4524_v48, %v612_v20  ;;  %v969_v0 = vpop.f32.mrf.mxu1  ;;  %v2719_v50 = vmul.f32 %v2655_v3, %v5359_v24 }
 0x24b   : > { %v2720_v49 = vmul.f32 %v2656_v22, %v5360_v30  ;;  %v2784_v18 = vrot.slane %v2783_v42, 4  ;;  %v5361_v13 = vmax.f32 %v3959_v28, 0.0  ;;  %v5362_v61 = vmax.f32 %v3968_v40, 0.0  ;;  %1914 = vadd.xlane.f32.xlu1 %v1817_v4  ;;  %1676 = vmatmul.f32.gmra.mxu3 %v5319_v60 }
 0x24c   : > { %v3346_v51 = vpop.eup %3345  ;;  %v2443_v46 = vadd.f32 %v2442_v59, %v2441_v62  ;;  %v5363_v54 = vmax.f32 %v3977_v53, 0.0  ;;  %v1057_v45 = vadd.f32 %v969_v0, %v703_v56  ;;  %v2777_v7 = vrot.slane %v2776_v10, 4 }
 0x24d   : > { %v2721_v16 = vmul.f32 %v2657_v43, %v5361_v13  ;;  %v2722_v14 = vmul.f32 %v2658_v39, %v5362_v61  ;;  %v2660_v23 = vmul.f32 %v3346_v51, %v4504_v27  ;;  %v2661_v15 = vmul.f32 %v3346_v51, %v4506_v58 }
 0x24e   : > { %v2723_v2 = vmul.f32 %v2659_v32, %v5363_v54  ;;  %v2444_v31 = vrot.slane %v2443_v46, 2  ;;  %v1323_v28 = vpop.f32.mrf.mxu2  ;;  %v2791_v17 = vrot.slane %v2790_v29, 4  ;;  %v2797_v40 = vadd.f32 %v2719_v50, %v2718_v26 }
 0x24f   : > { %v5364_v6 = vmax.f32 %v3986_v5, 0.0  ;;  %v5365_v22 = vmax.f32 %v3995_v21, 0.0  ;;  %v1629_v43 = vpop.f32.mrf.mxu3  ;;  %v2804_v53 = vadd.f32 %v2721_v16, %v2720_v49  ;;  %v4621_v62 = vadd.f32 %v1323_v28, %v1057_v45 }
 0x250   : > { %v3348_v37 = vpop.eup %3347  ;;  %v2445_v39 = vadd.f32 %v2444_v31, %v2443_v46  ;;  %v1630_v27 = vadd.f32 %v4355_v44, %v1629_v43  ;;  %v2785_v58 = vadd.f32 %v2784_v18, %v2783_v42  ;;  %v2811_v11 = vadd.f32 %v2723_v2, %v2722_v14 }
 0x251   : > { %v2724_v3 = vmul.f32 %v2660_v23, %v5364_v6  ;;  %v2725_v33 = vmul.f32 %v2661_v15, %v5365_v22  ;;  %v1818_v20 = vmul.f32 %v4363_v8, %v3348_v37  ;;  %v615_v59 = vpop.f32.mrf.mxu0  ;;  %v5317_v5 = vmax.f32 %v4621_v62, 0.0 }
 0x252   : > { %v2446_v4 = vrot.slane %v2445_v39, 1  ;;  %3349 = vtanh.f32 %v1630_v27  ;;  %v704_v21 = vadd.f32 %v4524_v48, %v615_v59  ;;  %v972_v56 = vpop.f32.mrf.mxu1  ;;  %v2778_v0 = vadd.f32 %v2777_v7, %v2776_v10 }
 0x253   : > { %v2818_v32 = vadd.f32 %v2725_v33, %v2724_v3  ;;  %v2798_v12 = vrot.slane %v2797_v40, 4  ;;  %1916 = vadd.xlane.f32.xlu2 %v1818_v20  ;;  %v2792_v26 = vadd.f32 %v2791_v17, %v2790_v29  ;;  %v2805_v24 = vrot.slane %v2804_v53, 4  ;;  %1679 = vmatmul.f32.gmra.mxu3 %v5317_v5 }
 0x254   : > { %v2447_v50 = vadd.f32 %v2446_v4, %v2445_v39  ;;  %v1058_v42 = vadd.f32 %v972_v56, %v704_v21  ;;  %v2812_v30 = vrot.slane %v2811_v11, 4  ;;  %v2786_v49 = vrot.slane %v2785_v58, 2  ;;  %v4643_v56 = vpop.xlane.xlu2 %1882 }
 0x255   : > { %v2819_v51 = vrot.slane %v2818_v32, 4  ;;  %v2799_v13 = vadd.f32 %v2798_v12, %v2797_v40  ;;  %v2779_v10 = vrot.slane %v2778_v0, 2  ;;  %v2793_v46 = vrot.slane %v2792_v26, 2 }
 0x256   : > { %3351 = vrcp.f32 %v2447_v50  ;;  %v1326_v18 = vpop.f32.mrf.mxu2  ;;  %v2806_v54 = vadd.f32 %v2805_v24, %v2804_v53  ;;  %v2813_v2 = vadd.f32 %v2812_v30, %v2811_v11  ;;  %v2787_v45 = vadd.f32 %v2786_v49, %v2785_v58  ;;  %v4647_v30 = vpop.xlane.xlu1 %1880 }
 0x257   : > { %v4629_v16 = vadd.f32 %v1326_v18, %v1058_v42  ;;  %v1632_v61 = vpop.f32.mrf.mxu3  ;;  %v2820_v7 = vadd.f32 %v2819_v51, %v2818_v32  ;;  %v2800_v37 = vrot.slane %v2799_v13, 2  ;;  %v2780_v6 = vadd.f32 %v2779_v10, %v2778_v0 }
 0x258   : > { %v3350_v14 = vpop.eup %3349  ;;  %v1633_v29 = vadd.f32 %v4355_v44, %v1632_v61  ;;  %v2794_v3 = vadd.f32 %v2793_v46, %v2792_v26  ;;  %v2807_v22 = vrot.slane %v2806_v54, 2  ;;  %v2814_v33 = vrot.slane %v2813_v2, 2 }
 0x259   : > { %v5316_v23 = vmax.f32 %v4629_v16, 0.0  ;;  %v1819_v15 = vmul.f32 %v4363_v8, %v3350_v14  ;;  %v618_v31 = vpop.f32.mrf.mxu0  ;;  %v2788_v39 = vrot.slane %v2787_v45, 1  ;;  %v2821_v27 = vrot.slane %v2820_v7, 2 }
 0x25a   : > { %3353 = vtanh.f32 %v1633_v29  ;;  %v975_v28 = vpop.f32.mrf.mxu1  ;;  %v705_v17 = vadd.f32 %v4524_v48, %v618_v31  ;;  %v2801_v32 = vadd.f32 %v2800_v37, %v2799_v13  ;;  %v5366_v20 = vmax.f32 %v4004_v36, 0.0 }
 0x25b   : > { %1918 = vadd.xlane.f32.xlu0 %v1819_v15  ;;  %1682 = vmatmul.f32.gmra.mxu3 %v5316_v23  ;;  %v5367_v4 = vmax.f32 %v4013_v52, 0.0  ;;  %v2781_v26 = vrot.slane %v2780_v6, 1  ;;  %v2795_v24 = vrot.slane %v2794_v3, 1  ;;  %v2789_v51 = vadd.f32 %v2788_v39, %v2787_v45 }
 0x25c   : > { %v3352_v40 = vpop.eup %3351  ;;  %v1059_v58 = vadd.f32 %v975_v28, %v705_v17  ;;  %v2822_v52 = vadd.f32 %v2821_v27, %v2820_v7  ;;  %v2802_v14 = vrot.slane %v2801_v32, 1  ;;  %v4655_v28 = vpop.xlane.xlu0 %1884 }
 0x25d   : > { %v2662_v43 = vmul.f32 %v3352_v40, %v4577_v41  ;;  %v2663_v53 = vmul.f32 %v3352_v40, %v4585_v57  ;;  %v2808_v41 = vadd.f32 %v2807_v22, %v2806_v54  ;;  %v2815_v57 = vadd.f32 %v2814_v33, %v2813_v2  ;;  %v4658_v33 = vpop.xlane.xlu2 %1888 }
 0x25e   : > { %v1329_v11 = vpop.f32.mrf.mxu2  ;;  %v2796_v54 = vadd.f32 %v2795_v24, %v2794_v3  ;;  %v2782_v2 = vadd.f32 %v2781_v26, %v2780_v6  ;;  %v2823_v31 = vrot.slane %v2822_v52, 1  ;;  %v2803_v40 = vadd.f32 %v2802_v14, %v2801_v32 }
 0x25f   : > { %v2726_v59 = vmul.f32 %v2662_v43, %v5366_v20  ;;  %v2727_v21 = vmul.f32 %v2663_v53, %v5367_v4  ;;  %v1635_v0 = vpop.f32.mrf.mxu3  ;;  %v4645_v50 = vadd.f32 %v1329_v11, %v1059_v58  ;;  %v2809_v29 = vrot.slane %v2808_v41, 1  ;;  %v4664_v20 = vpop.xlane.xlu1 %1886 }
 0x260   : > { %v3354_v12 = vpop.eup %3353  ;;  %v1636_v49 = vadd.f32 %v4355_v44, %v1635_v0  ;;  %v2816_v15 = vrot.slane %v2815_v57, 1  ;;  %v3049_v17 = vsel %vm3048_vm0, %v2789_v51, %v2782_v2  ;;  %v2032_v4 = vmax.f32 %v4647_v30, %v4643_v56 }
 0x261   : > { %v2825_v42 = vadd.f32 %v2727_v21, %v2726_v59  ;;  %v1820_v36 = vmul.f32 %v4363_v8, %v3354_v12  ;;  %v5312_v18 = vmax.f32 %v4645_v50, 0.0  ;;  %v621_v13 = vpop.f32.mrf.mxu0  ;;  %v3051_v53 = vsel %vm3050_vm1, %v2796_v54, %v3049_v17 }
 0x262   : > { %v978_v61 = vpop.f32.mrf.mxu1  ;;  %3355 = vtanh.f32 %v1636_v49  ;;  %v706_v46 = vadd.f32 %v4524_v48, %v621_v13  ;;  %v2810_v6 = vadd.f32 %v2809_v29, %v2808_v41  ;;  %v2817_v58 = vadd.f32 %v2816_v15, %v2815_v57 }
 0x263   : > { %v2826_v10 = vrot.slane %v2825_v42, 4  ;;  %1920 = vadd.xlane.f32.xlu1 %v1820_v36  ;;  %1685 = vmatmul.f32.gmra.mxu3 %v5312_v18  ;;  %v2824_v59 = vadd.f32 %v2823_v31, %v2822_v52  ;;  %v3053_v26 = vsel %vm3052_vm2, %v2803_v40, %v3051_v53  ;;  %v2039_v57 = vmax.f32 %v4655_v28, %v4664_v20  ;;  %v4700_v31 = vld [vmem:[%s5225_s5] ss:$0 sm:$0xff] }
 0x264   : > { %v1060_v7 = vadd.f32 %v978_v61, %v706_v46  ;;  %v3055_v41 = vsel %vm3054_vm3, %v2810_v6, %v3053_v26  ;;  %v2033_v36 = vrot.slane %v2032_v4, 4  ;;  %v4679_v51 = vpop.xlane.xlu0 %1890 }
 0x265   : > { %v2827_v45 = vadd.f32 %v2826_v10, %v2825_v42  ;;  %v2040_v54 = vrot.slane %v2039_v57, 4  ;;  %v2046_v2 = vmax.f32 %v4658_v33, %v4679_v51 }
 0x266   : > { %v1332_v37 = vpop.f32.mrf.mxu2  ;;  %v2034_v17 = vmax.f32 %v2032_v4, %v2033_v36 }
 0x267   : > { %v2828_v22 = vrot.slane %v2827_v45, 2  ;;  %v4660_v3 = vadd.f32 %v1332_v37, %v1060_v7  ;;  %v1638_v43 = vpop.f32.mrf.mxu3  ;;  %v4689_v15 = vpop.xlane.xlu1 %1892 }
 0x268   : > { %v1639_v39 = vadd.f32 %v4355_v44, %v1638_v43  ;;  %v3356_v27 = vpop.eup %3355 }
 0x269   : > { %v2829_v11 = vadd.f32 %v2828_v22, %v2827_v45  ;;  %v5311_v32 = vmax.f32 %v4660_v3, 0.0  ;;  %v1821_v21 = vmul.f32 %v4363_v8, %v3356_v27  ;;  %v624_v0 = vpop.f32.mrf.mxu0  ;;  %v3057_v8 = vsel %vm3056_vm4, %v2817_v58, %v3055_v41  ;;  %v4694_v45 = vld [vmem:[%s5224_s4] ss:$0 sm:$0xff] }
 0x26a   : > { %3357 = vtanh.f32 %v1639_v39  ;;  %v981_v12 = vpop.f32.mrf.mxu1  ;;  %v707_v24 = vadd.f32 %v4524_v48, %v624_v0  ;;  %v3059_v49 = vsel %vm3058_vm5, %v2824_v59, %v3057_v8  ;;  %v2041_v39 = vmax.f32 %v2039_v57, %v2040_v54 }
 0x26b   : > { %v2830_v44 = vrot.slane %v2829_v11, 1  ;;  %1922 = vadd.xlane.f32.xlu2 %v1821_v21  ;;  %1688 = vmatmul.f32.gmra.mxu3 %v5311_v32  ;;  %v2047_v27 = vrot.slane %v2046_v2, 4 }
 0x26c   : > { %v1061_v52 = vadd.f32 %v981_v12, %v707_v24  ;;  %v2042_v12 = vrot.slane %v2041_v39, 2 }
 0x26d   : > { %v2831_v42 = vadd.f32 %v2830_v44, %v2829_v11  ;;  %v4682_v14 = vpop.xlane.xlu2 %1894  ;;  %v2035_v11 = vrot.slane %v2034_v17, 2  ;;  %v2048_v44 = vmax.f32 %v2046_v2, %v2047_v27 }
 0x26e   : > { %v1335_v13 = vpop.f32.mrf.mxu2  ;;  %v2053_v40 = vmax.f32 %v4689_v15, %v4682_v14 }
 0x26f   : > { %v3061_v61 = vsel %vm3060_vm6, %v2831_v42, %v3059_v49  ;;  %v1641_v10 = vpop.f32.mrf.mxu3  ;;  %v4685_v29 = vadd.f32 %v1335_v13, %v1061_v52  ;;  %v2036_v57 = vmax.f32 %v2034_v17, %v2035_v11  ;;  %v2043_v13 = vmax.f32 %v2041_v39, %v2042_v12 }
 0x270   : > { %v3358_v46 = vpop.eup %3357  ;;  %3087 = vst [vmem:[%s4546_s25 + $0x10] sm:$0xff] %v3061_v61  ;;  %v1642_v7 = vadd.f32 %v4694_v45, %v1641_v10  ;;  %v2054_v59 = vrot.slane %v2053_v40, 4  ;;  %v2049_v61 = vrot.slane %v2048_v44, 2 }
 0x271   : > { %v1822_v37 = vmul.f32 %v4700_v31, %v3358_v46  ;;  %v5310_v22 = vmax.f32 %v4685_v29, 0.0  ;;  %v627_v43 = vpop.f32.mrf.mxu0  ;;  %v2037_v54 = vrot.slane %v2036_v57, 1 }
 0x272   : > { %v984_v53 = vpop.f32.mrf.mxu1  ;;  %v708_v6 = vadd.f32 %v4524_v48, %v627_v43  ;;  %3359 = vtanh.f32 %v1642_v7  ;;  %v2055_v8 = vmax.f32 %v2053_v40, %v2054_v59  ;;  %v2050_v39 = vmax.f32 %v2048_v44, %v2049_v61 }
 0x273   : > { %1924 = vadd.xlane.f32.xlu1 %v1822_v37  ;;  %1691 = vmatmul.f32.gmra.mxu3 %v5310_v22  ;;  %v2038_v59 = vmax.f32 %v2036_v57, %v2037_v54 }
 0x274   : > { %v1062_v58 = vadd.f32 %v984_v53, %v708_v6  ;;  %v2056_v2 = vrot.slane %v2055_v8, 2  ;;  %v2044_v6 = vrot.slane %v2043_v13, 1 }
 0x275   : > { %v4717_v10 = vpop.xlane.xlu0 %1896  ;;  %v2216_v61 = vsub.f32 %v4647_v30, %v2038_v59  ;;  %v2217_v54 = vsub.f32 %v4643_v56, %v2038_v59 }
 0x276   : > { %v1338_v4 = vpop.f32.mrf.mxu2  ;;  %v2045_v44 = vmax.f32 %v2043_v13, %v2044_v6 }
 0x277   : > { %v4709_v21 = vadd.f32 %v1338_v4, %v1062_v58  ;;  %v1644_v0 = vpop.f32.mrf.mxu3  ;;  %v2057_v4 = vmax.f32 %v2055_v8, %v2056_v2  ;;  %v2296_v30 = vmul.f32 1.442695, %v2216_v61 }
 0x278   : > { %v1645_v26 = vadd.f32 %v4694_v45, %v1644_v0  ;;  %v3360_v41 = vpop.eup %3359 }
 0x279   : > { %v5309_v24 = vmax.f32 %v4709_v21, 0.0  ;;  %v630_v42 = vpop.f32.mrf.mxu0  ;;  %v1823_v36 = vmul.f32 %v4700_v31, %v3360_v41  ;;  %v2058_v57 = vrot.slane %v2057_v4, 1 }
 0x27a   : > { %3361 = vtanh.f32 %v1645_v26  ;;  %v987_v49 = vpop.f32.mrf.mxu1  ;;  %v709_v52 = vadd.f32 %v4524_v48, %v630_v42 }
 0x27b   : > { %1694 = vmatmul.f32.gmra.mxu3 %v5309_v24  ;;  %1926 = vadd.xlane.f32.xlu2 %v1823_v36 }
 0x27c   : > { %v1063_v46 = vadd.f32 %v987_v49, %v709_v52  ;;  %v2051_v49 = vrot.slane %v2050_v39, 1 }
 0x27d   : > { %v4719_v7 = vpop.xlane.xlu1 %1898 }
 0x27e   : > { %v1341_v37 = vpop.f32.mrf.mxu2  ;;  %v2060_v17 = vmax.f32 %v4717_v10, %v4719_v7  ;;  %v2052_v13 = vmax.f32 %v2050_v39, %v2051_v49 }
 0x27f   : > { %v4723_v40 = vadd.f32 %v1341_v37, %v1063_v46  ;;  %v1647_v43 = vpop.f32.mrf.mxu3 }
 0x280   : > { %v3362_v53 = vpop.eup %3361  ;;  %v2061_v27 = vrot.slane %v2060_v17, 4  ;;  %v1648_v11 = vadd.f32 %v4694_v45, %v1647_v43  ;;  %v2220_v39 = vsub.f32 %v4658_v33, %v2052_v13 }
 0x281   : > { %v5308_v58 = vmax.f32 %v4723_v40, 0.0  ;;  %v1824_v0 = vmul.f32 %v4700_v31, %v3362_v53  ;;  %v633_v12 = vpop.f32.mrf.mxu0  ;;  %v2218_v53 = vsub.f32 %v4655_v28, %v2045_v44 }
 0x282   : > { %v990_v26 = vpop.f32.mrf.mxu1  ;;  %v2062_v41 = vmax.f32 %v2060_v17, %v2061_v27  ;;  %v710_v42 = vadd.f32 %v4524_v48, %v633_v12  ;;  %3363 = vtanh.f32 %v1648_v11 }
 0x283   : > { %1928 = vadd.xlane.f32.xlu0 %v1824_v0  ;;  %1697 = vmatmul.f32.gmra.mxu3 %v5308_v58  ;;  %v2059_v0 = vmax.f32 %v2057_v4, %v2058_v57  ;;  %v2300_v28 = vmul.f32 1.442695, %v2218_v53  ;;  %v2221_v4 = vsub.f32 %v4679_v51, %v2052_v13 }
 0x284   : > { %v2063_v36 = vrot.slane %v2062_v41, 2  ;;  %v1064_v52 = vadd.f32 %v990_v26, %v710_v42  ;;  %v2298_v42 = vmul.f32 1.442695, %v2217_v54 }
 0x285   : > { %v4732_v8 = vpop.xlane.xlu2 %1900  ;;  %v2223_v54 = vsub.f32 %v4682_v14, %v2059_v0 }
 0x286   : > { %v1344_v46 = vpop.f32.mrf.mxu2  ;;  %v2064_v2 = vmax.f32 %v2062_v41, %v2063_v36  ;;  %v2219_v41 = vsub.f32 %v4664_v20, %v2045_v44 }
 0x287   : > { %v4735_v37 = vadd.f32 %v1344_v46, %v1064_v52  ;;  %v1650_v17 = vpop.f32.mrf.mxu3  ;;  %v2222_v52 = vsub.f32 %v4689_v15, %v2059_v0 }
 0x288   : > { %v1651_v43 = vadd.f32 %v4694_v45, %v1650_v17  ;;  %v2065_v6 = vrot.slane %v2064_v2, 1  ;;  %v3364_v11 = vpop.eup %3363  ;;  %v2302_v44 = vmul.f32 1.442695, %v2219_v41  ;;  %v2304_v17 = vmul.f32 1.442695, %v2220_v39 }
 0x289   : > { %v5307_v27 = vmax.f32 %v4735_v37, 0.0  ;;  %v636_v12 = vpop.f32.mrf.mxu0  ;;  %v1825_v56 = vmul.f32 %v4700_v31, %v3364_v11  ;;  %v2308_v53 = vmul.f32 1.442695, %v2222_v52 }
 0x28a   : > { %3365 = vtanh.f32 %v1651_v43  ;;  %v993_v26 = vpop.f32.mrf.mxu1  ;;  %v711_v59 = vadd.f32 %v4524_v48, %v636_v12  ;;  %v2066_v49 = vmax.f32 %v2064_v2, %v2065_v6  ;;  %v2306_v43 = vmul.f32 1.442695, %v2221_v4 }
 0x28b   : > { %1700 = vmatmul.f32.gmra.mxu3 %v5307_v27  ;;  %1930 = vadd.xlane.f32.xlu1 %v1825_v56  ;;  %3367 = vpow2.f32 %v2296_v30 }
 0x28c   : > { %v1065_v36 = vadd.f32 %v993_v26, %v711_v59  ;;  %3369 = vpow2.f32 %v2298_v42  ;;  %v2224_v51 = vsub.f32 %v4717_v10, %v2066_v49  ;;  %v2225_v14 = vsub.f32 %v4719_v7, %v2066_v49 }
 0x28d   : > { %v4748_v57 = vpop.xlane.xlu2 %1902  ;;  %3371 = vpow2.f32 %v2300_v28  ;;  %v2310_v10 = vmul.f32 1.442695, %v2223_v54 }
 0x28e   : > { %v1347_v61 = vpop.f32.mrf.mxu2  ;;  %v2067_v33 = vmax.f32 %v4732_v8, %v4748_v57  ;;  %v2312_v59 = vmul.f32 1.442695, %v2224_v51  ;;  %v2314_v49 = vmul.f32 1.442695, %v2225_v14 }
 0x28f   : > { %v1653_v46 = vpop.f32.mrf.mxu3  ;;  %v4753_v2 = vadd.f32 %v1347_v61, %v1065_v36 }
 0x290   : > { %v3366_v20 = vpop.eup %3365  ;;  %v1654_v15 = vadd.f32 %v4694_v45, %v1653_v46  ;;  %v2068_v13 = vrot.slane %v2067_v33, 4 }
 0x291   : > { %v5306_v6 = vmax.f32 %v4753_v2, 0.0  ;;  %v639_v11 = vpop.f32.mrf.mxu0  ;;  %v1826_v0 = vmul.f32 %v4700_v31, %v3366_v20  ;;  %v4761_v26 = vpop.eup %3367 }
 0x292   : > { %v996_v30 = vpop.f32.mrf.mxu1  ;;  %3373 = vtanh.f32 %v1654_v15  ;;  %v712_v12 = vadd.f32 %v4524_v48, %v639_v11  ;;  %v2069_v42 = vmax.f32 %v2067_v33, %v2068_v13  ;;  %v4765_v56 = vpop.eup %3369 }
 0x293   : > { %3375 = vpow2.f32 %v2302_v44  ;;  %1703 = vmatmul.f32.gmra.mxu3 %v5306_v6  ;;  %1932 = vadd.xlane.f32.xlu0 %v1826_v0  ;;  %v4767_v39 = vpop.eup %3371 }
 0x294   : > { %3377 = vpow2.f32 %v2304_v17  ;;  %v1066_v41 = vadd.f32 %v996_v30, %v712_v12  ;;  %v2070_v7 = vrot.slane %v2069_v42, 2  ;;  %v2448_v30 = vadd.f32 %v4765_v56, %v4761_v26 }
 0x295   : > { %3379 = vpow2.f32 %v2306_v43 }
 0x296   : > { %v1350_v28 = vpop.f32.mrf.mxu2  ;;  %3381 = vpow2.f32 %v2308_v53  ;;  %v2071_v52 = vmax.f32 %v2069_v42, %v2070_v7  ;;  %v4791_v42 = vpop.xlane.xlu1 %1904 }
 0x297   : > { %v4769_v36 = vadd.f32 %v1350_v28, %v1066_v41  ;;  %v1656_v4 = vpop.f32.mrf.mxu3  ;;  %3383 = vpow2.f32 %v2310_v10 }
 0x298   : > { %v1657_v61 = vadd.f32 %v4694_v45, %v1656_v4  ;;  %v3374_v46 = vpop.eup %3373  ;;  %3385 = vpow2.f32 %v2312_v59  ;;  %v2072_v54 = vrot.slane %v2071_v52, 1 }
 0x299   : > { %v5305_v20 = vmax.f32 %v4769_v36, 0.0  ;;  %v4773_v44 = vpop.eup %3375  ;;  %v1827_v33 = vmul.f32 %v4700_v31, %v3374_v46  ;;  %v642_v17 = vpop.f32.mrf.mxu0 }
 0x29a   : > { %3387 = vtanh.f32 %v1657_v61  ;;  %v4776_v51 = vpop.eup %3377  ;;  %v713_v15 = vadd.f32 %v4524_v48, %v642_v17  ;;  %v999_v43 = vpop.f32.mrf.mxu1  ;;  %v2073_v13 = vmax.f32 %v2071_v52, %v2072_v54  ;;  %v2455_v7 = vadd.f32 %v4773_v44, %v4767_v39 }
 0x29b   : > { %3389 = vpow2.f32 %v2314_v49  ;;  %v4779_v53 = vpop.eup %3379  ;;  %1934 = vadd.xlane.f32.xlu1 %v1827_v33  ;;  %1706 = vmatmul.f32.gmra.mxu3 %v5305_v20  ;;  %v2449_v54 = vrot.slane %v2448_v30, 4 }
 0x29c   : > { %v4783_v11 = vpop.eup %3381  ;;  %v1067_v14 = vadd.f32 %v999_v43, %v713_v15  ;;  %v2226_v12 = vsub.f32 %v4732_v8, %v2073_v13  ;;  %v2227_v10 = vsub.f32 %v4748_v57, %v2073_v13  ;;  %v2462_v33 = vadd.f32 %v4779_v53, %v4776_v51 }
 0x29d   : > { %v4787_v0 = vpop.eup %3383  ;;  %v2450_v22 = vadd.f32 %v2449_v54, %v2448_v30 }
 0x29e   : > { %v1353_v59 = vpop.f32.mrf.mxu2  ;;  %v4793_v41 = vpop.eup %3385  ;;  %v2316_v52 = vmul.f32 1.442695, %v2226_v12  ;;  %v2318_v61 = vmul.f32 1.442695, %v2227_v10  ;;  %v2456_v12 = vrot.slane %v2455_v7, 4  ;;  %v2469_v10 = vadd.f32 %v4787_v0, %v4783_v11 }
 0x29f   : > { %v4797_v28 = vpop.xlane.xlu2 %1906  ;;  %v1659_v49 = vpop.f32.mrf.mxu3  ;;  %v4801_v8 = vadd.f32 %v1353_v59, %v1067_v14 }
 0x2a0   : > { %v3388_v4 = vpop.eup %3387  ;;  %v2074_v46 = vmax.f32 %v4791_v42, %v4797_v28  ;;  %3391 = vpow2.f32 %v2316_v52  ;;  %v1660_v43 = vadd.f32 %v4694_v45, %v1659_v49  ;;  %v2463_v49 = vrot.slane %v2462_v33, 4 }
 0x2a1   : > { %v4803_v57 = vpop.eup %3389  ;;  %v5315_v15 = vmax.f32 %v4801_v8, 0.0  ;;  %v645_v13 = vpop.f32.mrf.mxu0  ;;  %3393 = vpow2.f32 %v2318_v61  ;;  %v1828_v14 = vmul.f32 %v4700_v31, %v3388_v4  ;;  %v2457_v61 = vadd.f32 %v2456_v12, %v2455_v7 }
 0x2a2   : > { %v2075_v17 = vrot.slane %v2074_v46, 4  ;;  %v1002_v59 = vpop.f32.mrf.mxu1  ;;  %v2476_v20 = vadd.f32 %v4803_v57, %v4793_v41  ;;  %3395 = vtanh.f32 %v1660_v43  ;;  %v714_v52 = vadd.f32 %v4524_v48, %v645_v13 }
 0x2a3   : > { %1709 = vmatmul.f32.gmra.mxu3 %v5315_v15  ;;  %1936 = vadd.xlane.f32.xlu0 %v1828_v14  ;;  %v2470_v32 = vrot.slane %v2469_v10, 4  ;;  %v2464_v43 = vadd.f32 %v2463_v49, %v2462_v33  ;;  %v2451_v7 = vrot.slane %v2450_v22, 2 }
 0x2a4   : > { %v2076_v6 = vmax.f32 %v2074_v46, %v2075_v17  ;;  %v1068_v58 = vadd.f32 %v1002_v59, %v714_v52  ;;  %v2477_v55 = vrot.slane %v2476_v20, 4 }
 0x2a5   : > { %v2471_v54 = vadd.f32 %v2470_v32, %v2469_v10  ;;  %v2465_v33 = vrot.slane %v2464_v43, 2 }
 0x2a6   : > { %v2077_v27 = vrot.slane %v2076_v6, 2  ;;  %v1356_v24 = vpop.f32.mrf.mxu2  ;;  %v4817_v18 = vpop.eup %3391 }
 0x2a7   : > { %v1662_v4 = vpop.f32.mrf.mxu3  ;;  %v4819_v46 = vadd.f32 %v1356_v24, %v1068_v58  ;;  %v4822_v17 = vpop.eup %3393  ;;  %v2478_v24 = vadd.f32 %v2477_v55, %v2476_v20 }
 0x2a8   : > { %v2078_v35 = vmax.f32 %v2076_v6, %v2077_v27  ;;  %v1663_v48 = vadd.f32 %v4694_v45, %v1662_v4  ;;  %v3396_v13 = vpop.eup %3395  ;;  %v2483_v14 = vadd.f32 %v4822_v17, %v4817_v18  ;;  %v2458_v27 = vrot.slane %v2457_v61, 2 }
 0x2a9   : > { %5368 = vst [vmem:[#allocation31_spill] sm:$0xff] %v4819_v46  ;;  %v5318_v30 = vmax.f32 %v4819_v46, 0.0  ;;  %v1829_v12 = vmul.f32 %v4700_v31, %v3396_v13  ;;  %v2472_v4 = vrot.slane %v2471_v54, 2  ;;  %v2452_v13 = vadd.f32 %v2451_v7, %v2450_v22 }
 0x2aa   : > { %v2079_v59 = vrot.slane %v2078_v35, 1  ;;  %3397 = vtanh.f32 %v1663_v48  ;;  %v2484_v58 = vrot.slane %v2483_v14, 4  ;;  %v2459_v23 = vadd.f32 %v2458_v27, %v2457_v61 }
 0x2ab   : > { %1712 = vmatmul.f32.gmra.mxu3 %v5318_v30  ;;  %1938 = vadd.xlane.f32.xlu1 %v1829_v12  ;;  %v2479_v55 = vrot.slane %v2478_v24, 2  ;;  %v2453_v30 = vrot.slane %v2452_v13, 1 }
 0x2ac   : > { %v2080_v6 = vmax.f32 %v2078_v35, %v2079_v59  ;;  %v2485_v52 = vadd.f32 %v2484_v58, %v2483_v14  ;;  %v1909_v35 = vpop.xlane.xlu1 %1908  ;;  %v2466_v58 = vadd.f32 %v2465_v33, %v2464_v43  ;;  %v2460_v22 = vrot.slane %v2459_v23, 1 }
 0x2ad   : > { %v2480_v60 = vadd.f32 %v2479_v55, %v2478_v24  ;;  %v2454_v43 = vadd.f32 %v2453_v30, %v2452_v13 }
 0x2ae   : > { %v2228_v49 = vsub.f32 %v4791_v42, %v2080_v6  ;;  %v2229_v15 = vsub.f32 %v4797_v28, %v2080_v6  ;;  %v4832_v48 = vpop.xlane.xlu2 %1910  ;;  %v2486_v59 = vrot.slane %v2485_v52, 2  ;;  %v2473_v28 = vadd.f32 %v2472_v4, %v2471_v54 }
 0x2af   : > { %v1665_v32 = vpop.f32.mrf.mxu3  ;;  %v2081_v12 = vmax.f32 %v1909_v35, %v4832_v48  ;;  %v2467_v27 = vrot.slane %v2466_v58, 1  ;;  %v2481_v33 = vrot.slane %v2480_v60, 1 }
 0x2b0   : > { %v3398_v10 = vpop.eup %3397  ;;  %v2320_v20 = vmul.f32 1.442695, %v2228_v49  ;;  %v2322_v5 = vmul.f32 1.442695, %v2229_v15  ;;  %v1666_v14 = vadd.f32 %v4694_v45, %v1665_v32  ;;  %v2487_v61 = vadd.f32 %v2486_v59, %v2485_v52 }
 0x2b1   : > { %v1830_v42 = vmul.f32 %v4700_v31, %v3398_v10  ;;  %v2082_v6 = vrot.slane %v2081_v12, 4  ;;  %v2474_v15 = vrot.slane %v2473_v28, 1  ;;  %v2468_v55 = vadd.f32 %v2467_v27, %v2466_v58 }
 0x2b2   : > { %3399 = vpow2.f32 %v2320_v20  ;;  %v2488_v4 = vrot.slane %v2487_v61, 1  ;;  %v2482_v30 = vadd.f32 %v2481_v33, %v2480_v60 }
 0x2b3   : > { %3401 = vpow2.f32 %v2322_v5  ;;  %v2083_v7 = vmax.f32 %v2081_v12, %v2082_v6  ;;  %1940 = vadd.xlane.f32.xlu1 %v1830_v42  ;;  %v2461_v5 = vadd.f32 %v2460_v22, %v2459_v23  ;;  %v2475_v20 = vadd.f32 %v2474_v15, %v2473_v28 }
 0x2b4   : > { %3403 = vtanh.f32 %v1666_v14 }
 0x2b5   : > { %v2084_v49 = vrot.slane %v2083_v7, 2 }
 0x2b7   : > { %v1668_v1 = vpop.f32.mrf.mxu3  ;;  %v2085_v24 = vmax.f32 %v2083_v7, %v2084_v49 }
 0x2b8   : > { %v4837_v46 = vpop.eup %3399  ;;  %v1669_v32 = vadd.f32 %v4694_v45, %v1668_v1  ;;  %v2489_v1 = vadd.f32 %v2488_v4, %v2487_v61 }
 0x2b9   : > { %v4840_v54 = vpop.eup %3401  ;;  %v2086_v59 = vrot.slane %v2085_v24, 1 }
 0x2ba   : > { %v3404_v10 = vpop.eup %3403  ;;  %v2490_v52 = vadd.f32 %v4840_v54, %v4837_v46  ;;  %3405 = vtanh.f32 %v1669_v32 }
 0x2bb   : > { %v1831_v12 = vmul.f32 %v4700_v31, %v3404_v10  ;;  %3407 = vrcp.f32 %v2454_v43  ;;  %v2087_v14 = vmax.f32 %v2085_v24, %v2086_v59 }
 0x2bc   : > { %v2491_v13 = vrot.slane %v2490_v52, 4  ;;  %3409 = vrcp.f32 %v2461_v5 }
 0x2bd   : > { %1942 = vadd.xlane.f32.xlu2 %v1831_v12  ;;  %3411 = vrcp.f32 %v2468_v55  ;;  %v2230_v42 = vsub.f32 %v1909_v35, %v2087_v14  ;;  %v2231_v58 = vsub.f32 %v4832_v48, %v2087_v14 }
 0x2be   : > { %v2492_v23 = vadd.f32 %v2491_v13, %v2490_v52  ;;  %3413 = vrcp.f32 %v2475_v20 }
 0x2bf   : > { %v1671_v6 = vpop.f32.mrf.mxu3  ;;  %3415 = vrcp.f32 %v2482_v30  ;;  %v2324_v27 = vmul.f32 1.442695, %v2230_v42  ;;  %v2326_v60 = vmul.f32 1.442695, %v2231_v58  ;;  %v5370_v58 = vmax.f32 %v4062_v34, 0.0  ;;  %v5378_v34 = vld [vmem:[#allocation5_spill] sm:$0xff] }
 0x2c0   : > { %v3406_v22 = vpop.eup %3405  ;;  %v2493_v28 = vrot.slane %v2492_v23, 2  ;;  %v1672_v7 = vadd.f32 %v4694_v45, %v1671_v6  ;;  %3417 = vrcp.f32 %v2489_v1 }
 0x2c1   : > { %v3408_v15 = vpop.eup %3407  ;;  %v1832_v61 = vmul.f32 %v4700_v31, %v3406_v22 }
 0x2c2   : > { %v2494_v49 = vadd.f32 %v2493_v28, %v2492_v23  ;;  %3419 = vtanh.f32 %v1672_v7  ;;  %v3410_v43 = vpop.eup %3409  ;;  %v2664_v24 = vmul.f32 %v3408_v15, %v4761_v26  ;;  %v2665_v30 = vmul.f32 %v3408_v15, %v4765_v56  ;;  %v5372_v28 = vld [vmem:[#allocation3_spill] sm:$0xff] }
 0x2c3   : > { %3421 = vpow2.f32 %v2324_v27  ;;  %v3412_v33 = vpop.eup %3411  ;;  %1944 = vadd.xlane.f32.xlu0 %v1832_v61  ;;  %v2666_v52 = vmul.f32 %v3410_v43, %v4767_v39  ;;  %v2667_v20 = vmul.f32 %v3410_v43, %v4773_v44  ;;  %v5373_v7 = vmax.f32 %v5372_v28, 0.0  ;;  %v5374_v27 = vld [vmem:[#allocation4_spill] sm:$0xff] }
 0x2c4   : > { %v2495_v35 = vrot.slane %v2494_v49, 1  ;;  %3423 = vpow2.f32 %v2326_v60  ;;  %v3414_v48 = vpop.eup %3413  ;;  %v2668_v13 = vmul.f32 %v3412_v33, %v4776_v51  ;;  %v2669_v1 = vmul.f32 %v3412_v33, %v4779_v53 }
 0x2c5   : > { %v3416_v32 = vpop.eup %3415  ;;  %v2670_v23 = vmul.f32 %v3414_v48, %v4783_v11  ;;  %v2671_v39 = vmul.f32 %v3414_v48, %v4787_v0  ;;  %v5369_v51 = vmax.f32 %v4051_v63, 0.0  ;;  %v2731_v6 = vmul.f32 %v2667_v20, %v5370_v58  ;;  %v5376_v63 = vld [vmem:[#allocation2_spill] sm:$0xff] }
 0x2c6   : > { %v2496_v5 = vadd.f32 %v2495_v35, %v2494_v49  ;;  %v3418_v4 = vpop.eup %3417  ;;  %v2672_v44 = vmul.f32 %v3416_v32, %v4793_v41  ;;  %v2673_v42 = vmul.f32 %v3416_v32, %v4803_v57  ;;  %v5371_v0 = vmax.f32 %v4022_v9, 0.0  ;;  %v5388_v58 = vld [vmem:[#allocation10_spill] sm:$0xff] }
 0x2c7   : > { %v1674_v10 = vpop.f32.mrf.mxu3  ;;  %v2730_v53 = vmul.f32 %v2666_v52, %v5369_v51  ;;  %v2674_v22 = vmul.f32 %v3418_v4, %v4817_v18  ;;  %v2675_v11 = vmul.f32 %v3418_v4, %v4822_v17  ;;  %v2732_v57 = vmul.f32 %v2668_v13, %v5373_v7  ;;  %v5380_v18 = vld [vmem:[#allocation6_spill] sm:$0xff]  ;;  %v5390_v7 = vld [vmem:[#allocation11_spill] sm:$0xff] }
 0x2c8   : > { %v3420_v55 = vpop.eup %3419  ;;  %3425 = vrcp.f32 %v2496_v5  ;;  %v1675_v59 = vadd.f32 %v4694_v45, %v1674_v10  ;;  %v2728_v41 = vmul.f32 %v2664_v24, %v5371_v0  ;;  %v5375_v60 = vmax.f32 %v5374_v27, 0.0  ;;  %v5382_v5 = vld [vmem:[#allocation7_spill] sm:$0xff]  ;;  %v5384_v24 = vld [vmem:[#allocation8_spill] sm:$0xff] }
 0x2c9   : > { %v4852_v12 = vpop.eup %3421  ;;  %v1833_v14 = vmul.f32 %v4700_v31, %v3420_v55  ;;  %v5377_v43 = vmax.f32 %v5376_v63, 0.0  ;;  %v5379_v35 = vmax.f32 %v5378_v34, 0.0  ;;  %v5381_v32 = vmax.f32 %v5380_v18, 0.0 }
 0x2ca   : > { %v4858_v26 = vpop.eup %3423  ;;  %3427 = vtanh.f32 %v1675_v59  ;;  %v2733_v15 = vmul.f32 %v2669_v1, %v5375_v60  ;;  %v5383_v9 = vmax.f32 %v5382_v5, 0.0  ;;  %v5385_v10 = vmax.f32 %v5384_v24, 0.0  ;;  %v5392_v60 = vld [vmem:[#allocation12_spill] sm:$0xff] }
 0x2cb   : > { %v2497_v56 = vadd.f32 %v4858_v26, %v4852_v12  ;;  %1946 = vadd.xlane.f32.xlu1 %v1833_v14  ;;  %v2729_v33 = vmul.f32 %v2665_v30, %v5377_v43  ;;  %v2734_v48 = vmul.f32 %v2670_v23, %v5379_v35  ;;  %v2735_v17 = vmul.f32 %v2671_v39, %v5381_v32  ;;  %v5386_v14 = vld [vmem:[#allocation9_spill] sm:$0xff] }
 0x2cc   : > { %v2736_v4 = vmul.f32 %v2672_v44, %v5383_v9  ;;  %v2737_v55 = vmul.f32 %v2673_v42, %v5385_v10  ;;  %v2839_v30 = vadd.f32 %v2731_v6, %v2730_v53  ;;  %v5387_v51 = vmax.f32 %v5386_v14, 0.0 }
 0x2cd   : > { %v2498_v49 = vrot.slane %v2497_v56, 4  ;;  %v5389_v0 = vmax.f32 %v5388_v58, 0.0  ;;  %v2846_v44 = vadd.f32 %v2733_v15, %v2732_v57  ;;  %v5391_v27 = vmax.f32 %v5390_v7, 0.0 }
 0x2ce   : > { %v3426_v61 = vpop.eup %3425  ;;  %v2738_v23 = vmul.f32 %v2674_v22, %v5387_v51  ;;  %v2860_v6 = vadd.f32 %v2737_v55, %v2736_v4  ;;  %v2840_v22 = vrot.slane %v2839_v30, 4 }
 0x2cf   : > { %v2676_v52 = vmul.f32 %v3426_v61, %v4837_v46  ;;  %v2677_v20 = vmul.f32 %v3426_v61, %v4840_v54  ;;  %v2499_v59 = vadd.f32 %v2498_v49, %v2497_v56  ;;  %v1677_v13 = vpop.f32.mrf.mxu3  ;;  %v2739_v39 = vmul.f32 %v2675_v11, %v5389_v0 }
 0x2d0   : > { %v3428_v1 = vpop.eup %3427  ;;  %v1678_v28 = vadd.f32 %v4694_v45, %v1677_v13  ;;  %v5393_v46 = vmax.f32 %v5392_v60, 0.0  ;;  %v2832_v56 = vadd.f32 %v2729_v33, %v2728_v41  ;;  %v2853_v49 = vadd.f32 %v2735_v17, %v2734_v48  ;;  %v4904_v60 = vpop.xlane.xlu2 %1916 }
 0x2d1   : > { %v2740_v42 = vmul.f32 %v2676_v52, %v5391_v27  ;;  %v2500_v54 = vrot.slane %v2499_v59, 2  ;;  %v1834_v53 = vmul.f32 %v4700_v31, %v3428_v1  ;;  %v2867_v43 = vadd.f32 %v2739_v39, %v2738_v23 }
 0x2d2   : > { %v2741_v63 = vmul.f32 %v2677_v20, %v5393_v46  ;;  %3429 = vtanh.f32 %v1678_v28  ;;  %v2847_v11 = vrot.slane %v2846_v44, 4  ;;  %v2833_v15 = vrot.slane %v2832_v56, 4 }
 0x2d3   : > { %v2501_v61 = vadd.f32 %v2500_v54, %v2499_v59  ;;  %1948 = vadd.xlane.f32.xlu2 %v1834_v53  ;;  %v2854_v35 = vrot.slane %v2853_v49, 4  ;;  %v2861_v18 = vrot.slane %v2860_v6, 4  ;;  %v2841_v9 = vadd.f32 %v2840_v22, %v2839_v30 }
 0x2d4   : > { %v2874_v34 = vadd.f32 %v2741_v63, %v2740_v42  ;;  %v2868_v24 = vrot.slane %v2867_v43, 4  ;;  %v2848_v33 = vadd.f32 %v2847_v11, %v2846_v44  ;;  %v2834_v4 = vadd.f32 %v2833_v15, %v2832_v56  ;;  %v5394_v56 = vld [vmem:[#allocation13_spill] sm:$0xff]  ;;  %v4911_v11 = vpop.xlane.xlu1 %1914  ;;  %v4914_v15 = vpop.xlane.xlu0 %1912 }
 0x2d5   : > { %v2502_v57 = vrot.slane %v2501_v61, 1  ;;  %v2855_v10 = vadd.f32 %v2854_v35, %v2853_v49  ;;  %v2862_v55 = vadd.f32 %v2861_v18, %v2860_v6  ;;  %v2842_v20 = vrot.slane %v2841_v9, 2  ;;  %v5396_v6 = vld [vmem:[#allocation14_spill] sm:$0xff] }
 0x2d6   : > { %v2875_v48 = vrot.slane %v2874_v34, 4  ;;  %v2869_v59 = vadd.f32 %v2868_v24, %v2867_v43  ;;  %v2849_v13 = vrot.slane %v2848_v33, 2  ;;  %v2835_v14 = vrot.slane %v2834_v4, 2 }
 0x2d7   : > { %v2503_v32 = vadd.f32 %v2502_v57, %v2501_v61  ;;  %v1680_v5 = vpop.f32.mrf.mxu3  ;;  %v2856_v30 = vrot.slane %v2855_v10, 2  ;;  %v2863_v23 = vrot.slane %v2862_v55, 2  ;;  %v2843_v39 = vadd.f32 %v2842_v20, %v2841_v9 }
 0x2d8   : > { %v1681_v41 = vadd.f32 %v4694_v45, %v1680_v5  ;;  %v3430_v17 = vpop.eup %3429  ;;  %v2876_v1 = vadd.f32 %v2875_v48, %v2874_v34  ;;  %v2870_v28 = vrot.slane %v2869_v59, 2  ;;  %v2850_v27 = vadd.f32 %v2849_v13, %v2848_v33 }
 0x2d9   : > { %3431 = vrcp.f32 %v2503_v32  ;;  %v1835_v52 = vmul.f32 %v4700_v31, %v3430_v17  ;;  %v2836_v63 = vadd.f32 %v2835_v14, %v2834_v4  ;;  %v2857_v54 = vadd.f32 %v2856_v30, %v2855_v10 }
 0x2da   : > { %3433 = vtanh.f32 %v1681_v41  ;;  %v2877_v42 = vrot.slane %v2876_v1, 2  ;;  %v5395_v49 = vmax.f32 %v5394_v56, 0.0  ;;  %v5397_v61 = vmax.f32 %v5396_v6, 0.0 }
 0x2db   : > { %1950 = vadd.xlane.f32.xlu0 %v1835_v52  ;;  %v2864_v43 = vadd.f32 %v2863_v23, %v2862_v55  ;;  %v2871_v34 = vadd.f32 %v2870_v28, %v2869_v59  ;;  %v2851_v35 = vrot.slane %v2850_v27, 1  ;;  %v2837_v32 = vrot.slane %v2836_v63, 1 }
 0x2dc   : > { %v2878_v18 = vadd.f32 %v2877_v42, %v2876_v1  ;;  %v2858_v5 = vrot.slane %v2857_v54, 1  ;;  %v4919_v30 = vpop.xlane.xlu1 %1920 }
 0x2dd   : > { %v2865_v24 = vrot.slane %v2864_v43, 1  ;;  %v2872_v48 = vrot.slane %v2871_v34, 1  ;;  %v2852_v10 = vadd.f32 %v2851_v35, %v2850_v27  ;;  %v2838_v59 = vadd.f32 %v2837_v32, %v2836_v63 }
 0x2de   : > { %v2879_v55 = vrot.slane %v2878_v18, 1  ;;  %v4917_v52 = vpop.xlane.xlu2 %1922  ;;  %v2859_v13 = vadd.f32 %v2858_v5, %v2857_v54 }
 0x2df   : > { %v3432_v51 = vpop.eup %3431  ;;  %v1683_v58 = vpop.f32.mrf.mxu3  ;;  %v2866_v1 = vadd.f32 %v2865_v24, %v2864_v43 }
 0x2e0   : > { %v3434_v0 = vpop.eup %3433  ;;  %v2678_v44 = vmul.f32 %v3432_v51, %v4852_v12  ;;  %v2679_v7 = vmul.f32 %v3432_v51, %v4858_v26  ;;  %v1684_v46 = vadd.f32 %v4694_v45, %v1683_v58  ;;  %v2844_v26 = vrot.slane %v2843_v39, 1 }
 0x2e1   : > { %v1836_v12 = vmul.f32 %v4700_v31, %v3434_v0  ;;  %v2873_v58 = vadd.f32 %v2872_v48, %v2871_v34 }
 0x2e2   : > { %v2742_v53 = vmul.f32 %v2678_v44, %v5395_v49  ;;  %v2743_v22 = vmul.f32 %v2679_v7, %v5397_v61  ;;  %3435 = vtanh.f32 %v1684_v46  ;;  %v2845_v33 = vadd.f32 %v2844_v26, %v2843_v39  ;;  %v4923_v39 = vpop.xlane.xlu0 %1918 }
 0x2e3   : > { %1952 = vadd.xlane.f32.xlu0 %v1836_v12  ;;  %v2880_v44 = vadd.f32 %v2879_v55, %v2878_v18  ;;  %v2088_v7 = vmax.f32 %v4914_v15, %v4911_v11  ;;  %v2095_v63 = vmax.f32 %v4904_v60, %v4923_v39  ;;  %v2102_v26 = vmax.f32 %v4919_v30, %v4917_v52 }
 0x2e4   : > { %v2881_v57 = vadd.f32 %v2743_v22, %v2742_v53  ;;  %v3062_v23 = vsel %vm3048_vm0, %v2845_v33, %v2838_v59 }
 0x2e5   : > { %v3063_v28 = vsel %vm3050_vm1, %v2852_v10, %v3062_v23  ;;  %v2089_v22 = vrot.slane %v2088_v7, 4  ;;  %v2096_v34 = vrot.slane %v2095_v63, 4  ;;  %v2103_v5 = vrot.slane %v2102_v26, 4 }
 0x2e6   : > { %v2882_v9 = vrot.slane %v2881_v57, 4  ;;  %v3064_v27 = vsel %vm3052_vm2, %v2859_v13, %v3063_v28 }
 0x2e7   : > { %v1686_v41 = vpop.f32.mrf.mxu3  ;;  %v3065_v46 = vsel %vm3054_vm3, %v2866_v1, %v3064_v27  ;;  %v2090_v32 = vmax.f32 %v2088_v7, %v2089_v22  ;;  %v2104_v10 = vmax.f32 %v2102_v26, %v2103_v5 }
 0x2e8   : > { %v2883_v17 = vadd.f32 %v2882_v9, %v2881_v57  ;;  %v1687_v4 = vadd.f32 %v4694_v45, %v1686_v41  ;;  %v3436_v20 = vpop.eup %3435  ;;  %v3066_v49 = vsel %vm3056_vm4, %v2873_v58, %v3065_v46  ;;  %v4941_v57 = vpop.xlane.xlu1 %1924  ;;  %v2097_v9 = vmax.f32 %v2095_v63, %v2096_v34 }
 0x2e9   : > { %v1837_v51 = vmul.f32 %v4700_v31, %v3436_v20  ;;  %v3067_v61 = vsel %vm3058_vm5, %v2880_v44, %v3066_v49  ;;  %v2105_v13 = vrot.slane %v2104_v10, 2 }
 0x2ea   : > { %v2884_v14 = vrot.slane %v2883_v17, 2  ;;  %3437 = vtanh.f32 %v1687_v4  ;;  %v2098_v55 = vrot.slane %v2097_v9, 2 }
 0x2eb   : > { %1954 = vadd.xlane.f32.xlu1 %v1837_v51  ;;  %v2106_v27 = vmax.f32 %v2104_v10, %v2105_v13 }
 0x2ec   : > { %v2885_v0 = vadd.f32 %v2884_v14, %v2883_v17  ;;  %v2091_v17 = vrot.slane %v2090_v32, 2  ;;  %v2099_v14 = vmax.f32 %v2097_v9, %v2098_v55 }
 0x2ee   : > { %v2886_v42 = vrot.slane %v2885_v0, 1  ;;  %v4935_v43 = vpop.xlane.xlu2 %1926  ;;  %v2092_v59 = vmax.f32 %v2090_v32, %v2091_v17  ;;  %v2100_v46 = vrot.slane %v2099_v14, 1 }
 0x2ef   : > { %v1689_v54 = vpop.f32.mrf.mxu3  ;;  %v2109_v18 = vmax.f32 %v4941_v57, %v4935_v43 }
 0x2f0   : > { %v3438_v56 = vpop.eup %3437  ;;  %v2887_v53 = vadd.f32 %v2886_v42, %v2885_v0  ;;  %v1690_v6 = vadd.f32 %v4694_v45, %v1689_v54  ;;  %v2093_v44 = vrot.slane %v2092_v59, 1 }
 0x2f1   : > { %v1838_v35 = vmul.f32 %v4700_v31, %v3438_v56  ;;  %v2110_v33 = vrot.slane %v2109_v18, 4 }
 0x2f2   : > { %v3068_v12 = vsel %vm3060_vm6, %v2887_v53, %v3067_v61  ;;  %3439 = vtanh.f32 %v1690_v6  ;;  %v2094_v56 = vmax.f32 %v2092_v59, %v2093_v44  ;;  %v2107_v53 = vrot.slane %v2106_v27, 1 }
 0x2f3   : > { %3088 = vst [vmem:[%s4546_s25 + $0x28] sm:$0xff] %v3068_v12  ;;  %1956 = vadd.xlane.f32.xlu2 %v1838_v35  ;;  %v2111_v20 = vmax.f32 %v2109_v18, %v2110_v33  ;;  %v2101_v6 = vmax.f32 %v2099_v14, %v2100_v46 }
 0x2f4   : > { %v2232_v35 = vsub.f32 %v4914_v15, %v2094_v56  ;;  %v2233_v5 = vsub.f32 %v4911_v11, %v2094_v56  ;;  %v2108_v9 = vmax.f32 %v2106_v27, %v2107_v53 }
 0x2f5   : > { %v2112_v23 = vrot.slane %v2111_v20, 2  ;;  %v2235_v33 = vsub.f32 %v4923_v39, %v2101_v6 }
 0x2f6   : > { %v4948_v58 = vpop.xlane.xlu0 %1928  ;;  %v2328_v17 = vmul.f32 1.442695, %v2232_v35 }
 0x2f7   : > { %v1692_v24 = vpop.f32.mrf.mxu3  ;;  %v2113_v54 = vmax.f32 %v2111_v20, %v2112_v23  ;;  %v2334_v13 = vmul.f32 1.442695, %v2235_v33 }
 0x2f8   : > { %v3440_v41 = vpop.eup %3439  ;;  %v1693_v48 = vadd.f32 %v4694_v45, %v1692_v24  ;;  %v2234_v24 = vsub.f32 %v4904_v60, %v2101_v6 }
 0x2f9   : > { %v1839_v4 = vmul.f32 %v4700_v31, %v3440_v41  ;;  %v2114_v26 = vrot.slane %v2113_v54, 1 }
 0x2fa   : > { %3441 = vtanh.f32 %v1693_v48  ;;  %v2332_v55 = vmul.f32 1.442695, %v2234_v24 }
 0x2fb   : > { %1958 = vadd.xlane.f32.xlu0 %v1839_v4  ;;  %v2115_v48 = vmax.f32 %v2113_v54, %v2114_v26  ;;  %v2330_v4 = vmul.f32 1.442695, %v2233_v5 }
 0x2fd   : > { %v2238_v60 = vsub.f32 %v4941_v57, %v2115_v48  ;;  %v2239_v39 = vsub.f32 %v4935_v43, %v2115_v48  ;;  %v4976_v57 = vld [vmem:[%s5225_s5] ss:$0 sm:$0xff] }
 0x2fe   : > { %v4950_v0 = vpop.xlane.xlu1 %1930 }
 0x2ff   : > { %v1695_v1 = vpop.f32.mrf.mxu3  ;;  %v2116_v7 = vmax.f32 %v4948_v58, %v4950_v0  ;;  %v2340_v44 = vmul.f32 1.442695, %v2238_v60 }
 0x300   : > { %v3442_v51 = vpop.eup %3441  ;;  %v1696_v28 = vadd.f32 %v4694_v45, %v1695_v1  ;;  %v4969_v1 = vld [vmem:[%s5224_s4] ss:$0 sm:$0xff] }
 0x301   : > { %v1840_v42 = vmul.f32 %v4700_v31, %v3442_v51  ;;  %v2117_v63 = vrot.slane %v2116_v7, 4 }
 0x302   : > { %3443 = vtanh.f32 %v1696_v28 }
 0x303   : > { %1960 = vadd.xlane.f32.xlu2 %v1840_v42  ;;  %v2118_v49 = vmax.f32 %v2116_v7, %v2117_v63  ;;  %v2342_v42 = vmul.f32 1.442695, %v2239_v39 }
 0x305   : > { %v2119_v61 = vrot.slane %v2118_v49, 2 }
 0x306   : > { %v1933_v15 = vpop.xlane.xlu0 %1932 }
 0x307   : > { %v1698_v22 = vpop.f32.mrf.mxu3  ;;  %v2120_v18 = vmax.f32 %v2118_v49, %v2119_v61 }
 0x308   : > { %v3444_v12 = vpop.eup %3443  ;;  %v1699_v34 = vadd.f32 %v4694_v45, %v1698_v22  ;;  %v2236_v45 = vsub.f32 %v4919_v30, %v2108_v9 }
 0x309   : > { %v1841_v32 = vmul.f32 %v4700_v31, %v3444_v12  ;;  %v2121_v41 = vrot.slane %v2120_v18, 1  ;;  %v2237_v31 = vsub.f32 %v4917_v52, %v2108_v9 }
 0x30a   : > { %3445 = vtanh.f32 %v1699_v34  ;;  %v2336_v51 = vmul.f32 1.442695, %v2236_v45 }
 0x30b   : > { %1962 = vadd.xlane.f32.xlu0 %v1841_v32  ;;  %v2122_v10 = vmax.f32 %v2120_v18, %v2121_v41  ;;  %3447 = vpow2.f32 %v2328_v17  ;;  %v2338_v28 = vmul.f32 1.442695, %v2237_v31 }
 0x30c   : > { %3449 = vpow2.f32 %v2330_v4 }
 0x30d   : > { %v2240_v52 = vsub.f32 %v4948_v58, %v2122_v10  ;;  %3451 = vpow2.f32 %v2332_v55  ;;  %v2241_v7 = vsub.f32 %v4950_v0, %v2122_v10 }
 0x30e   : > { %v1935_v20 = vpop.xlane.xlu1 %1934  ;;  %3453 = vpow2.f32 %v2334_v13 }
 0x30f   : > { %v1701_v11 = vpop.f32.mrf.mxu3  ;;  %v2123_v14 = vmax.f32 %v1933_v15, %v1935_v20  ;;  %v2344_v58 = vmul.f32 1.442695, %v2240_v52  ;;  %v2346_v49 = vmul.f32 1.442695, %v2241_v7 }
 0x310   : > { %v3446_v59 = vpop.eup %3445  ;;  %v1702_v30 = vadd.f32 %v4969_v1, %v1701_v11 }
 0x311   : > { %v2124_v23 = vrot.slane %v2123_v14, 4  ;;  %v1842_v43 = vmul.f32 %v4976_v57, %v3446_v59  ;;  %v4980_v63 = vpop.eup %3447 }
 0x312   : > { %3455 = vtanh.f32 %v1702_v30  ;;  %v4982_v56 = vpop.eup %3449 }
 0x313   : > { %v2125_v27 = vmax.f32 %v2123_v14, %v2124_v23  ;;  %1964 = vadd.xlane.f32.xlu2 %v1842_v43  ;;  %3457 = vpow2.f32 %v2336_v51  ;;  %v4985_v61 = vpop.eup %3451  ;;  %v2504_v48 = vadd.f32 %v4982_v56, %v4980_v63 }
 0x314   : > { %3459 = vpow2.f32 %v2338_v28  ;;  %v4987_v0 = vpop.eup %3453 }
 0x315   : > { %v2126_v46 = vrot.slane %v2125_v27, 2  ;;  %3461 = vpow2.f32 %v2340_v44  ;;  %v2505_v60 = vrot.slane %v2504_v48, 4 }
 0x316   : > { %3463 = vpow2.f32 %v2342_v42  ;;  %v1937_v45 = vpop.xlane.xlu0 %1936 }
 0x317   : > { %v1704_v54 = vpop.f32.mrf.mxu3  ;;  %v2127_v53 = vmax.f32 %v2125_v27, %v2126_v46  ;;  %3465 = vpow2.f32 %v2344_v58  ;;  %v2506_v44 = vadd.f32 %v2505_v60, %v2504_v48 }
 0x318   : > { %v1705_v6 = vadd.f32 %v4969_v1, %v1704_v54  ;;  %v3456_v12 = vpop.eup %3455 }
 0x319   : > { %v2128_v22 = vrot.slane %v2127_v53, 1  ;;  %v4989_v26 = vpop.eup %3457  ;;  %v1843_v35 = vmul.f32 %v4976_v57, %v3456_v12 }
 0x31a   : > { %3467 = vtanh.f32 %v1705_v6  ;;  %v4992_v18 = vpop.eup %3459 }
 0x31b   : > { %3469 = vpow2.f32 %v2346_v49  ;;  %v2129_v34 = vmax.f32 %v2127_v53, %v2128_v22  ;;  %v4994_v32 = vpop.eup %3461  ;;  %1966 = vadd.xlane.f32.xlu0 %v1843_v35  ;;  %v2518_v13 = vadd.f32 %v4992_v18, %v4989_v26 }
 0x31c   : > { %v4996_v24 = vpop.eup %3463 }
 0x31d   : > { %v2242_v5 = vsub.f32 %v1933_v15, %v2129_v34  ;;  %v2243_v9 = vsub.f32 %v1935_v20, %v2129_v34  ;;  %v4998_v33 = vpop.eup %3465  ;;  %v2511_v15 = vadd.f32 %v4987_v0, %v4985_v61  ;;  %v2525_v14 = vadd.f32 %v4996_v24, %v4994_v32 }
 0x31e   : > { %v1939_v10 = vpop.xlane.xlu1 %1938  ;;  %v2519_v23 = vrot.slane %v2518_v13, 4  ;;  %v2507_v34 = vrot.slane %v2506_v44, 2 }
 0x31f   : > { %v1707_v41 = vpop.f32.mrf.mxu3  ;;  %v2348_v17 = vmul.f32 1.442695, %v2242_v5  ;;  %v2350_v4 = vmul.f32 1.442695, %v2243_v9  ;;  %v2130_v11 = vmax.f32 %v1937_v45, %v1939_v10  ;;  %v2512_v51 = vrot.slane %v2511_v15, 4 }
 0x320   : > { %v1708_v55 = vadd.f32 %v4969_v1, %v1707_v41  ;;  %v3468_v31 = vpop.eup %3467  ;;  %v2526_v7 = vrot.slane %v2525_v14, 4  ;;  %v2520_v22 = vadd.f32 %v2519_v23, %v2518_v13 }
 0x321   : > { %v5003_v59 = vpop.eup %3469  ;;  %3471 = vpow2.f32 %v2348_v17  ;;  %v1844_v20 = vmul.f32 %v4976_v57, %v3468_v31  ;;  %v2131_v39 = vrot.slane %v2130_v11, 4  ;;  %v2513_v49 = vadd.f32 %v2512_v51, %v2511_v15 }
 0x322   : > { %3473 = vpow2.f32 %v2350_v4  ;;  %v2532_v30 = vadd.f32 %v5003_v59, %v4998_v33  ;;  %v2527_v35 = vadd.f32 %v2526_v7, %v2525_v14 }
 0x323   : > { %3475 = vtanh.f32 %v1708_v55  ;;  %v2132_v52 = vmax.f32 %v2130_v11, %v2131_v39  ;;  %1968 = vadd.xlane.f32.xlu0 %v1844_v20  ;;  %v2514_v48 = vrot.slane %v2513_v49, 2  ;;  %v2521_v55 = vrot.slane %v2520_v22, 2 }
 0x324   : > { %v2533_v46 = vrot.slane %v2532_v30, 4  ;;  %v2508_v11 = vadd.f32 %v2507_v34, %v2506_v44  ;;  %v2528_v15 = vrot.slane %v2527_v35, 2 }
 0x325   : > { %v2133_v27 = vrot.slane %v2132_v52, 2 }
 0x326   : > { %v2534_v41 = vadd.f32 %v2533_v46, %v2532_v30  ;;  %v1941_v60 = vpop.xlane.xlu1 %1940 }
 0x327   : > { %v1710_v28 = vpop.f32.mrf.mxu3  ;;  %v5014_v43 = vpop.eup %3471  ;;  %v2134_v6 = vmax.f32 %v2132_v52, %v2133_v27  ;;  %v2522_v27 = vadd.f32 %v2521_v55, %v2520_v22 }
 0x328   : > { %v1711_v42 = vadd.f32 %v4969_v1, %v1710_v28  ;;  %v5017_v58 = vpop.eup %3473  ;;  %v2535_v51 = vrot.slane %v2534_v41, 2  ;;  %v2515_v28 = vadd.f32 %v2514_v48, %v2513_v49 }
 0x329   : > { %v3476_v54 = vpop.eup %3475  ;;  %v2539_v53 = vadd.f32 %v5017_v58, %v5014_v43  ;;  %v2135_v9 = vrot.slane %v2134_v6, 1  ;;  %v2523_v34 = vrot.slane %v2522_v27, 1 }
 0x32a   : > { %3477 = vtanh.f32 %v1711_v42  ;;  %v1845_v12 = vmul.f32 %v4976_v57, %v3476_v54  ;;  %v2529_v54 = vadd.f32 %v2528_v15, %v2527_v35 }
 0x32b   : > { %v2540_v5 = vrot.slane %v2539_v53, 4  ;;  %v2136_v4 = vmax.f32 %v2134_v6, %v2135_v9 }
 0x32c   : > { %1970 = vadd.xlane.f32.xlu1 %v1845_v12  ;;  %v2516_v12 = vrot.slane %v2515_v28, 1  ;;  %v2530_v49 = vrot.slane %v2529_v54, 1 }
 0x32d   : > { %v2541_v17 = vadd.f32 %v2540_v5, %v2539_v53  ;;  %v2244_v20 = vsub.f32 %v1937_v45, %v2136_v4  ;;  %v2245_v52 = vsub.f32 %v1939_v10, %v2136_v4  ;;  %v2509_v45 = vrot.slane %v2508_v11, 1 }
 0x32e   : > { %v2536_v53 = vadd.f32 %v2535_v51, %v2534_v41  ;;  %v2517_v35 = vadd.f32 %v2516_v12, %v2515_v28  ;;  %v2524_v41 = vadd.f32 %v2523_v34, %v2522_v27 }
 0x32f   : > { %v1713_v31 = vpop.f32.mrf.mxu3  ;;  %v2542_v7 = vrot.slane %v2541_v17, 2  ;;  %v2352_v30 = vmul.f32 1.442695, %v2244_v20  ;;  %v2354_v42 = vmul.f32 1.442695, %v2245_v52  ;;  %v2510_v9 = vadd.f32 %v2509_v45, %v2508_v11 }
 0x330   : > { %v1943_v39 = vpop.xlane.xlu2 %1942  ;;  %v3478_v13 = vpop.eup %3477  ;;  %v1714_v14 = vadd.f32 %v4969_v1, %v1713_v31  ;;  %v2537_v22 = vrot.slane %v2536_v53, 1 }
 0x331   : > { %v2137_v23 = vmax.f32 %v1941_v60, %v1943_v39  ;;  %v1846_v44 = vmul.f32 %v4976_v57, %v3478_v13  ;;  %v2543_v10 = vadd.f32 %v2542_v7, %v2541_v17  ;;  %v2531_v13 = vadd.f32 %v2530_v49, %v2529_v54 }
 0x332   : > { %3479 = vtanh.f32 %v1714_v14  ;;  %v2538_v51 = vadd.f32 %v2537_v22, %v2536_v53 }
 0x333   : > { %v2138_v46 = vrot.slane %v2137_v23, 4  ;;  %3481 = vpow2.f32 %v2352_v30  ;;  %1972 = vadd.xlane.f32.xlu2 %v1846_v44  ;;  %v2544_v55 = vrot.slane %v2543_v10, 1 }
 0x334   : > { %3483 = vpow2.f32 %v2354_v42 }
 0x335   : > { %v2139_v6 = vmax.f32 %v2137_v23, %v2138_v46  ;;  %3485 = vrcp.f32 %v2510_v9  ;;  %v2545_v52 = vadd.f32 %v2544_v55, %v2543_v10  ;;  %v5398_v55 = vld [vmem:[#allocation17_spill] sm:$0xff] }
 0x336   : > { %3487 = vrcp.f32 %v2517_v35 }
 0x337   : > { %v2140_v1 = vrot.slane %v2139_v6, 2  ;;  %3489 = vrcp.f32 %v2524_v41 }
 0x338   : > { %v3480_v5 = vpop.eup %3479  ;;  %3491 = vrcp.f32 %v2531_v13  ;;  %v5402_v13 = vld [vmem:[#allocation19_spill] sm:$0xff] }
 0x339   : > { %v2141_v48 = vmax.f32 %v2139_v6, %v2140_v1  ;;  %v5024_v4 = vpop.eup %3481  ;;  %v1847_v31 = vmul.f32 %v4976_v57, %v3480_v5  ;;  %3493 = vrcp.f32 %v2538_v51  ;;  %v5404_v51 = vld [vmem:[#allocation20_spill] sm:$0xff] }
 0x33a   : > { %v5027_v15 = vpop.eup %3483  ;;  %3495 = vrcp.f32 %v2545_v52  ;;  %v5406_v52 = vld [vmem:[#allocation15_spill] sm:$0xff] }
 0x33b   : > { %v2142_v20 = vrot.slane %v2141_v48, 1  ;;  %v2546_v17 = vadd.f32 %v5027_v15, %v5024_v4  ;;  %1974 = vadd.xlane.f32.xlu0 %v1847_v31  ;;  %v3486_v42 = vpop.eup %3485 }
 0x33c   : > { %v3488_v46 = vpop.eup %3487  ;;  %v2680_v1 = vmul.f32 %v3486_v42, %v4980_v63  ;;  %v2681_v22 = vmul.f32 %v3486_v42, %v4982_v56 }
 0x33d   : > { %v2143_v11 = vmax.f32 %v2141_v48, %v2142_v20  ;;  %v2547_v23 = vrot.slane %v2546_v17, 4  ;;  %v3490_v44 = vpop.eup %3489 }
 0x33e   : > { %v3492_v45 = vpop.eup %3491  ;;  %v2684_v49 = vmul.f32 %v3490_v44, %v4989_v26  ;;  %v2685_v5 = vmul.f32 %v3490_v44, %v4992_v18  ;;  %v5399_v26 = vmax.f32 %v5398_v55, 0.0  ;;  %v5400_v18 = vld [vmem:[#allocation18_spill] sm:$0xff] }
 0x33f   : > { %v2246_v14 = vsub.f32 %v1941_v60, %v2143_v11  ;;  %v2247_v28 = vsub.f32 %v1943_v39, %v2143_v11  ;;  %v2548_v57 = vadd.f32 %v2547_v23, %v2546_v17  ;;  %v3494_v6 = vpop.eup %3493  ;;  %v2682_v60 = vmul.f32 %v3488_v46, %v4985_v61  ;;  %v5420_v55 = vld [vmem:[#allocation26_spill] sm:$0xff] }
 0x340   : > { %v3496_v12 = vpop.eup %3495  ;;  %v2683_v39 = vmul.f32 %v3488_v46, %v4987_v0  ;;  %v2686_v48 = vmul.f32 %v3492_v45, %v4994_v32  ;;  %v2687_v35 = vmul.f32 %v3492_v45, %v4996_v24  ;;  %v2688_v61 = vmul.f32 %v3494_v6, %v4998_v33  ;;  %v5412_v46 = vld [vmem:[#allocation22_spill] sm:$0xff] }
 0x341   : > { %v2356_v7 = vmul.f32 1.442695, %v2246_v14  ;;  %v2358_v30 = vmul.f32 1.442695, %v2247_v28  ;;  %v2549_v27 = vrot.slane %v2548_v57, 2  ;;  %v2689_v0 = vmul.f32 %v3494_v6, %v5003_v59  ;;  %v5408_v28 = vld [vmem:[#allocation16_spill] sm:$0xff] }
 0x342   : > { %v2746_v31 = vmul.f32 %v2682_v60, %v5399_v26  ;;  %v5401_v41 = vmax.f32 %v5400_v18, 0.0  ;;  %v2690_v56 = vmul.f32 %v3496_v12, %v5014_v43  ;;  %v2691_v32 = vmul.f32 %v3496_v12, %v5017_v58  ;;  %v5414_v58 = vld [vmem:[#allocation23_spill] sm:$0xff] }
 0x343   : > { %3497 = vpow2.f32 %v2356_v7  ;;  %v2550_v54 = vadd.f32 %v2549_v27, %v2548_v57  ;;  %v5403_v24 = vmax.f32 %v5402_v13, 0.0  ;;  %v5405_v33 = vmax.f32 %v5404_v51, 0.0  ;;  %v5422_v51 = vld [vmem:[#allocation27_spill] sm:$0xff] }
 0x344   : > { %3499 = vpow2.f32 %v2358_v30  ;;  %v2747_v20 = vmul.f32 %v2683_v39, %v5401_v41  ;;  %v5407_v23 = vmax.f32 %v5406_v52, 0.0  ;;  %v5409_v57 = vmax.f32 %v5408_v28, 0.0  ;;  %v5410_v30 = vld [vmem:[#allocation21_spill] sm:$0xff] }
 0x345   : > { %v2551_v53 = vrot.slane %v2550_v54, 1  ;;  %v2748_v17 = vmul.f32 %v2684_v49, %v5403_v24  ;;  %v2749_v11 = vmul.f32 %v2685_v5, %v5405_v33  ;;  %v5411_v27 = vmax.f32 %v5410_v30, 0.0  ;;  %v5418_v49 = vld [vmem:[#allocation25_spill] sm:$0xff]  ;;  %v5424_v33 = vld [vmem:[#allocation28_spill] sm:$0xff] }
 0x346   : > { %v2744_v14 = vmul.f32 %v2680_v1, %v5407_v23  ;;  %v2745_v7 = vmul.f32 %v2681_v22, %v5409_v57  ;;  %v5413_v43 = vmax.f32 %v5412_v46, 0.0  ;;  %v5415_v44 = vmax.f32 %v5414_v58, 0.0  ;;  %v5079_v57 = vpop.xlane.xlu0 %1944 }
 0x347   : > { %v2552_v10 = vadd.f32 %v2551_v53, %v2550_v54  ;;  %v2750_v42 = vmul.f32 %v2686_v48, %v5411_v27  ;;  %v5416_v53 = vld [vmem:[#allocation24_spill] sm:$0xff]  ;;  %v5419_v1 = vmax.f32 %v5418_v49, 0.0  ;;  %v5421_v22 = vmax.f32 %v5420_v55, 0.0 }
 0x348   : > { %v2751_v54 = vmul.f32 %v2687_v35, %v5413_v43  ;;  %v2752_v45 = vmul.f32 %v2688_v61, %v5415_v44  ;;  %v5417_v6 = vmax.f32 %v5416_v53, 0.0  ;;  %v2902_v18 = vadd.f32 %v2749_v11, %v2748_v17 }
 0x349   : > { %v5033_v34 = vpop.eup %3497  ;;  %3501 = vrcp.f32 %v2552_v10  ;;  %v2895_v10 = vadd.f32 %v2747_v20, %v2746_v31  ;;  %v2754_v5 = vmul.f32 %v2690_v56, %v5419_v1  ;;  %v2755_v26 = vmul.f32 %v2691_v32, %v5421_v22 }
 0x34a   : > { %v5038_v9 = vpop.eup %3499  ;;  %v2753_v12 = vmul.f32 %v2689_v0, %v5417_v6  ;;  %v2888_v13 = vadd.f32 %v2745_v7, %v2744_v14  ;;  %v2909_v61 = vadd.f32 %v2751_v54, %v2750_v42  ;;  %v5423_v0 = vmax.f32 %v5422_v51, 0.0 }
 0x34b   : > { %v2553_v63 = vadd.f32 %v5038_v9, %v5033_v34  ;;  %v5425_v31 = vmax.f32 %v5424_v33, 0.0  ;;  %v2896_v56 = vrot.slane %v2895_v10, 4  ;;  %v2923_v52 = vadd.f32 %v2755_v26, %v2754_v5 }
 0x34c   : > { %v2916_v24 = vadd.f32 %v2753_v12, %v2752_v45  ;;  %v2903_v23 = vrot.slane %v2902_v18, 4  ;;  %v2889_v11 = vrot.slane %v2888_v13, 4 }
 0x34d   : > { %v2554_v59 = vrot.slane %v2553_v63, 4  ;;  %v2897_v14 = vadd.f32 %v2896_v56, %v2895_v10  ;;  %v2924_v7 = vrot.slane %v2923_v52, 4 }
 0x34e   : > { %v2917_v28 = vrot.slane %v2916_v24, 4  ;;  %v2904_v30 = vadd.f32 %v2903_v23, %v2902_v18  ;;  %v2890_v42 = vadd.f32 %v2889_v11, %v2888_v13  ;;  %v5428_v13 = vld [vmem:[#allocation30_spill] sm:$0xff] }
 0x34f   : > { %v2555_v60 = vadd.f32 %v2554_v59, %v2553_v63  ;;  %v3502_v39 = vpop.eup %3501  ;;  %v2898_v54 = vrot.slane %v2897_v14, 2  ;;  %v2925_v58 = vadd.f32 %v2924_v7, %v2923_v52  ;;  %v5089_v52 = vpop.xlane.xlu1 %1946 }
 0x350   : > { %v2692_v48 = vmul.f32 %v3502_v39, %v5024_v4  ;;  %v2693_v35 = vmul.f32 %v3502_v39, %v5027_v15  ;;  %v2910_v4 = vrot.slane %v2909_v61, 4  ;;  %v2918_v43 = vadd.f32 %v2917_v28, %v2916_v24  ;;  %v5081_v39 = vpop.xlane.xlu0 %1950 }
 0x351   : > { %v2556_v41 = vrot.slane %v2555_v60, 2  ;;  %v2905_v44 = vrot.slane %v2904_v30, 2  ;;  %v2891_v53 = vrot.slane %v2890_v42, 2  ;;  %v2899_v49 = vadd.f32 %v2898_v54, %v2897_v14 }
 0x352   : > { %v2756_v63 = vmul.f32 %v2692_v48, %v5423_v0  ;;  %v2757_v20 = vmul.f32 %v2693_v35, %v5425_v31  ;;  %v2911_v46 = vadd.f32 %v2910_v4, %v2909_v61  ;;  %v2926_v1 = vrot.slane %v2925_v58, 2  ;;  %v5426_v48 = vld [vmem:[#allocation29_spill] sm:$0xff] }
 0x353   : > { %v2557_v59 = vadd.f32 %v2556_v41, %v2555_v60  ;;  %v2919_v60 = vrot.slane %v2918_v43, 2  ;;  %v2906_v55 = vadd.f32 %v2905_v44, %v2904_v30  ;;  %v2892_v26 = vadd.f32 %v2891_v53, %v2890_v42 }
 0x354   : > { %v2930_v32 = vadd.f32 %v2757_v20, %v2756_v63  ;;  %v2912_v6 = vrot.slane %v2911_v46, 2  ;;  %v5427_v35 = vmax.f32 %v5426_v48, 0.0  ;;  %v5429_v61 = vmax.f32 %v5428_v13, 0.0 }
 0x355   : > { %v2558_v17 = vrot.slane %v2557_v59, 1  ;;  %v2920_v51 = vadd.f32 %v2919_v60, %v2918_v43  ;;  %v2900_v0 = vrot.slane %v2899_v49, 1  ;;  %v2927_v63 = vadd.f32 %v2926_v1, %v2925_v58 }
 0x356   : > { %v2931_v27 = vrot.slane %v2930_v32, 4  ;;  %v2913_v18 = vadd.f32 %v2912_v6, %v2911_v46  ;;  %v2907_v31 = vrot.slane %v2906_v55, 1  ;;  %v2144_v53 = vmax.f32 %v5079_v57, %v5089_v52 }
 0x357   : > { %v2559_v15 = vadd.f32 %v2558_v17, %v2557_v59  ;;  %v2893_v59 = vrot.slane %v2892_v26, 1  ;;  %v2901_v23 = vadd.f32 %v2900_v0, %v2899_v49 }
 0x358   : > { %v2932_v45 = vadd.f32 %v2931_v27, %v2930_v32  ;;  %v2928_v32 = vrot.slane %v2927_v63, 1  ;;  %v2908_v11 = vadd.f32 %v2907_v31, %v2906_v55  ;;  %v5091_v28 = vpop.xlane.xlu0 %1952  ;;  %v1949_v27 = vpop.xlane.xlu2 %1948 }
 0x359   : > { %3503 = vrcp.f32 %v2559_v15  ;;  %v2894_v15 = vadd.f32 %v2893_v59, %v2892_v26  ;;  %v2151_v1 = vmax.f32 %v1949_v27, %v5081_v39 }
 0x35a   : > { %v2933_v22 = vrot.slane %v2932_v45, 2  ;;  %v2929_v46 = vadd.f32 %v2928_v32, %v2927_v63 }
 0x35b   : > { %v3069_v42 = vsel %vm3048_vm0, %v2901_v23, %v2894_v15  ;;  %v2152_v48 = vrot.slane %v2151_v1, 4 }
 0x35c   : > { %v2934_v20 = vadd.f32 %v2933_v22, %v2932_v45  ;;  %v3070_v54 = vsel %vm3050_vm1, %v2908_v11, %v3069_v42  ;;  %v2145_v22 = vrot.slane %v2144_v53, 4 }
 0x35e   : > { %v2935_v4 = vrot.slane %v2934_v20, 1 }
 0x35f   : > { %v3504_v12 = vpop.eup %3503 }
 0x360   : > { %v2694_v10 = vmul.f32 %v3504_v12, %v5033_v34  ;;  %v2695_v5 = vmul.f32 %v3504_v12, %v5038_v9  ;;  %v2914_v34 = vrot.slane %v2913_v18, 1  ;;  %v2921_v9 = vrot.slane %v2920_v51, 1  ;;  %v1955_v12 = vpop.xlane.xlu1 %1954 }
 0x361   : > { %v2936_v58 = vadd.f32 %v2935_v4, %v2934_v20  ;;  %v2158_v26 = vmax.f32 %v5091_v28, %v1955_v12 }
 0x362   : > { %v2758_v41 = vmul.f32 %v2694_v10, %v5427_v35  ;;  %v2759_v24 = vmul.f32 %v2695_v5, %v5429_v61  ;;  %v2915_v14 = vadd.f32 %v2914_v34, %v2913_v18  ;;  %v2922_v30 = vadd.f32 %v2921_v9, %v2920_v51 }
 0x363   : > { %v2159_v13 = vrot.slane %v2158_v26, 4  ;;  %v2153_v61 = vmax.f32 %v2151_v1, %v2152_v48 }
 0x364   : > { %v2937_v33 = vadd.f32 %v2759_v24, %v2758_v41  ;;  %v3071_v44 = vsel %vm3052_vm2, %v2915_v14, %v3070_v54  ;;  %v2146_v41 = vmax.f32 %v2144_v53, %v2145_v22 }
 0x365   : > { %v3072_v6 = vsel %vm3054_vm3, %v2922_v30, %v3071_v44  ;;  %v2160_v0 = vmax.f32 %v2158_v26, %v2159_v13  ;;  %v2154_v63 = vrot.slane %v2153_v61, 2 }
 0x366   : > { %v2938_v56 = vrot.slane %v2937_v33, 4  ;;  %v3073_v60 = vsel %vm3056_vm4, %v2929_v46, %v3072_v6  ;;  %v1957_v18 = vpop.xlane.xlu2 %1956  ;;  %v2147_v51 = vrot.slane %v2146_v41, 2 }
 0x367   : > { %v3074_v10 = vsel %vm3058_vm5, %v2936_v58, %v3073_v60  ;;  %v2161_v20 = vrot.slane %v2160_v0, 2  ;;  %v2155_v9 = vmax.f32 %v2153_v61, %v2154_v63 }
 0x368   : > { %v2939_v17 = vadd.f32 %v2938_v56, %v2937_v33  ;;  %v2148_v31 = vmax.f32 %v2146_v41, %v2147_v51 }
 0x369   : > { %v2162_v11 = vmax.f32 %v2160_v0, %v2161_v20  ;;  %v2156_v4 = vrot.slane %v2155_v9, 1 }
 0x36a   : > { %v2940_v7 = vrot.slane %v2939_v17, 2 }
 0x36b   : > { %v2163_v30 = vrot.slane %v2162_v11, 1  ;;  %v2157_v46 = vmax.f32 %v2155_v9, %v2156_v4 }
 0x36c   : > { %v2941_v43 = vadd.f32 %v2940_v7, %v2939_v17  ;;  %v2149_v17 = vrot.slane %v2148_v31, 1 }
 0x36d   : > { %v2164_v44 = vmax.f32 %v2162_v11, %v2163_v30  ;;  %v2250_v6 = vsub.f32 %v1949_v27, %v2157_v46 }
 0x36e   : > { %v2942_v45 = vrot.slane %v2941_v43, 1  ;;  %v5102_v5 = vpop.xlane.xlu0 %1958  ;;  %v2150_v7 = vmax.f32 %v2148_v31, %v2149_v17 }
 0x36f   : > { %v2165_v35 = vmax.f32 %v1957_v18, %v5102_v5  ;;  %v2253_v26 = vsub.f32 %v1955_v12, %v2164_v44  ;;  %v2364_v48 = vmul.f32 1.442695, %v2250_v6 }
 0x370   : > { %v2943_v49 = vadd.f32 %v2942_v45, %v2941_v43  ;;  %v2248_v58 = vsub.f32 %v5079_v57, %v2150_v7  ;;  %v2249_v53 = vsub.f32 %v5089_v52, %v2150_v7 }
 0x371   : > { %v2166_v24 = vrot.slane %v2165_v35, 4  ;;  %v2370_v27 = vmul.f32 1.442695, %v2253_v26 }
 0x372   : > { %v3075_v55 = vsel %vm3060_vm6, %v2943_v49, %v3074_v10  ;;  %v2251_v49 = vsub.f32 %v5081_v39, %v2157_v46  ;;  %v2360_v1 = vmul.f32 1.442695, %v2248_v58  ;;  %v2252_v10 = vsub.f32 %v5091_v28, %v2164_v44 }
 0x373   : > { %3089 = vst [vmem:[%s4546_s25 + $0x40] sm:$0xff] %v3075_v55  ;;  %v2167_v33 = vmax.f32 %v2165_v35, %v2166_v24  ;;  %v2362_v22 = vmul.f32 1.442695, %v2249_v53 }
 0x374   : > { %v2366_v41 = vmul.f32 1.442695, %v2251_v49  ;;  %3505 = vpow2.f32 %v2360_v1  ;;  %v2368_v61 = vmul.f32 1.442695, %v2252_v10 }
 0x375   : > { %v2168_v23 = vrot.slane %v2167_v33, 2  ;;  %3507 = vpow2.f32 %v2362_v22 }
 0x376   : > { %v1961_v59 = vpop.xlane.xlu2 %1960  ;;  %3509 = vpow2.f32 %v2364_v48 }
 0x377   : > { %v2169_v15 = vmax.f32 %v2167_v33, %v2168_v23  ;;  %3511 = vpow2.f32 %v2366_v41 }
 0x378   : > { %3513 = vpow2.f32 %v2368_v61 }
 0x379   : > { %v2170_v43 = vrot.slane %v2169_v15, 1  ;;  %3515 = vpow2.f32 %v2370_v27 }
 0x37b   : > { %v2171_v60 = vmax.f32 %v2169_v15, %v2170_v43 }
 0x37d   : > { %v2254_v35 = vsub.f32 %v1957_v18, %v2171_v60  ;;  %v2255_v13 = vsub.f32 %v5102_v5, %v2171_v60  ;;  %v5113_v5 = vpop.eup %3505 }
 0x37e   : > { %v1963_v34 = vpop.xlane.xlu0 %1962  ;;  %v5115_v31 = vpop.eup %3507 }
 0x37f   : > { %v2172_v56 = vmax.f32 %v1961_v59, %v1963_v34  ;;  %v2372_v0 = vmul.f32 1.442695, %v2254_v35  ;;  %v2374_v28 = vmul.f32 1.442695, %v2255_v13  ;;  %v2560_v4 = vadd.f32 %v5115_v31, %v5113_v5 }
 0x381   : > { %v2173_v32 = vrot.slane %v2172_v56, 4  ;;  %3517 = vpow2.f32 %v2372_v0 }
 0x382   : > { %3519 = vpow2.f32 %v2374_v28 }
 0x383   : > { %v2174_v14 = vmax.f32 %v2172_v56, %v2173_v32 }
 0x385   : > { %v2175_v42 = vrot.slane %v2174_v14, 2 }
 0x386   : > { %v1965_v52 = vpop.xlane.xlu2 %1964 }
 0x387   : > { %v2176_v54 = vmax.f32 %v2174_v14, %v2175_v42 }
 0x389   : > { %v2177_v45 = vrot.slane %v2176_v54, 1 }
 0x38b   : > { %v2178_v55 = vmax.f32 %v2176_v54, %v2177_v45  ;;  %v2561_v45 = vrot.slane %v2560_v4, 4 }
 0x38d   : > { %v2256_v24 = vsub.f32 %v1961_v59, %v2178_v55  ;;  %v2257_v51 = vsub.f32 %v1963_v34, %v2178_v55  ;;  %v5117_v59 = vpop.eup %3509  ;;  %v2562_v26 = vadd.f32 %v2561_v45, %v2560_v4 }
 0x38e   : > { %v1967_v57 = vpop.xlane.xlu0 %1966  ;;  %v5119_v34 = vpop.eup %3511 }
 0x38f   : > { %v2179_v39 = vmax.f32 %v1965_v52, %v1967_v57  ;;  %v2376_v12 = vmul.f32 1.442695, %v2256_v24  ;;  %v2378_v18 = vmul.f32 1.442695, %v2257_v51  ;;  %v5121_v9 = vpop.eup %3513  ;;  %v2567_v42 = vadd.f32 %v5119_v34, %v5117_v59 }
 0x390   : > { %v5123_v23 = vpop.eup %3515 }
 0x391   : > { %v2180_v63 = vrot.slane %v2179_v39, 4  ;;  %3521 = vpow2.f32 %v2376_v12  ;;  %v5125_v17 = vpop.eup %3517  ;;  %v2574_v58 = vadd.f32 %v5123_v23, %v5121_v9  ;;  %v2568_v10 = vrot.slane %v2567_v42, 4 }
 0x392   : > { %3523 = vpow2.f32 %v2378_v18  ;;  %v5127_v11 = vpop.eup %3519 }
 0x393   : > { %v2181_v33 = vmax.f32 %v2179_v39, %v2180_v63  ;;  %v2581_v53 = vadd.f32 %v5127_v11, %v5125_v17  ;;  %v2575_v55 = vrot.slane %v2574_v58, 4  ;;  %v2569_v13 = vadd.f32 %v2568_v10, %v2567_v42 }
 0x395   : > { %v2182_v20 = vrot.slane %v2181_v33, 2  ;;  %v2582_v48 = vrot.slane %v2581_v53, 4  ;;  %v2570_v28 = vrot.slane %v2569_v13, 2 }
 0x396   : > { %v1969_v54 = vpop.xlane.xlu0 %1968 }
 0x397   : > { %v2183_v56 = vmax.f32 %v2181_v33, %v2182_v20  ;;  %v5131_v14 = vpop.eup %3521  ;;  %v2583_v27 = vadd.f32 %v2582_v48, %v2581_v53 }
 0x398   : > { %v5133_v30 = vpop.eup %3523 }
 0x399   : > { %v2184_v32 = vrot.slane %v2183_v56, 1  ;;  %v2588_v49 = vadd.f32 %v5133_v30, %v5131_v14  ;;  %v2584_v20 = vrot.slane %v2583_v27, 2 }
 0x39b   : > { %v2185_v15 = vmax.f32 %v2183_v56, %v2184_v32  ;;  %v2589_v35 = vrot.slane %v2588_v49, 4 }
 0x39d   : > { %v2258_v46 = vsub.f32 %v1965_v52, %v2185_v15  ;;  %v2259_v43 = vsub.f32 %v1967_v57, %v2185_v15  ;;  %v2576_v57 = vadd.f32 %v2575_v55, %v2574_v58  ;;  %v2563_v52 = vrot.slane %v2562_v26, 2 }
 0x39e   : > { %v2590_v39 = vadd.f32 %v2589_v35, %v2588_v49  ;;  %v2571_v58 = vadd.f32 %v2570_v28, %v2569_v13  ;;  %v2585_v49 = vadd.f32 %v2584_v20, %v2583_v27 }
 0x39f   : > { %v1971_v7 = vpop.xlane.xlu1 %1970  ;;  %v2380_v6 = vmul.f32 1.442695, %v2258_v46  ;;  %v2382_v60 = vmul.f32 1.442695, %v2259_v43  ;;  %v2577_v12 = vrot.slane %v2576_v57, 2  ;;  %v2564_v33 = vadd.f32 %v2563_v52, %v2562_v26 }
 0x3a0   : > { %v2186_v44 = vmax.f32 %v1969_v54, %v1971_v7  ;;  %v2591_v15 = vrot.slane %v2590_v39, 2  ;;  %v2572_v26 = vrot.slane %v2571_v58, 1 }
 0x3a1   : > { %3525 = vpow2.f32 %v2380_v6  ;;  %v2578_v45 = vadd.f32 %v2577_v12, %v2576_v57  ;;  %v2565_v10 = vrot.slane %v2564_v33, 1 }
 0x3a2   : > { %v2187_v1 = vrot.slane %v2186_v44, 4  ;;  %3527 = vpow2.f32 %v2382_v60  ;;  %v2592_v55 = vadd.f32 %v2591_v15, %v2590_v39  ;;  %v2573_v52 = vadd.f32 %v2572_v26, %v2571_v58 }
 0x3a3   : > { %v2579_v35 = vrot.slane %v2578_v45, 1 }
 0x3a4   : > { %v2188_v22 = vmax.f32 %v2186_v44, %v2187_v1 }
 0x3a5   : > { %v2580_v28 = vadd.f32 %v2579_v35, %v2578_v45 }
 0x3a6   : > { %v2189_v41 = vrot.slane %v2188_v22, 2  ;;  %v1973_v32 = vpop.xlane.xlu2 %1972 }
 0x3a7   : > { %v5143_v24 = vpop.eup %3525 }
 0x3a8   : > { %v2190_v61 = vmax.f32 %v2188_v22, %v2189_v41  ;;  %v5145_v51 = vpop.eup %3527 }
 0x3a9   : > { %v2595_v63 = vadd.f32 %v5145_v51, %v5143_v24 }
 0x3aa   : > { %v2191_v0 = vrot.slane %v2190_v61, 1 }
 0x3ab   : > { %v2596_v56 = vrot.slane %v2595_v63, 4 }
 0x3ac   : > { %v2192_v18 = vmax.f32 %v2190_v61, %v2191_v0  ;;  %v2593_v61 = vrot.slane %v2592_v55, 1 }
 0x3ad   : > { %v2597_v44 = vadd.f32 %v2596_v56, %v2595_v63 }
 0x3ae   : > { %v1975_v4 = vpop.xlane.xlu0 %1974  ;;  %v2260_v42 = vsub.f32 %v1969_v54, %v2192_v18  ;;  %v2261_v46 = vsub.f32 %v1971_v7, %v2192_v18  ;;  %v2586_v54 = vrot.slane %v2585_v49, 1  ;;  %v2566_v7 = vadd.f32 %v2565_v10, %v2564_v33 }
 0x3af   : > { %v2193_v43 = vmax.f32 %v1973_v32, %v1975_v4  ;;  %v2598_v1 = vrot.slane %v2597_v44, 2  ;;  %v2594_v12 = vadd.f32 %v2593_v61, %v2592_v55 }
 0x3b0   : > { %v2384_v53 = vmul.f32 1.442695, %v2260_v42  ;;  %v2386_v6 = vmul.f32 1.442695, %v2261_v46  ;;  %v2587_v39 = vadd.f32 %v2586_v54, %v2585_v49 }
 0x3b1   : > { %v2194_v60 = vrot.slane %v2193_v43, 4  ;;  %v2599_v48 = vadd.f32 %v2598_v1, %v2597_v44 }
 0x3b2   : > { %3529 = vpow2.f32 %v2384_v53 }
 0x3b3   : > { %v2195_v22 = vmax.f32 %v2193_v43, %v2194_v60  ;;  %3531 = vpow2.f32 %v2386_v6  ;;  %v2600_v57 = vrot.slane %v2599_v48, 1 }
 0x3b4   : > { %3533 = vrcp.f32 %v2566_v7 }
 0x3b5   : > { %v2196_v41 = vrot.slane %v2195_v22, 2  ;;  %3535 = vrcp.f32 %v2573_v52  ;;  %v2601_v56 = vadd.f32 %v2600_v57, %v2599_v48  ;;  %v5431_v57 = vmax.f32 %v4590_v47, 0.0 }
 0x3b6   : > { %3537 = vrcp.f32 %v2580_v28  ;;  %v5436_v47 = vmax.f32 %v4645_v50, 0.0 }
 0x3b7   : > { %v2197_v13 = vmax.f32 %v2195_v22, %v2196_v41  ;;  %3539 = vrcp.f32 %v2587_v39  ;;  %v5434_v39 = vmax.f32 %v4495_v25, 0.0  ;;  %v5440_v25 = vmax.f32 %v4723_v40, 0.0 }
 0x3b8   : > { %v5149_v0 = vpop.eup %3529  ;;  %3541 = vrcp.f32 %v2594_v12 }
 0x3b9   : > { %v2198_v27 = vrot.slane %v2197_v13, 1  ;;  %v5151_v63 = vpop.eup %3531  ;;  %3543 = vrcp.f32 %v2601_v56 }
 0x3ba   : > { %v2602_v18 = vadd.f32 %v5151_v63, %v5149_v0  ;;  %v3534_v44 = vpop.eup %3533 }
 0x3bb   : > { %v2199_v20 = vmax.f32 %v2197_v13, %v2198_v27  ;;  %v3536_v53 = vpop.eup %3535  ;;  %v2696_v54 = vmul.f32 %v3534_v44, %v5113_v5  ;;  %v2697_v7 = vmul.f32 %v3534_v44, %v5115_v31 }
 0x3bc   : > { %v2603_v33 = vrot.slane %v2602_v18, 4  ;;  %v3538_v6 = vpop.eup %3537 }
 0x3bd   : > { %v2262_v15 = vsub.f32 %v1973_v32, %v2199_v20  ;;  %v2263_v42 = vsub.f32 %v1975_v4, %v2199_v20  ;;  %v3540_v49 = vpop.eup %3539  ;;  %v2698_v32 = vmul.f32 %v3536_v53, %v5117_v59  ;;  %v2699_v4 = vmul.f32 %v3536_v53, %v5119_v34 }
 0x3be   : > { %v2604_v46 = vadd.f32 %v2603_v33, %v2602_v18  ;;  %v3542_v1 = vpop.eup %3541  ;;  %v2700_v26 = vmul.f32 %v3538_v6, %v5121_v9  ;;  %v2701_v48 = vmul.f32 %v3538_v6, %v5123_v23  ;;  %v2702_v61 = vmul.f32 %v3540_v49, %v5125_v17 }
 0x3bf   : > { %v2388_v43 = vmul.f32 1.442695, %v2262_v15  ;;  %v2390_v58 = vmul.f32 1.442695, %v2263_v42  ;;  %v3544_v55 = vpop.eup %3543  ;;  %v2703_v13 = vmul.f32 %v3540_v49, %v5127_v11  ;;  %v2704_v59 = vmul.f32 %v3542_v1, %v5131_v14 }
 0x3c0   : > { %v2605_v45 = vrot.slane %v2604_v46, 2  ;;  %v2705_v34 = vmul.f32 %v3542_v1, %v5133_v30  ;;  %v5430_v23 = vmax.f32 %v4550_v38, 0.0  ;;  %v2763_v5 = vmul.f32 %v2699_v4, %v5431_v57 }
 0x3c1   : > { %3545 = vpow2.f32 %v2388_v43  ;;  %v2706_v31 = vmul.f32 %v3544_v55, %v5143_v24  ;;  %v2707_v17 = vmul.f32 %v3544_v55, %v5145_v51  ;;  %v5432_v11 = vmax.f32 %v4621_v62, 0.0 }
 0x3c2   : > { %3547 = vpow2.f32 %v2390_v58  ;;  %v2606_v60 = vadd.f32 %v2605_v45, %v2604_v46  ;;  %v2762_v52 = vmul.f32 %v2698_v32, %v5430_v23  ;;  %v5433_v14 = vmax.f32 %v4629_v16, 0.0 }
 0x3c3   : > { %v2764_v28 = vmul.f32 %v2700_v26, %v5432_v11  ;;  %v2760_v12 = vmul.f32 %v2696_v54, %v5434_v39  ;;  %v5435_v38 = vmax.f32 %v4513_v19, 0.0  ;;  %v2766_v20 = vmul.f32 %v2702_v61, %v5436_v47  ;;  %v5445_v47 = vld [vmem:[#allocation31_spill] sm:$0xff] }
 0x3c4   : > { %v2607_v10 = vrot.slane %v2606_v60, 1  ;;  %v2765_v30 = vmul.f32 %v2701_v48, %v5433_v14  ;;  %v5437_v24 = vmax.f32 %v4660_v3, 0.0  ;;  %v5438_v51 = vmax.f32 %v4685_v29, 0.0 }
 0x3c5   : > { %v2761_v18 = vmul.f32 %v2697_v7, %v5435_v38  ;;  %v5439_v33 = vmax.f32 %v4709_v21, 0.0  ;;  %v2951_v42 = vadd.f32 %v2763_v5, %v2762_v52  ;;  %v2770_v46 = vmul.f32 %v2706_v31, %v5440_v25 }
 0x3c6   : > { %v2608_v35 = vadd.f32 %v2607_v10, %v2606_v60  ;;  %v2767_v56 = vmul.f32 %v2703_v13, %v5437_v24  ;;  %v2768_v62 = vmul.f32 %v2704_v59, %v5438_v51  ;;  %v5441_v19 = vmax.f32 %v4735_v37, 0.0 }
 0x3c7   : > { %v5157_v22 = vpop.eup %3545  ;;  %v2769_v16 = vmul.f32 %v2705_v34, %v5439_v33  ;;  %v2958_v50 = vadd.f32 %v2765_v30, %v2764_v28  ;;  %v2944_v45 = vadd.f32 %v2761_v18, %v2760_v12  ;;  %v2952_v60 = vrot.slane %v2951_v42, 4 }
 0x3c8   : > { %v5161_v41 = vpop.eup %3547  ;;  %3549 = vrcp.f32 %v2608_v35  ;;  %v2771_v43 = vmul.f32 %v2707_v17, %v5441_v19  ;;  %v2965_v3 = vadd.f32 %v2767_v56, %v2766_v20  ;;  %v5442_v1 = vmax.f32 %v4753_v2, 0.0 }
 0x3c9   : > { %v2609_v9 = vadd.f32 %v5161_v41, %v5157_v22  ;;  %v2972_v6 = vadd.f32 %v2769_v16, %v2768_v62  ;;  %v5443_v10 = vmax.f32 %v4769_v36, 0.0  ;;  %v2959_v55 = vrot.slane %v2958_v50, 4 }
 0x3ca   : > { %v2979_v49 = vadd.f32 %v2771_v43, %v2770_v46  ;;  %v2945_v4 = vrot.slane %v2944_v45, 4  ;;  %v2966_v26 = vrot.slane %v2965_v3, 4  ;;  %v5444_v38 = vmax.f32 %v4801_v8, 0.0 }
 0x3cb   : > { %v2610_v27 = vrot.slane %v2609_v9, 4  ;;  %v2973_v35 = vrot.slane %v2972_v6, 4  ;;  %v5446_v20 = vmax.f32 %v5445_v47, 0.0 }
 0x3cc   : > { %v2980_v7 = vrot.slane %v2979_v49, 4  ;;  %v2946_v13 = vadd.f32 %v2945_v4, %v2944_v45  ;;  %v2967_v59 = vadd.f32 %v2966_v26, %v2965_v3 }
 0x3cd   : > { %v2611_v15 = vadd.f32 %v2610_v27, %v2609_v9  ;;  %v2974_v34 = vadd.f32 %v2973_v35, %v2972_v6 }
 0x3ce   : > { %v3550_v58 = vpop.eup %3549  ;;  %v2981_v9 = vadd.f32 %v2980_v7, %v2979_v49  ;;  %v2947_v52 = vrot.slane %v2946_v13, 2  ;;  %v2968_v57 = vrot.slane %v2967_v59, 2 }
 0x3cf   : > { %v2612_v44 = vrot.slane %v2611_v15, 2  ;;  %v2708_v53 = vmul.f32 %v3550_v58, %v5149_v0  ;;  %v2709_v29 = vmul.f32 %v3550_v58, %v5151_v63  ;;  %v2953_v0 = vadd.f32 %v2952_v60, %v2951_v42 }
 0x3d0   : > { %v2960_v63 = vadd.f32 %v2959_v55, %v2958_v50  ;;  %v2975_v31 = vrot.slane %v2974_v34, 2  ;;  %v2982_v11 = vrot.slane %v2981_v9, 2  ;;  %v2948_v39 = vadd.f32 %v2947_v52, %v2946_v13 }
 0x3d1   : > { %v2613_v21 = vadd.f32 %v2612_v44, %v2611_v15  ;;  %v2772_v40 = vmul.f32 %v2708_v53, %v5442_v1  ;;  %v2773_v37 = vmul.f32 %v2709_v29, %v5443_v10  ;;  %v2954_v2 = vrot.slane %v2953_v0, 2 }
 0x3d2   : > { %v2961_v23 = vrot.slane %v2960_v63, 2  ;;  %v2969_v12 = vadd.f32 %v2968_v57, %v2967_v59  ;;  %v2976_v56 = vadd.f32 %v2975_v31, %v2974_v34  ;;  %v2983_v62 = vadd.f32 %v2982_v11, %v2981_v9 }
 0x3d3   : > { %v2614_v32 = vrot.slane %v2613_v21, 1  ;;  %v2986_v48 = vadd.f32 %v2773_v37, %v2772_v40  ;;  %v2955_v17 = vadd.f32 %v2954_v2, %v2953_v0  ;;  %v2949_v42 = vrot.slane %v2948_v39, 1 }
 0x3d4   : > { %v2962_v30 = vadd.f32 %v2961_v23, %v2960_v63  ;;  %v2984_v19 = vrot.slane %v2983_v62, 1 }
 0x3d5   : > { %v2615_v54 = vadd.f32 %v2614_v32, %v2613_v21  ;;  %v2987_v61 = vrot.slane %v2986_v48, 4  ;;  %v2956_v51 = vrot.slane %v2955_v17, 1  ;;  %v2950_v8 = vadd.f32 %v2949_v42, %v2948_v39 }
 0x3d6   : > { %v2963_v16 = vrot.slane %v2962_v30, 1  ;;  %v2985_v29 = vadd.f32 %v2984_v19, %v2983_v62 }
 0x3d7   : > { %3551 = vrcp.f32 %v2615_v54  ;;  %v2988_v36 = vadd.f32 %v2987_v61, %v2986_v48  ;;  %v2957_v46 = vadd.f32 %v2956_v51, %v2955_v17 }
 0x3d8   : > { %v2964_v58 = vadd.f32 %v2963_v16, %v2962_v30 }
 0x3d9   : > { %v2989_v27 = vrot.slane %v2988_v36, 2  ;;  %v3076_v53 = vsel %vm3048_vm0, %v2957_v46, %v2950_v8 }
 0x3da   : > { %v3077_v21 = vsel %vm3050_vm1, %v2964_v58, %v3076_v53 }
 0x3db   : > { %v2990_v15 = vadd.f32 %v2989_v27, %v2988_v36 }
 0x3dd   : > { %v3552_v5 = vpop.eup %3551  ;;  %v2991_v50 = vrot.slane %v2990_v15, 1 }
 0x3de   : > { %v2710_v28 = vmul.f32 %v3552_v5, %v5157_v22  ;;  %v2711_v14 = vmul.f32 %v3552_v5, %v5161_v41  ;;  %v2970_v22 = vrot.slane %v2969_v12, 1  ;;  %v2977_v41 = vrot.slane %v2976_v56, 1 }
 0x3df   : > { %v2992_v60 = vadd.f32 %v2991_v50, %v2990_v15 }
 0x3e0   : > { %v2774_v18 = vmul.f32 %v2710_v28, %v5444_v38  ;;  %v2775_v24 = vmul.f32 %v2711_v14, %v5446_v20  ;;  %v2971_v44 = vadd.f32 %v2970_v22, %v2969_v12  ;;  %v2978_v3 = vadd.f32 %v2977_v41, %v2976_v56 }
 0x3e2   : > { %v2993_v33 = vadd.f32 %v2775_v24, %v2774_v18  ;;  %v3078_v49 = vsel %vm3052_vm2, %v2971_v44, %v3077_v21 }
 0x3e3   : > { %v3079_v40 = vsel %vm3054_vm3, %v2978_v3, %v3078_v49 }
 0x3e4   : > { %v2994_v25 = vrot.slane %v2993_v33, 4  ;;  %v3080_v10 = vsel %vm3056_vm4, %v2985_v29, %v3079_v40 }
 0x3e5   : > { %v3081_v55 = vsel %vm3058_vm5, %v2992_v60, %v3080_v10 }
 0x3e6   : > { %v2995_v43 = vadd.f32 %v2994_v25, %v2993_v33 }
 0x3e8   : > { %v2996_v45 = vrot.slane %v2995_v43, 2 }
 0x3ea   : > { %v2997_v6 = vadd.f32 %v2996_v45, %v2995_v43 }
 0x3ec   : > { %v2998_v1 = vrot.slane %v2997_v6, 1 }
 0x3ee   : > { %v2999_v37 = vadd.f32 %v2998_v1, %v2997_v6 }
 0x3f0   : > { %v3082_v32 = vsel %vm3060_vm6, %v2999_v37, %v3081_v55 }
 0x3f1   : > { %3090 = vst [vmem:[%s4546_s25 + $0x58] sm:$0xff] %v3082_v32 }
 0x3f2 PF: > { %s18_s27 = sadd.s32 1, %s3567_s27  }
 0x3f3   : > { %p15_p5 = scmp.ge.s32.totalorder %s18_s27, 4  }
 0x3f5   :  { %17 = sbr.rel (!%p15_p5) target bundleno = 1 (0x1), region = 90 }

</bundles_post_ra>
